<compile_context>
chip_gen: v7x
topology: tpu7x:2x2x1
jax: 0.10.0
libtpu: 0.0.40
codegen_flags: <defaults>
</compile_context>

<pallas_src>
import functools
from functools import reduce
from operator import mul

import numpy as np
import jax
import jax.numpy as jnp
from jax import lax
from jax.experimental import pallas as pl
from jax.experimental.pallas import tpu as pltpu


# ----------------------------------------------------------------------------
# Device-aware VMEM budgets
# ----------------------------------------------------------------------------

def _tpu_vmem_capacity_bytes():
    try:
        return int(pltpu.get_tpu_info().vmem_capacity_bytes)
    except Exception:
        return 64 * 1024 * 1024                      # conservative (v7x per-core VMEM)


_VMEM_CAP = _tpu_vmem_capacity_bytes()
_VMEM_LIMIT = min(_VMEM_CAP * 3 // 4, 96 * 1024 * 1024)    # scoped VMEM limit
_WS_BUDGET = min(_VMEM_CAP * 11 // 20, 64 * 1024 * 1024)   # per-kernel working set


def _row_tile(M, bytes_per_row, budget, cap=2048):
    """Large, 8-aligned row tile within the working-set budget."""
    if M <= cap:
        if M >= 16 and M % 16 == 0:
            return M // 2          # keep >= 2 grid steps (v7x has 2 TensorCores)
        return M
    tm = max(8, min(cap, budget // max(bytes_per_row, 1), M))
    tm = (tm // 8) * 8
    while tm > 8 and M % tm:       # prefer an even split (no ragged last block)
        tm -= 8
    return max(tm, 8)


def _choose_window_cols(B, nDb, nHb, nWb, ww, N, C, nH, budget, target_rows=512):
    """How many windows (along W) to process per grid step.

    Constraints: WBw divides nWb and ww*WBw is 8-aligned (or the full W extent);
    prefer >= target_rows tokens per step while fitting the VMEM budget and
    keeping at least 2 grid steps when possible.
    """
    cands = [w for w in range(1, nWb + 1)
             if nWb % w == 0 and ((ww * w) % 8 == 0 or w == nWb)]
    if B * nDb * nHb == 1 and nWb >= 2:
        c2 = [w for w in cands if nWb // w >= 2]
        if c2:
            cands = c2
    weights = C * 3 * C + 3 * C + C * C + 2 * C + nH * N * N
    best = cands[0]
    for w in cands:
        rows = w * N
        est = 4 * (4 * rows * C                    # in + out blocks, double-buffered
                   + 2 * (weights + w * N * N)     # resident weights + mask, 2 bufs
                   + rows * 3 * C                  # qkv
                   + 3 * w * N * N                 # scores / probs live
                   + 2 * rows * C)                 # ln + proj accumulator
        if est <= budget:
            best = w
            if rows >= target_rows:
                break
        else:
            break
    return best


# ----------------------------------------------------------------------------
# Pallas kernels
# ----------------------------------------------------------------------------

def _ln_kernel(x_ref, w_ref, b_ref, o_ref):
    x = x_ref[...].astype(jnp.float32)
    mu = jnp.mean(x, axis=-1, keepdims=True)
    var = jnp.mean(jnp.square(x - mu), axis=-1, keepdims=True)
    o_ref[...] = (((x - mu) * lax.rsqrt(var + 1e-5)) * w_ref[...]
                  + b_ref[...]).astype(o_ref.dtype)


def layernorm_pallas(x2d, w, b):
    """Standalone LN (only used on the padded general path)."""
    M, C = x2d.shape
    TM = _row_tile(M, 4 * 5 * C, _WS_BUDGET)
    return pl.pallas_call(
        _ln_kernel,
        out_shape=jax.ShapeDtypeStruct((M, C), x2d.dtype),
        grid=(pl.cdiv(M, TM),),
        in_specs=[pl.BlockSpec((TM, C), lambda i: (i, 0)),
                  pl.BlockSpec((1, C), lambda i: (0, 0)),
                  pl.BlockSpec((1, C), lambda i: (0, 0))],
        out_specs=pl.BlockSpec((TM, C), lambda i: (i, 0)),
        compiler_params=pltpu.CompilerParams(
            dimension_semantics=("parallel",), vmem_limit_bytes=_VMEM_LIMIT),
    )(x2d, w.reshape(1, C), b.reshape(1, C))


def _make_attn_kernel(num_heads, wd, wh, ww, WBw, C, fuse_ln, has_mask):
    N = wd * wh * ww
    WW = ww * WBw
    rows = wd * wh * WW            # == WBw * N
    hd = C // num_heads

    def kernel(*refs):
        it = iter(refs)
        x_ref = next(it)
        if fuse_ln:
            nw_ref = next(it)
            nb_ref = next(it)
        else:
            xres_ref = next(it)
        mask_ref = next(it) if has_mask else None
        wqkv_ref = next(it)
        bqkv_ref = next(it)
        wproj_ref = next(it)
        bproj_ref = next(it)
        relb_ref = next(it)
        o_ref = next(it)

        x = x_ref[...].astype(jnp.float32).reshape(rows, C)
        if fuse_ln:
            mu = jnp.mean(x, axis=-1, keepdims=True)
            var = jnp.mean(jnp.square(x - mu), axis=-1, keepdims=True)
            xn = (x - mu) * lax.rsqrt(var + 1e-5) * nw_ref[...] + nb_ref[...]
            xres = x
        else:
            xn = x
            xres = xres_ref[...].astype(jnp.float32).reshape(rows, C)

        # Spatial tile -> window-batched tokens. Rows are ordered (d, h, wblk, w);
        # a leading-dims-only transpose (minor dims untouched) groups the windows.
        xw = jnp.transpose(xn.reshape(wd * wh, WBw, ww, C), (1, 0, 2, 3))
        xw = xw.reshape(WBw * N, C)

        # One QKV projection for all WBw windows (q is pre-scaled via the weights).
        qkv = jnp.dot(xw, wqkv_ref[...],
                      preferred_element_type=jnp.float32) + bqkv_ref[...]
        relb = relb_ref[...]
        mask = mask_ref[...].astype(jnp.float32) if has_mask else None
        wproj = wproj_ref[...]

        y = jnp.zeros((WBw * N, C), jnp.float32)
        for h in range(num_heads):
            q = qkv[:, h * hd:(h + 1) * hd].reshape(WBw, N, hd)
            k = qkv[:, C + h * hd:C + (h + 1) * hd].reshape(WBw, N, hd)
            v = qkv[:, 2 * C + h * hd:2 * C + (h + 1) * hd].reshape(WBw, N, hd)
            attn = lax.dot_general(q, k, (((2,), (2,)), ((0,), (0,))),
                                   preferred_element_type=jnp.float32)       # (WBw,N,N)
            attn = attn + relb[h]
            if mask is not None:
                attn = attn + mask
            attn = attn - jnp.max(attn, axis=-1, keepdims=True)
            p = jnp.exp(attn)
            p = p / jnp.sum(p, axis=-1, keepdims=True)                       # exact softmax
            o_h = lax.dot_general(p, v, (((2,), (1,)), ((0,), (0,))),
                                  preferred_element_type=jnp.float32)        # (WBw,N,hd)
            # Accumulate the output projection per head (row slice of wproj):
            # no scratch slab, no per-head masked column stores.
            y = y + jnp.dot(o_h.reshape(WBw * N, hd), wproj[h * hd:(h + 1) * hd, :],
                            preferred_element_type=jnp.float32)
        y = y + bproj_ref[...]

        # Window-batched tokens -> spatial tile, fused attention residual.
        ysp = jnp.transpose(y.reshape(WBw, wd * wh, ww, C), (1, 0, 2, 3)).reshape(rows, C)
        o_ref[...] = (xres + ysp).reshape(wd, wh, WW, C).astype(o_ref.dtype)

    return kernel


def window_attention_spatial(x5d, mask, blk, rel_bias, num_heads, window_size,
                             xres5d=None):
    """Fused [norm1 +] window-partition + MHSA + proj + residual, in-place layout.

    x5d: (B, Dp, Hp, Wp, C) channels-last (already rolled for shifted blocks).
    If xres5d is None, norm1 is fused inside the kernel and x5d is the residual.
    """
    B, Dp, Hp, Wp, C = x5d.shape
    wd, wh, ww = window_size
    N = wd * wh * ww
    nDb, nHb, nWb = Dp // wd, Hp // wh, Wp // ww
    fuse_ln = xres5d is None
    has_mask = mask is not None
    if has_mask:
        assert mask.shape == (nDb * nHb * nWb, N, N)

    WBw = _choose_window_cols(B, nDb, nHb, nWb, ww, N, C, num_heads, _WS_BUDGET)
    WW = ww * WBw
    kblocks = nWb // WBw
    grid = (B, nDb, nHb, kblocks)

    blk_spec = pl.BlockSpec((None, wd, wh, WW, C), lambda b, i, j, k: (b, i, j, k, 0))
    vec_spec = pl.BlockSpec((1, C), lambda b, i, j, k: (0, 0))
    w_specs = [
        pl.BlockSpec((C, 3 * C), lambda b, i, j, k: (0, 0)),
        pl.BlockSpec((1, 3 * C), lambda b, i, j, k: (0, 0)),
        pl.BlockSpec((C, C), lambda b, i, j, k: (0, 0)),
        pl.BlockSpec((1, C), lambda b, i, j, k: (0, 0)),
        pl.BlockSpec((num_heads, N, N), lambda b, i, j, k: (0, 0, 0)),
    ]

    in_specs = [blk_spec]
    args = [x5d]
    if fuse_ln:
        in_specs += [vec_spec, vec_spec]
        args += [blk["norm1_w"].reshape(1, C), blk["norm1_b"].reshape(1, C)]
    else:
        in_specs += [blk_spec]
        args += [xres5d]
    if has_mask:
        in_specs += [pl.BlockSpec(
            (WBw, N, N), lambda b, i, j, k: ((i * nHb + j) * kblocks + k, 0, 0))]
        args += [mask.astype(jnp.float32)]
    in_specs += w_specs
    args += [blk["wqkv_s"], blk["bqkv_s"], blk["wproj"], blk["bproj"], rel_bias]

    kernel = _make_attn_kernel(num_heads, wd, wh, ww, WBw, C, fuse_ln, has_mask)
    return pl.pallas_call(
        kernel,
        out_shape=jax.ShapeDtypeStruct(x5d.shape, x5d.dtype),
        grid=grid,
        in_specs=in_specs,
        out_specs=pl.BlockSpec((None, wd, wh, WW, C), lambda b, i, j, k: (b, i, j, k, 0)),
        compiler_params=pltpu.CompilerParams(
            dimension_semantics=("parallel",) * 4, vmem_limit_bytes=_VMEM_LIMIT),
    )(*args)


def _ln_mlp_res_kernel(x_ref, nw_ref, nb_ref, w1_ref, b1_ref, w2_ref, b2_ref, o_ref):
    x = x_ref[...].astype(jnp.float32)
    mu = jnp.mean(x, axis=-1, keepdims=True)
    var = jnp.mean(jnp.square(x - mu), axis=-1, keepdims=True)
    y = (x - mu) * lax.rsqrt(var + 1e-5) * nw_ref[...] + nb_ref[...]
    h = jnp.dot(y, w1_ref[...], preferred_element_type=jnp.float32) + b1_ref[...]
    h = 0.5 * h * (1.0 + lax.erf(h * jnp.float32(0.7071067811865476)))   # exact GELU
    o = jnp.dot(h, w2_ref[...], preferred_element_type=jnp.float32) + b2_ref[...]
    o_ref[...] = (x + o).astype(o_ref.dtype)


def ln_mlp_residual_pallas(x2d, nw, nb, w1, b1, w2, b2):
    M, C = x2d.shape
    Hd = w1.shape[1]
    w_bytes = 4 * 2 * (2 * C + C * Hd + Hd + Hd * C + C)
    TM = _row_tile(M, 4 * (6 * C + 2 * Hd), max(_WS_BUDGET - w_bytes, 1 << 20))
    return pl.pallas_call(
        _ln_mlp_res_kernel,
        out_shape=jax.ShapeDtypeStruct((M, C), x2d.dtype),
        grid=(pl.cdiv(M, TM),),
        in_specs=[
            pl.BlockSpec((TM, C), lambda i: (i, 0)),
            pl.BlockSpec((1, C), lambda i: (0, 0)),
            pl.BlockSpec((1, C), lambda i: (0, 0)),
            pl.BlockSpec((C, Hd), lambda i: (0, 0)),
            pl.BlockSpec((1, Hd), lambda i: (0, 0)),
            pl.BlockSpec((Hd, C), lambda i: (0, 0)),
            pl.BlockSpec((1, C), lambda i: (0, 0)),
        ],
        out_specs=pl.BlockSpec((TM, C), lambda i: (i, 0)),
        compiler_params=pltpu.CompilerParams(
            dimension_semantics=("parallel",), vmem_limit_bytes=_VMEM_LIMIT),
    )(x2d, nw.reshape(1, C), nb.reshape(1, C), w1, b1, w2, b2)


def _linear_res_kernel(y_ref, r_ref, w_ref, b_ref, o_ref):
    z = jnp.dot(y_ref[...].astype(jnp.float32), w_ref[...],
                preferred_element_type=jnp.float32) + b_ref[...]
    o_ref[...] = (r_ref[...].astype(jnp.float32) + z).astype(o_ref.dtype)


def linear_residual_pallas(y2d, r2d, w, b):
    M, Cin = y2d.shape
    Cout = w.shape[1]
    w_bytes = 4 * 2 * (Cin * Cout + Cout)
    TM = _row_tile(M, 4 * (4 * Cin + 3 * Cout), max(_WS_BUDGET - w_bytes, 1 << 20))
    return pl.pallas_call(
        _linear_res_kernel,
        out_shape=jax.ShapeDtypeStruct((M, Cout), y2d.dtype),
        grid=(pl.cdiv(M, TM),),
        in_specs=[pl.BlockSpec((TM, Cin), lambda i: (i, 0)),
                  pl.BlockSpec((TM, Cin), lambda i: (i, 0)),
                  pl.BlockSpec((Cin, Cout), lambda i: (0, 0)),
                  pl.BlockSpec((1, Cout), lambda i: (0, 0))],
        out_specs=pl.BlockSpec((TM, Cout), lambda i: (i, 0)),
        compiler_params=pltpu.CompilerParams(
            dimension_semantics=("parallel",), vmem_limit_bytes=_VMEM_LIMIT),
    )(y2d, r2d, w, b)


# ----------------------------------------------------------------------------
# Glue (window size clamp, masks, relative position index)
# ----------------------------------------------------------------------------

def get_window_size(x_size, window_size, shift_size=None):
    use_window_size = list(window_size)
    if shift_size is not None:
        use_shift_size = list(shift_size)
    for i in range(len(x_size)):
        if x_size[i] <= window_size[i]:
            use_window_size[i] = x_size[i]
            if shift_size is not None:
                use_shift_size[i] = 0
    if shift_size is None:
        return tuple(use_window_size)
    return tuple(use_window_size), tuple(use_shift_size)


def window_partition(x, window_size):
    B, D, H, W, C = x.shape
    x = x.reshape(B, D // window_size[0], window_size[0],
                  H // window_size[1], window_size[1],
                  W // window_size[2], window_size[2], C)
    return jnp.transpose(x, (0, 1, 3, 5, 2, 4, 6, 7)).reshape(
        -1, reduce(mul, window_size), C)


def window_reverse(windows, window_size, B, D, H, W):
    x = windows.reshape(B, D // window_size[0], H // window_size[1],
                        W // window_size[2], window_size[0], window_size[1],
                        window_size[2], -1)
    return jnp.transpose(x, (0, 1, 4, 2, 5, 3, 6, 7)).reshape(B, D, H, W, -1)


def window_partition_np(x, window_size):
    B, D, H, W, C = x.shape
    x = x.reshape(B, D // window_size[0], window_size[0],
                  H // window_size[1], window_size[1],
                  W // window_size[2], window_size[2], C)
    return np.transpose(x, (0, 1, 3, 5, 2, 4, 6, 7)).reshape(
        -1, reduce(mul, window_size), C)


def compute_mask_np(D, H, W, window_size, shift_size):
    img_mask = np.zeros((1, D, H, W, 1), dtype=np.float32)
    cnt = 0
    for d in (slice(-window_size[0]), slice(-window_size[0], -shift_size[0]),
              slice(-shift_size[0], None)):
        for h in (slice(-window_size[1]), slice(-window_size[1], -shift_size[1]),
                  slice(-shift_size[1], None)):
            for w in (slice(-window_size[2]), slice(-window_size[2], -shift_size[2]),
                      slice(-shift_size[2], None)):
                img_mask[:, d, h, w, :] = cnt
                cnt += 1
    mask_windows = window_partition_np(img_mask, window_size).squeeze(-1)  # (nW, N)
    diff = mask_windows[:, None, :] - mask_windows[:, :, None]
    return np.where(diff != 0, np.float32(-100.0), np.float32(0.0)).astype(np.float32)


def get_position_index_np(window_size):
    coords_d = np.arange(window_size[0])
    coords_h = np.arange(window_size[1])
    coords_w = np.arange(window_size[2])
    coords = np.stack(np.meshgrid(coords_d, coords_h, coords_w, indexing="ij"))
    coords_flatten = coords.reshape(3, -1)
    relative_coords = coords_flatten[:, :, None] - coords_flatten[:, None, :]
    relative_coords = relative_coords.transpose(1, 2, 0).copy()
    relative_coords[:, :, 0] += window_size[0] - 1
    relative_coords[:, :, 1] += window_size[1] - 1
    relative_coords[:, :, 2] += window_size[2] - 1
    relative_coords[:, :, 0] *= (2 * window_size[1] - 1) * (2 * window_size[2] - 1)
    relative_coords[:, :, 1] *= 2 * window_size[2] - 1
    return relative_coords.sum(-1)


# ----------------------------------------------------------------------------
# Model forward (STL / STG / RSTB), channels-last internally
# ----------------------------------------------------------------------------

def stl_attention(x, blk, rel_bias, mask_full, window_size, shift_size, num_heads):
    """x: (B, D, H, W, C). Returns x + attention-residual (same shape)."""
    B, D, H, W, C = x.shape
    wd, wh, ww = window_size
    pad_d = (wd - D % wd) % wd
    pad_h = (wh - H % wh) % wh
    pad_w = (ww - W % ww) % ww
    shifted = any(s > 0 for s in shift_size)
    mask = mask_full if shifted else None

    if pad_d == 0 and pad_h == 0 and pad_w == 0:
        # Fast path: norm1 + window partition/reverse + attention + residual fused.
        xin = (jnp.roll(x, (-shift_size[0], -shift_size[1], -shift_size[2]),
                        axis=(1, 2, 3)) if shifted else x)
        out = window_attention_spatial(xin, mask, blk, rel_bias, num_heads, window_size)
        if shifted:
            out = jnp.roll(out, (shift_size[0], shift_size[1], shift_size[2]),
                           axis=(1, 2, 3))
        return out

    # General path (spatial padding): norm1 must run before zero-padding to match
    # the reference exactly (padded tokens stay 0, not LN(0)).
    xn = layernorm_pallas(x.reshape(-1, C), blk["norm1_w"], blk["norm1_b"]).reshape(x.shape)
    pads = ((0, 0), (0, pad_d), (0, pad_h), (0, pad_w), (0, 0))
    xn_p = jnp.pad(xn, pads)
    xr_p = jnp.pad(x, pads)
    if shifted:
        sh = (-shift_size[0], -shift_size[1], -shift_size[2])
        xn_p = jnp.roll(xn_p, sh, axis=(1, 2, 3))
        xr_p = jnp.roll(xr_p, sh, axis=(1, 2, 3))
    out = window_attention_spatial(xn_p, mask, blk, rel_bias, num_heads, window_size,
                                   xres5d=xr_p)
    if shifted:
        out = jnp.roll(out, (shift_size[0], shift_size[1], shift_size[2]), axis=(1, 2, 3))
    return out[:, :D, :H, :W, :]


def stl_forward(x, blk, mask_full, window_size, shift_size, num_heads):
    x = stl_attention(x, blk, blk["rel_bias"], mask_full, window_size, shift_size,
                      num_heads)
    B, D, H, W, C = x.shape
    out = ln_mlp_residual_pallas(x.reshape(-1, C), blk["norm2_w"], blk["norm2_b"],
                                 blk["w1"], blk["b1"], blk["w2"], blk["b2"])
    return out.reshape(B, D, H, W, C)


def rstb_forward(x, prep, *, window_size, shift_size, num_heads):
    B, C, D, H, W = x.shape
    xcl = jnp.transpose(x, (0, 2, 3, 4, 1))               # (B, D, H, W, C)
    y = xcl
    for i, blk in enumerate(prep["blocks"]):
        blk_shift = (0, 0, 0) if i % 2 == 0 else shift_size
        y = stl_forward(y, blk, prep["attn_mask"], window_size, blk_shift, num_heads)
    out = linear_residual_pallas(y.reshape(-1, C), xcl.reshape(-1, C),
                                 prep["lin_w"], prep["lin_b"])
    out = out.reshape(B, D, H, W, C)
    return jnp.transpose(out, (0, 4, 1, 2, 3))            # back to (B, C, D, H, W)


def prepare_params(params, x_shape, window_size_cfg, num_heads):
    """Host-side prep: clamp window/shift, precompute the attention mask, fold the
    qk scale into the q columns of wqkv/bqkv, materialize per-block rel-pos bias."""
    B, C, D, H, W = x_shape
    shift_cfg = tuple(w // 2 for w in window_size_cfg)
    window_size, shift_size = get_window_size((D, H, W), window_size_cfg, shift_cfg)
    wd, wh, ww = window_size
    N = wd * wh * ww
    Dp = int(np.ceil(D / wd)) * wd
    Hp = int(np.ceil(H / wh)) * wh
    Wp = int(np.ceil(W / ww)) * ww
    attn_mask = jnp.asarray(compute_mask_np(Dp, Hp, Wp, window_size, shift_size))
    idx = np.asarray(params["rpi"][:N, :N]).reshape(-1)
    scale = (C // num_heads) ** (-0.5)
    col_scale = jnp.asarray(np.concatenate(
        [np.full((C,), scale, np.float32), np.ones((2 * C,), np.float32)]))[None, :]
    blocks = []
    for blk in params["blocks"]:
        rb = blk["rpb_table"][idx].reshape(N, N, num_heads)
        rel_bias = jnp.transpose(rb, (2, 0, 1)).astype(jnp.float32)
        blocks.append(dict(
            norm1_w=blk["norm1_w"], norm1_b=blk["norm1_b"],
            wqkv_s=blk["wqkv"] * col_scale, bqkv_s=blk["bqkv"] * col_scale,
            wproj=blk["wproj"], bproj=blk["bproj"], rel_bias=rel_bias,
            norm2_w=blk["norm2_w"], norm2_b=blk["norm2_b"],
            w1=blk["w1"], b1=blk["b1"], w2=blk["w2"], b2=blk["b2"]))
    prep = dict(blocks=blocks, attn_mask=attn_mask,
                lin_w=params["lin_w"], lin_b=params["lin_b"])
    return prep, window_size, shift_size


# ----------------------------------------------------------------------------
# Deterministic synthetic parameters + pure-jnp reference (verification only)
# ----------------------------------------------------------------------------

def init_params(key, dim, num_heads, window_size, mlp_ratio, depth):
    hidden = int(dim * mlp_ratio)
    rpb_size = ((2 * window_size[0] - 1) * (2 * window_size[1] - 1)
                * (2 * window_size[2] - 1))
    rpi = get_position_index_np(window_size)

    def nrm(k, shape, s=0.05):
        return s * jax.random.normal(k, shape, dtype=jnp.float32)

    blocks = []
    for _ in range(depth):
        key, *ks = jax.random.split(key, 14)
        blocks.append(dict(
            norm1_w=1.0 + nrm(ks[0], (dim,)), norm1_b=nrm(ks[1], (dim,)),
            wqkv=nrm(ks[2], (dim, 3 * dim)), bqkv=nrm(ks[3], (1, 3 * dim)),
            wproj=nrm(ks[4], (dim, dim)), bproj=nrm(ks[5], (1, dim)),
            rpb_table=nrm(ks[6], (rpb_size, num_heads)),
            norm2_w=1.0 + nrm(ks[7], (dim,)), norm2_b=nrm(ks[8], (dim,)),
            w1=nrm(ks[9], (dim, hidden)), b1=nrm(ks[10], (1, hidden)),
            w2=nrm(ks[11], (hidden, dim)), b2=nrm(ks[12], (1, dim))))
    key, k1, k2 = jax.random.split(key, 3)
    return dict(blocks=blocks, rpi=rpi,
                lin_w=nrm(k1, (dim, dim)), lin_b=nrm(k2, (1, dim)))


def reference_forward(x, params, window_size_cfg, num_heads):
    """Pure-jnp mirror of the PyTorch RSTB forward (for verification)."""
    B, C, D, H, W = x.shape
    shift_cfg = tuple(w // 2 for w in window_size_cfg)
    window_size, shift_size = get_window_size((D, H, W), window_size_cfg, shift_cfg)
    wd, wh, ww = window_size
    N = wd * wh * ww
    Dp = int(np.ceil(D / wd)) * wd
    Hp = int(np.ceil(H / wh)) * wh
    Wp = int(np.ceil(W / ww)) * ww
    mask_full = jnp.asarray(compute_mask_np(Dp, Hp, Wp, window_size, shift_size))
    hd = C // num_heads
    scale = hd ** (-0.5)
    idx = np.asarray(params["rpi"][:N, :N]).reshape(-1)

    def ln(t, w, b):
        mu = jnp.mean(t, -1, keepdims=True)
        var = jnp.mean(jnp.square(t - mu), -1, keepdims=True)
        return (t - mu) / jnp.sqrt(var + 1e-5) * w + b

    xcl = jnp.transpose(x, (0, 2, 3, 4, 1))
    y = xcl
    for i, blk in enumerate(params["blocks"]):
        bs = (0, 0, 0) if i % 2 == 0 else shift_size
        shifted = any(s > 0 for s in bs)
        shortcut = y
        t = ln(y, blk["norm1_w"], blk["norm1_b"])
        t = jnp.pad(t, ((0, 0), (0, Dp - D), (0, Hp - H), (0, Wp - W), (0, 0)))
        if shifted:
            t = jnp.roll(t, (-bs[0], -bs[1], -bs[2]), axis=(1, 2, 3))
        tw = window_partition(t, window_size)
        B_ = tw.shape[0]
        qkv = tw @ blk["wqkv"] + blk["bqkv"]
        qkv = jnp.transpose(qkv.reshape(B_, N, 3, num_heads, hd), (2, 0, 3, 1, 4))
        q, k, v = qkv[0], qkv[1], qkv[2]
        attn = (q * scale) @ jnp.swapaxes(k, -2, -1)
        rb = jnp.transpose(blk["rpb_table"][idx].reshape(N, N, num_heads), (2, 0, 1))
        attn = attn + rb[None]
        if shifted:
            nW = mask_full.shape[0]
            attn = attn.reshape(B_ // nW, nW, num_heads, N, N) + mask_full[None, :, None]
            attn = attn.reshape(B_, num_heads, N, N)
        attn = jax.nn.softmax(attn, axis=-1)
        o = jnp.transpose(attn @ v, (0, 2, 1, 3)).reshape(B_, N, C)
        o = o @ blk["wproj"] + blk["bproj"]
        t = window_reverse(o, window_size, B, Dp, Hp, Wp)
        if shifted:
            t = jnp.roll(t, (bs[0], bs[1], bs[2]), axis=(1, 2, 3))
        y = shortcut + t[:, :D, :H, :W, :]
        t2 = ln(y, blk["norm2_w"], blk["norm2_b"])
        h1 = t2 @ blk["w1"] + blk["b1"]
        h1 = 0.5 * h1 * (1.0 + lax.erf(h1 * jnp.float32(0.7071067811865476)))
        y = y + (h1 @ blk["w2"] + blk["b2"])
    out = xcl + (y @ params["lin_w"] + params["lin_b"])
    return jnp.transpose(out, (0, 4, 1, 2, 3))


# ----------------------------------------------------------------------------

if __name__ == "__main__":
    # small config: dim=16, heads=2, window (2,4,4), depth=2 (plain + shifted block)
    B, C, D, H, W = 2, 16, 2, 8, 8
    num_heads = 2
    window_size_cfg = (2, 4, 4)
    depth = 2
    mlp_ratio = 2.0

    key = jax.random.PRNGKey(0)
    kx, kp = jax.random.split(key)
    x = jax.random.normal(kx, (B, C, D, H, W), dtype=jnp.float32)
    params = init_params(kp, C, num_heads, window_size_cfg, mlp_ratio, depth)

    prep, wsz, ssz = prepare_params(params, x.shape, window_size_cfg, num_heads)
    fwd = jax.jit(functools.partial(rstb_forward, window_size=wsz, shift_size=ssz,
                                    num_heads=num_heads))
    out = jax.block_until_ready(fwd(x, prep))
    assert out.shape == (B, C, D, H, W)
    assert bool(jnp.all(jnp.isfinite(out)))

    ref = reference_forward(x, params, window_size_cfg, num_heads)
    np.testing.assert_allclose(np.asarray(out), np.asarray(ref), rtol=2e-2, atol=2e-2)
    print("KERNEL_OK")
</pallas_src>

<mosaic_0001>
module attributes {stable_mosaic.version = 11 : i64} {
  func.func @_ln_mlp_res_kernel(%arg0: i32, %arg1: memref<128x16xf32, #tpu.memory_space<vmem>>, %arg2: memref<1x16xf32, #tpu.memory_space<vmem>>, %arg3: memref<1x16xf32, #tpu.memory_space<vmem>>, %arg4: memref<16x32xf32, #tpu.memory_space<vmem>>, %arg5: memref<1x32xf32, #tpu.memory_space<vmem>>, %arg6: memref<32x16xf32, #tpu.memory_space<vmem>>, %arg7: memref<1x16xf32, #tpu.memory_space<vmem>>, %arg8: memref<128x16xf32, #tpu.memory_space<vmem>>) attributes {dimension_semantics = [#tpu.dimension_semantics<parallel>], iteration_bounds = array<i64: 2>, scalar_prefetch = 0 : i64, scratch_operands = 0 : i64, tpu.core_type = #tpu.core_type<tc>, window_params = [{transform_indices = @transform_0, window_bounds = array<i64: 128, 16>}, {pipeline_mode = #tpu.pipeline_mode<synchronous>, transform_indices = @transform_1, window_bounds = array<i64: 1, 16>}, {pipeline_mode = #tpu.pipeline_mode<synchronous>, transform_indices = @transform_2, window_bounds = array<i64: 1, 16>}, {pipeline_mode = #tpu.pipeline_mode<synchronous>, transform_indices = @transform_3, window_bounds = array<i64: 16, 32>}, {pipeline_mode = #tpu.pipeline_mode<synchronous>, transform_indices = @transform_4, window_bounds = array<i64: 1, 32>}, {pipeline_mode = #tpu.pipeline_mode<synchronous>, transform_indices = @transform_5, window_bounds = array<i64: 32, 16>}, {pipeline_mode = #tpu.pipeline_mode<synchronous>, transform_indices = @transform_6, window_bounds = array<i64: 1, 16>}, {transform_indices = @transform_7, window_bounds = array<i64: 128, 16>}]} {
    %c0 = arith.constant 0 : index
    %c0_0 = arith.constant 0 : index
    %0 = vector.load %arg1[%c0, %c0_0] : memref<128x16xf32, #tpu.memory_space<vmem>>, vector<128x16xf32>
    %cst = arith.constant dense<0.000000e+00> : vector<128xf32>
    %1 = vector.multi_reduction <add>, %0, %cst [1] : vector<128x16xf32> to vector<128xf32>
    %2 = vector.shape_cast %1 : vector<128xf32> to vector<128x1xf32>
    %cst_1 = arith.constant 1.600000e+01 : f32
    %3 = vector.broadcast %cst_1 : f32 to vector<128x1xf32>
    %4 = arith.divf %2, %3 : vector<128x1xf32>
    %5 = vector.broadcast %4 : vector<128x1xf32> to vector<128x16xf32>
    %6 = arith.subf %0, %5 : vector<128x16xf32>
    %7 = arith.mulf %6, %6 : vector<128x16xf32>
    %cst_2 = arith.constant dense<0.000000e+00> : vector<128xf32>
    %8 = vector.multi_reduction <add>, %7, %cst_2 [1] : vector<128x16xf32> to vector<128xf32>
    %9 = vector.shape_cast %8 : vector<128xf32> to vector<128x1xf32>
    %cst_3 = arith.constant 1.600000e+01 : f32
    %10 = vector.broadcast %cst_3 : f32 to vector<128x1xf32>
    %11 = arith.divf %9, %10 : vector<128x1xf32>
    %12 = vector.broadcast %4 : vector<128x1xf32> to vector<128x16xf32>
    %13 = arith.subf %0, %12 : vector<128x16xf32>
    %cst_4 = arith.constant 9.99999974E-6 : f32
    %14 = vector.broadcast %cst_4 : f32 to vector<128x1xf32>
    %15 = arith.addf %11, %14 : vector<128x1xf32>
    %16 = math.rsqrt %15 : vector<128x1xf32>
    %17 = vector.broadcast %16 : vector<128x1xf32> to vector<128x16xf32>
    %18 = arith.mulf %13, %17 : vector<128x16xf32>
    %c0_5 = arith.constant 0 : index
    %c0_6 = arith.constant 0 : index
    %19 = vector.load %arg2[%c0_5, %c0_6] : memref<1x16xf32, #tpu.memory_space<vmem>>, vector<1x16xf32>
    %20 = vector.broadcast %19 : vector<1x16xf32> to vector<128x16xf32>
    %21 = arith.mulf %18, %20 : vector<128x16xf32>
    %c0_7 = arith.constant 0 : index
    %c0_8 = arith.constant 0 : index
    %22 = vector.load %arg3[%c0_7, %c0_8] : memref<1x16xf32, #tpu.memory_space<vmem>>, vector<1x16xf32>
    %23 = vector.broadcast %22 : vector<1x16xf32> to vector<128x16xf32>
    %24 = arith.addf %21, %23 : vector<128x16xf32>
    %c0_9 = arith.constant 0 : index
    %c0_10 = arith.constant 0 : index
    %25 = vector.load %arg4[%c0_9, %c0_10] : memref<16x32xf32, #tpu.memory_space<vmem>>, vector<16x32xf32>
    %cst_11 = arith.constant dense<0.000000e+00> : vector<128x32xf32>
    %26 = tpu.matmul %24, %25, %cst_11 {dimension_numbers = #tpu.dot_dimension_numbers<[1], [0], [0], [1], [0, 0, 1, 1], [], []>} : vector<128x16xf32>, vector<16x32xf32>, vector<128x32xf32> -> vector<128x32xf32>
    %c0_12 = arith.constant 0 : index
    %c0_13 = arith.constant 0 : index
    %27 = vector.load %arg5[%c0_12, %c0_13] : memref<1x32xf32, #tpu.memory_space<vmem>>, vector<1x32xf32>
    %28 = vector.broadcast %27 : vector<1x32xf32> to vector<128x32xf32>
    %29 = arith.addf %26, %28 : vector<128x32xf32>
    %cst_14 = arith.constant 5.000000e-01 : f32
    %30 = vector.broadcast %cst_14 : f32 to vector<128x32xf32>
    %31 = arith.mulf %30, %29 : vector<128x32xf32>
    %cst_15 = arith.constant 0.707106769 : f32
    %32 = vector.broadcast %cst_15 : f32 to vector<128x32xf32>
    %33 = arith.mulf %29, %32 : vector<128x32xf32>
    %34 = math.erf %33 : vector<128x32xf32>
    %cst_16 = arith.constant 1.000000e+00 : f32
    %35 = vector.broadcast %cst_16 : f32 to vector<128x32xf32>
    %36 = arith.addf %35, %34 : vector<128x32xf32>
    %37 = arith.mulf %31, %36 : vector<128x32xf32>
    %c0_17 = arith.constant 0 : index
    %c0_18 = arith.constant 0 : index
    %38 = vector.load %arg6[%c0_17, %c0_18] : memref<32x16xf32, #tpu.memory_space<vmem>>, vector<32x16xf32>
    %cst_19 = arith.constant dense<0.000000e+00> : vector<128x16xf32>
    %39 = tpu.matmul %37, %38, %cst_19 {dimension_numbers = #tpu.dot_dimension_numbers<[1], [0], [0], [1], [0, 0, 1, 1], [], []>} : vector<128x32xf32>, vector<32x16xf32>, vector<128x16xf32> -> vector<128x16xf32>
    %c0_20 = arith.constant 0 : index
    %c0_21 = arith.constant 0 : index
    %40 = vector.load %arg7[%c0_20, %c0_21] : memref<1x16xf32, #tpu.memory_space<vmem>>, vector<1x16xf32>
    %41 = vector.broadcast %40 : vector<1x16xf32> to vector<128x16xf32>
    %42 = arith.addf %39, %41 : vector<128x16xf32>
    %43 = arith.addf %0, %42 : vector<128x16xf32>
    %c0_22 = arith.constant 0 : index
    %c0_23 = arith.constant 0 : index
    %44 = vector.load %arg8[%c0_22, %c0_23] : memref<128x16xf32, #tpu.memory_space<vmem>>, vector<128x16xf32>
    tpu.vector_store %arg8[%c0_22, %c0_23], %43 {strides = array<i32>} : memref<128x16xf32, #tpu.memory_space<vmem>>, vector<128x16xf32>,
    return
  }
  func.func @transform_0(%arg0: i32) -> (i32, i32) {
    %c0_i32 = arith.constant 0 : i32
    %c0_i32_0 = arith.constant 0 : i32
    return %arg0, %c0_i32 : i32, i32
  }
  func.func @transform_1(%arg0: i32) -> (i32, i32) {
    %c0_i32 = arith.constant 0 : i32
    %c0_i32_0 = arith.constant 0 : i32
    %c0_i32_1 = arith.constant 0 : i32
    return %c0_i32, %c0_i32_0 : i32, i32
  }
  func.func @transform_2(%arg0: i32) -> (i32, i32) {
    %c0_i32 = arith.constant 0 : i32
    %c0_i32_0 = arith.constant 0 : i32
    %c0_i32_1 = arith.constant 0 : i32
    return %c0_i32, %c0_i32_0 : i32, i32
  }
  func.func @transform_3(%arg0: i32) -> (i32, i32) {
    %c0_i32 = arith.constant 0 : i32
    %c0_i32_0 = arith.constant 0 : i32
    %c0_i32_1 = arith.constant 0 : i32
    return %c0_i32, %c0_i32_0 : i32, i32
  }
  func.func @transform_4(%arg0: i32) -> (i32, i32) {
    %c0_i32 = arith.constant 0 : i32
    %c0_i32_0 = arith.constant 0 : i32
    %c0_i32_1 = arith.constant 0 : i32
    return %c0_i32, %c0_i32_0 : i32, i32
  }
  func.func @transform_5(%arg0: i32) -> (i32, i32) {
    %c0_i32 = arith.constant 0 : i32
    %c0_i32_0 = arith.constant 0 : i32
    %c0_i32_1 = arith.constant 0 : i32
    return %c0_i32, %c0_i32_0 : i32, i32
  }
  func.func @transform_6(%arg0: i32) -> (i32, i32) {
    %c0_i32 = arith.constant 0 : i32
    %c0_i32_0 = arith.constant 0 : i32
    %c0_i32_1 = arith.constant 0 : i32
    return %c0_i32, %c0_i32_0 : i32, i32
  }
  func.func @transform_7(%arg0: i32) -> (i32, i32) {
    %c0_i32 = arith.constant 0 : i32
    %c0_i32_0 = arith.constant 0 : i32
    return %arg0, %c0_i32 : i32, i32
  }
}

module attributes {stable_mosaic.version = 11 : i64} {
  func.func @kernel(%arg0: i32, %arg1: i32, %arg2: i32, %arg3: i32, %arg4: memref<1x2x4x8x16xf32, #tpu.memory_space<vmem>>, %arg5: memref<1x16xf32, #tpu.memory_space<vmem>>, %arg6: memref<1x16xf32, #tpu.memory_space<vmem>>, %arg7: memref<16x48xf32, #tpu.memory_space<vmem>>, %arg8: memref<1x48xf32, #tpu.memory_space<vmem>>, %arg9: memref<16x16xf32, #tpu.memory_space<vmem>>, %arg10: memref<1x16xf32, #tpu.memory_space<vmem>>, %arg11: memref<2x32x32xf32, #tpu.memory_space<vmem>>, %arg12: memref<1x2x4x8x16xf32, #tpu.memory_space<vmem>>) attributes {dimension_semantics = [#tpu.dimension_semantics<parallel>, #tpu.dimension_semantics<parallel>, #tpu.dimension_semantics<parallel>, #tpu.dimension_semantics<parallel>], iteration_bounds = array<i64: 2, 1, 2, 1>, scalar_prefetch = 0 : i64, scratch_operands = 0 : i64, tpu.core_type = #tpu.core_type<tc>, window_params = [{transform_indices = @transform_0, window_bounds = array<i64: 1, 2, 4, 8, 16>}, {pipeline_mode = #tpu.pipeline_mode<synchronous>, transform_indices = @transform_1, window_bounds = array<i64: 1, 16>}, {pipeline_mode = #tpu.pipeline_mode<synchronous>, transform_indices = @transform_2, window_bounds = array<i64: 1, 16>}, {pipeline_mode = #tpu.pipeline_mode<synchronous>, transform_indices = @transform_3, window_bounds = array<i64: 16, 48>}, {pipeline_mode = #tpu.pipeline_mode<synchronous>, transform_indices = @transform_4, window_bounds = array<i64: 1, 48>}, {pipeline_mode = #tpu.pipeline_mode<synchronous>, transform_indices = @transform_5, window_bounds = array<i64: 16, 16>}, {pipeline_mode = #tpu.pipeline_mode<synchronous>, transform_indices = @transform_6, window_bounds = array<i64: 1, 16>}, {pipeline_mode = #tpu.pipeline_mode<synchronous>, transform_indices = @transform_7, window_bounds = array<i64: 2, 32, 32>}, {transform_indices = @transform_8, window_bounds = array<i64: 1, 2, 4, 8, 16>}]} {
    %c0 = arith.constant 0 : index
    %c0_0 = arith.constant 0 : index
    %c0_1 = arith.constant 0 : index
    %c0_2 = arith.constant 0 : index
    %c0_3 = arith.constant 0 : index
    %0 = vector.load %arg4[%c0, %c0_0, %c0_1, %c0_2, %c0_3] : memref<1x2x4x8x16xf32, #tpu.memory_space<vmem>>, vector<1x2x4x8x16xf32>
    %1 = vector.shape_cast %0 : vector<1x2x4x8x16xf32> to vector<2x4x8x16xf32>
    %2 = vector.shape_cast %1 : vector<2x4x8x16xf32> to vector<64x16xf32>
    %cst = arith.constant dense<0.000000e+00> : vector<64xf32>
    %3 = vector.multi_reduction <add>, %2, %cst [1] : vector<64x16xf32> to vector<64xf32>
    %4 = vector.shape_cast %3 : vector<64xf32> to vector<64x1xf32>
    %cst_4 = arith.constant 1.600000e+01 : f32
    %5 = vector.broadcast %cst_4 : f32 to vector<64x1xf32>
    %6 = arith.divf %4, %5 : vector<64x1xf32>
    %7 = vector.broadcast %6 : vector<64x1xf32> to vector<64x16xf32>
    %8 = arith.subf %2, %7 : vector<64x16xf32>
    %9 = arith.mulf %8, %8 : vector<64x16xf32>
    %cst_5 = arith.constant dense<0.000000e+00> : vector<64xf32>
    %10 = vector.multi_reduction <add>, %9, %cst_5 [1] : vector<64x16xf32> to vector<64xf32>
    %11 = vector.shape_cast %10 : vector<64xf32> to vector<64x1xf32>
    %cst_6 = arith.constant 1.600000e+01 : f32
    %12 = vector.broadcast %cst_6 : f32 to vector<64x1xf32>
    %13 = arith.divf %11, %12 : vector<64x1xf32>
    %14 = vector.broadcast %6 : vector<64x1xf32> to vector<64x16xf32>
    %15 = arith.subf %2, %14 : vector<64x16xf32>
    %cst_7 = arith.constant 9.99999974E-6 : f32
    %16 = vector.broadcast %cst_7 : f32 to vector<64x1xf32>
    %17 = arith.addf %13, %16 : vector<64x1xf32>
    %18 = math.rsqrt %17 : vector<64x1xf32>
    %19 = vector.broadcast %18 : vector<64x1xf32> to vector<64x16xf32>
    %20 = arith.mulf %15, %19 : vector<64x16xf32>
    %c0_8 = arith.constant 0 : index
    %c0_9 = arith.constant 0 : index
    %21 = vector.load %arg5[%c0_8, %c0_9] : memref<1x16xf32, #tpu.memory_space<vmem>>, vector<1x16xf32>
    %22 = vector.broadcast %21 : vector<1x16xf32> to vector<64x16xf32>
    %23 = arith.mulf %20, %22 : vector<64x16xf32>
    %c0_10 = arith.constant 0 : index
    %c0_11 = arith.constant 0 : index
    %24 = vector.load %arg6[%c0_10, %c0_11] : memref<1x16xf32, #tpu.memory_space<vmem>>, vector<1x16xf32>
    %25 = vector.broadcast %24 : vector<1x16xf32> to vector<64x16xf32>
    %26 = arith.addf %23, %25 : vector<64x16xf32>
    %27 = vector.shape_cast %26 : vector<64x16xf32> to vector<8x2x4x16xf32>
    %28 = tpu.transpose %27, [1, 0, 2, 3] : vector<8x2x4x16xf32> -> vector<2x8x4x16xf32>
    %29 = vector.shape_cast %28 : vector<2x8x4x16xf32> to vector<64x16xf32>
    %c0_12 = arith.constant 0 : index
    %c0_13 = arith.constant 0 : index
    %30 = vector.load %arg7[%c0_12, %c0_13] : memref<16x48xf32, #tpu.memory_space<vmem>>, vector<16x48xf32>
    %cst_14 = arith.constant dense<0.000000e+00> : vector<64x48xf32>
    %31 = tpu.matmul %29, %30, %cst_14 {dimension_numbers = #tpu.dot_dimension_numbers<[1], [0], [0], [1], [0, 0, 1, 1], [], []>} : vector<64x16xf32>, vector<16x48xf32>, vector<64x48xf32> -> vector<64x48xf32>
    %c0_15 = arith.constant 0 : index
    %c0_16 = arith.constant 0 : index
    %32 = vector.load %arg8[%c0_15, %c0_16] : memref<1x48xf32, #tpu.memory_space<vmem>>, vector<1x48xf32>
    %33 = vector.broadcast %32 : vector<1x48xf32> to vector<64x48xf32>
    %34 = arith.addf %31, %33 : vector<64x48xf32>
    %c0_17 = arith.constant 0 : index
    %c0_18 = arith.constant 0 : index
    %c0_19 = arith.constant 0 : index
    %35 = vector.load %arg11[%c0_17, %c0_18, %c0_19] : memref<2x32x32xf32, #tpu.memory_space<vmem>>, vector<2x32x32xf32>
    %c0_20 = arith.constant 0 : index
    %c0_21 = arith.constant 0 : index
    %36 = vector.load %arg9[%c0_20, %c0_21] : memref<16x16xf32, #tpu.memory_space<vmem>>, vector<16x16xf32>
    %cst_22 = arith.constant 0.000000e+00 : f32
    %37 = vector.broadcast %cst_22 : f32 to vector<64x16xf32>
    %38 = vector.extract_strided_slice %34 {offsets = [0, 0], sizes = [64, 8], strides = [1, 1]} : vector<64x48xf32> to vector<64x8xf32>
    %39 = vector.shape_cast %38 : vector<64x8xf32> to vector<2x32x8xf32>
    %40 = vector.extract_strided_slice %34 {offsets = [0, 16], sizes = [64, 8], strides = [1, 1]} : vector<64x48xf32> to vector<64x8xf32>
    %41 = vector.shape_cast %40 : vector<64x8xf32> to vector<2x32x8xf32>
    %42 = vector.extract_strided_slice %34 {offsets = [0, 32], sizes = [64, 8], strides = [1, 1]} : vector<64x48xf32> to vector<64x8xf32>
    %43 = vector.shape_cast %42 : vector<64x8xf32> to vector<2x32x8xf32>
    %cst_23 = arith.constant dense<0.000000e+00> : vector<2x32x32xf32>
    %44 = tpu.matmul %39, %41, %cst_23 {dimension_numbers = #tpu.dot_dimension_numbers<[2], [2], [1], [1], [0, 0, 0, 1, 1, 1], [0], [0]>} : vector<2x32x8xf32>, vector<2x32x8xf32>, vector<2x32x32xf32> -> vector<2x32x32xf32>
    %45 = vector.extract_strided_slice %35 {offsets = [0, 0, 0], sizes = [1, 32, 32], strides = [1, 1, 1]} : vector<2x32x32xf32> to vector<1x32x32xf32>
    %46 = vector.shape_cast %45 : vector<1x32x32xf32> to vector<32x32xf32>
    %47 = vector.shape_cast %46 : vector<32x32xf32> to vector<1x32x32xf32>
    %48 = vector.broadcast %47 : vector<1x32x32xf32> to vector<2x32x32xf32>
    %49 = arith.addf %44, %48 : vector<2x32x32xf32>
    %cst_24 = arith.constant dense<0xFF800000> : vector<2x32xf32>
    %50 = vector.multi_reduction <maximumf>, %49, %cst_24 [2] : vector<2x32x32xf32> to vector<2x32xf32>
    %51 = vector.shape_cast %50 : vector<2x32xf32> to vector<2x32x1xf32>
    %52 = vector.broadcast %51 : vector<2x32x1xf32> to vector<2x32x32xf32>
    %53 = arith.subf %49, %52 : vector<2x32x32xf32>
    %54 = math.exp %53 : vector<2x32x32xf32>
    %cst_25 = arith.constant dense<0.000000e+00> : vector<2x32xf32>
    %55 = vector.multi_reduction <add>, %54, %cst_25 [2] : vector<2x32x32xf32> to vector<2x32xf32>
    %56 = vector.shape_cast %55 : vector<2x32xf32> to vector<2x32x1xf32>
    %57 = vector.broadcast %56 : vector<2x32x1xf32> to vector<2x32x32xf32>
    %58 = arith.divf %54, %57 : vector<2x32x32xf32>
    %cst_26 = arith.constant dense<0.000000e+00> : vector<2x32x8xf32>
    %59 = tpu.matmul %58, %43, %cst_26 {dimension_numbers = #tpu.dot_dimension_numbers<[2], [1], [1], [2], [0, 0, 0, 1, 1, 2], [0], [0]>} : vector<2x32x32xf32>, vector<2x32x8xf32>, vector<2x32x8xf32> -> vector<2x32x8xf32>
    %60 = vector.shape_cast %59 : vector<2x32x8xf32> to vector<64x8xf32>
    %61 = vector.extract_strided_slice %36 {offsets = [0, 0], sizes = [8, 16], strides = [1, 1]} : vector<16x16xf32> to vector<8x16xf32>
    %cst_27 = arith.constant dense<0.000000e+00> : vector<64x16xf32>
    %62 = tpu.matmul %60, %61, %cst_27 {dimension_numbers = #tpu.dot_dimension_numbers<[1], [0], [0], [1], [0, 0, 1, 1], [], []>} : vector<64x8xf32>, vector<8x16xf32>, vector<64x16xf32> -> vector<64x16xf32>
    %63 = arith.addf %37, %62 : vector<64x16xf32>
    %64 = vector.extract_strided_slice %34 {offsets = [0, 8], sizes = [64, 8], strides = [1, 1]} : vector<64x48xf32> to vector<64x8xf32>
    %65 = vector.shape_cast %64 : vector<64x8xf32> to vector<2x32x8xf32>
    %66 = vector.extract_strided_slice %34 {offsets = [0, 24], sizes = [64, 8], strides = [1, 1]} : vector<64x48xf32> to vector<64x8xf32>
    %67 = vector.shape_cast %66 : vector<64x8xf32> to vector<2x32x8xf32>
    %68 = vector.extract_strided_slice %34 {offsets = [0, 40], sizes = [64, 8], strides = [1, 1]} : vector<64x48xf32> to vector<64x8xf32>
    %69 = vector.shape_cast %68 : vector<64x8xf32> to vector<2x32x8xf32>
    %cst_28 = arith.constant dense<0.000000e+00> : vector<2x32x32xf32>
    %70 = tpu.matmul %65, %67, %cst_28 {dimension_numbers = #tpu.dot_dimension_numbers<[2], [2], [1], [1], [0, 0, 0, 1, 1, 1], [0], [0]>} : vector<2x32x8xf32>, vector<2x32x8xf32>, vector<2x32x32xf32> -> vector<2x32x32xf32>
    %71 = vector.extract_strided_slice %35 {offsets = [1, 0, 0], sizes = [1, 32, 32], strides = [1, 1, 1]} : vector<2x32x32xf32> to vector<1x32x32xf32>
    %72 = vector.shape_cast %71 : vector<1x32x32xf32> to vector<32x32xf32>
    %73 = vector.shape_cast %72 : vector<32x32xf32> to vector<1x32x32xf32>
    %74 = vector.broadcast %73 : vector<1x32x32xf32> to vector<2x32x32xf32>
    %75 = arith.addf %70, %74 : vector<2x32x32xf32>
    %cst_29 = arith.constant dense<0xFF800000> : vector<2x32xf32>
    %76 = vector.multi_reduction <maximumf>, %75, %cst_29 [2] : vector<2x32x32xf32> to vector<2x32xf32>
    %77 = vector.shape_cast %76 : vector<2x32xf32> to vector<2x32x1xf32>
    %78 = vector.broadcast %77 : vector<2x32x1xf32> to vector<2x32x32xf32>
    %79 = arith.subf %75, %78 : vector<2x32x32xf32>
    %80 = math.exp %79 : vector<2x32x32xf32>
    %cst_30 = arith.constant dense<0.000000e+00> : vector<2x32xf32>
    %81 = vector.multi_reduction <add>, %80, %cst_30 [2] : vector<2x32x32xf32> to vector<2x32xf32>
    %82 = vector.shape_cast %81 : vector<2x32xf32> to vector<2x32x1xf32>
    %83 = vector.broadcast %82 : vector<2x32x1xf32> to vector<2x32x32xf32>
    %84 = arith.divf %80, %83 : vector<2x32x32xf32>
    %cst_31 = arith.constant dense<0.000000e+00> : vector<2x32x8xf32>
    %85 = tpu.matmul %84, %69, %cst_31 {dimension_numbers = #tpu.dot_dimension_numbers<[2], [1], [1], [2], [0, 0, 0, 1, 1, 2], [0], [0]>} : vector<2x32x32xf32>, vector<2x32x8xf32>, vector<2x32x8xf32> -> vector<2x32x8xf32>
    %86 = vector.shape_cast %85 : vector<2x32x8xf32> to vector<64x8xf32>
    %87 = vector.extract_strided_slice %36 {offsets = [8, 0], sizes = [8, 16], strides = [1, 1]} : vector<16x16xf32> to vector<8x16xf32>
    %cst_32 = arith.constant dense<0.000000e+00> : vector<64x16xf32>
    %88 = tpu.matmul %86, %87, %cst_32 {dimension_numbers = #tpu.dot_dimension_numbers<[1], [0], [0], [1], [0, 0, 1, 1], [], []>} : vector<64x8xf32>, vector<8x16xf32>, vector<64x16xf32> -> vector<64x16xf32>
    %89 = arith.addf %63, %88 : vector<64x16xf32>
    %c0_33 = arith.constant 0 : index
    %c0_34 = arith.constant 0 : index
    %90 = vector.load %arg10[%c0_33, %c0_34] : memref<1x16xf32, #tpu.memory_space<vmem>>, vector<1x16xf32>
    %91 = vector.broadcast %90 : vector<1x16xf32> to vector<64x16xf32>
    %92 = arith.addf %89, %91 : vector<64x16xf32>
    %93 = vector.shape_cast %92 : vector<64x16xf32> to vector<2x8x4x16xf32>
    %94 = tpu.transpose %93, [1, 0, 2, 3] : vector<2x8x4x16xf32> -> vector<8x2x4x16xf32>
    %95 = vector.shape_cast %94 : vector<8x2x4x16xf32> to vector<64x16xf32>
    %96 = arith.addf %2, %95 : vector<64x16xf32>
    %97 = vector.shape_cast %96 : vector<64x16xf32> to vector<2x4x8x16xf32>
    %c0_35 = arith.constant 0 : index
    %c0_36 = arith.constant 0 : index
    %c0_37 = arith.constant 0 : index
    %c0_38 = arith.constant 0 : index
    %c0_39 = arith.constant 0 : index
    %98 = vector.load %arg12[%c0_35, %c0_36, %c0_37, %c0_38, %c0_39] : memref<1x2x4x8x16xf32, #tpu.memory_space<vmem>>, vector<1x2x4x8x16xf32>
    %99 = vector.shape_cast %98 : vector<1x2x4x8x16xf32> to vector<2x4x8x16xf32>
    %100 = vector.shape_cast %97 : vector<2x4x8x16xf32> to vector<1x2x4x8x16xf32>
    tpu.vector_store %arg12[%c0_35, %c0_36, %c0_37, %c0_38, %c0_39], %100 {strides = array<i32>} : memref<1x2x4x8x16xf32, #tpu.memory_space<vmem>>, vector<1x2x4x8x16xf32>,
    return
  }
  func.func @transform_0(%arg0: i32, %arg1: i32, %arg2: i32, %arg3: i32) -> (i32, i32, i32, i32, i32) {
    %c0_i32 = arith.constant 0 : i32
    %c0_i32_0 = arith.constant 0 : i32
    return %arg0, %arg1, %arg2, %arg3, %c0_i32 : i32, i32, i32, i32, i32
  }
  func.func @transform_1(%arg0: i32, %arg1: i32, %arg2: i32, %arg3: i32) -> (i32, i32) {
    %c0_i32 = arith.constant 0 : i32
    %c0_i32_0 = arith.constant 0 : i32
    %c0_i32_1 = arith.constant 0 : i32
    return %c0_i32, %c0_i32_0 : i32, i32
  }
  func.func @transform_2(%arg0: i32, %arg1: i32, %arg2: i32, %arg3: i32) -> (i32, i32) {
    %c0_i32 = arith.constant 0 : i32
    %c0_i32_0 = arith.constant 0 : i32
    %c0_i32_1 = arith.constant 0 : i32
    return %c0_i32, %c0_i32_0 : i32, i32
  }
  func.func @transform_3(%arg0: i32, %arg1: i32, %arg2: i32, %arg3: i32) -> (i32, i32) {
    %c0_i32 = arith.constant 0 : i32
    %c0_i32_0 = arith.constant 0 : i32
    %c0_i32_1 = arith.constant 0 : i32
    return %c0_i32, %c0_i32_0 : i32, i32
  }
  func.func @transform_4(%arg0: i32, %arg1: i32, %arg2: i32, %arg3: i32) -> (i32, i32) {
    %c0_i32 = arith.constant 0 : i32
    %c0_i32_0 = arith.constant 0 : i32
    %c0_i32_1 = arith.constant 0 : i32
    return %c0_i32, %c0_i32_0 : i32, i32
  }
  func.func @transform_5(%arg0: i32, %arg1: i32, %arg2: i32, %arg3: i32) -> (i32, i32) {
    %c0_i32 = arith.constant 0 : i32
    %c0_i32_0 = arith.constant 0 : i32
    %c0_i32_1 = arith.constant 0 : i32
    return %c0_i32, %c0_i32_0 : i32, i32
  }
  func.func @transform_6(%arg0: i32, %arg1: i32, %arg2: i32, %arg3: i32) -> (i32, i32) {
    %c0_i32 = arith.constant 0 : i32
    %c0_i32_0 = arith.constant 0 : i32
    %c0_i32_1 = arith.constant 0 : i32
    return %c0_i32, %c0_i32_0 : i32, i32
  }
  func.func @transform_7(%arg0: i32, %arg1: i32, %arg2: i32, %arg3: i32) -> (i32, i32, i32) {
    %c0_i32 = arith.constant 0 : i32
    %c0_i32_0 = arith.constant 0 : i32
    %c0_i32_1 = arith.constant 0 : i32
    %c0_i32_2 = arith.constant 0 : i32
    return %c0_i32, %c0_i32_0, %c0_i32_1 : i32, i32, i32
  }
  func.func @transform_8(%arg0: i32, %arg1: i32, %arg2: i32, %arg3: i32) -> (i32, i32, i32, i32, i32) {
    %c0_i32 = arith.constant 0 : i32
    %c0_i32_0 = arith.constant 0 : i32
    return %arg0, %arg1, %arg2, %arg3, %c0_i32 : i32, i32, i32, i32, i32
  }
}

module attributes {stable_mosaic.version = 11 : i64} {
  func.func @kernel(%arg0: i32, %arg1: i32, %arg2: i32, %arg3: i32, %arg4: memref<1x2x4x8x16xf32, #tpu.memory_space<vmem>>, %arg5: memref<1x16xf32, #tpu.memory_space<vmem>>, %arg6: memref<1x16xf32, #tpu.memory_space<vmem>>, %arg7: memref<2x32x32xf32, #tpu.memory_space<vmem>>, %arg8: memref<16x48xf32, #tpu.memory_space<vmem>>, %arg9: memref<1x48xf32, #tpu.memory_space<vmem>>, %arg10: memref<16x16xf32, #tpu.memory_space<vmem>>, %arg11: memref<1x16xf32, #tpu.memory_space<vmem>>, %arg12: memref<2x32x32xf32, #tpu.memory_space<vmem>>, %arg13: memref<1x2x4x8x16xf32, #tpu.memory_space<vmem>>) attributes {dimension_semantics = [#tpu.dimension_semantics<parallel>, #tpu.dimension_semantics<parallel>, #tpu.dimension_semantics<parallel>, #tpu.dimension_semantics<parallel>], iteration_bounds = array<i64: 2, 1, 2, 1>, scalar_prefetch = 0 : i64, scratch_operands = 0 : i64, tpu.core_type = #tpu.core_type<tc>, window_params = [{transform_indices = @transform_0, window_bounds = array<i64: 1, 2, 4, 8, 16>}, {pipeline_mode = #tpu.pipeline_mode<synchronous>, transform_indices = @transform_1, window_bounds = array<i64: 1, 16>}, {pipeline_mode = #tpu.pipeline_mode<synchronous>, transform_indices = @transform_2, window_bounds = array<i64: 1, 16>}, {transform_indices = @transform_3, window_bounds = array<i64: 2, 32, 32>}, {pipeline_mode = #tpu.pipeline_mode<synchronous>, transform_indices = @transform_4, window_bounds = array<i64: 16, 48>}, {pipeline_mode = #tpu.pipeline_mode<synchronous>, transform_indices = @transform_5, window_bounds = array<i64: 1, 48>}, {pipeline_mode = #tpu.pipeline_mode<synchronous>, transform_indices = @transform_6, window_bounds = array<i64: 16, 16>}, {pipeline_mode = #tpu.pipeline_mode<synchronous>, transform_indices = @transform_7, window_bounds = array<i64: 1, 16>}, {pipeline_mode = #tpu.pipeline_mode<synchronous>, transform_indices = @transform_8, window_bounds = array<i64: 2, 32, 32>}, {transform_indices = @transform_9, window_bounds = array<i64: 1, 2, 4, 8, 16>}]} {
    %c0 = arith.constant 0 : index
    %c0_0 = arith.constant 0 : index
    %c0_1 = arith.constant 0 : index
    %c0_2 = arith.constant 0 : index
    %c0_3 = arith.constant 0 : index
    %0 = vector.load %arg4[%c0, %c0_0, %c0_1, %c0_2, %c0_3] : memref<1x2x4x8x16xf32, #tpu.memory_space<vmem>>, vector<1x2x4x8x16xf32>
    %1 = vector.shape_cast %0 : vector<1x2x4x8x16xf32> to vector<2x4x8x16xf32>
    %2 = vector.shape_cast %1 : vector<2x4x8x16xf32> to vector<64x16xf32>
    %cst = arith.constant dense<0.000000e+00> : vector<64xf32>
    %3 = vector.multi_reduction <add>, %2, %cst [1] : vector<64x16xf32> to vector<64xf32>
    %4 = vector.shape_cast %3 : vector<64xf32> to vector<64x1xf32>
    %cst_4 = arith.constant 1.600000e+01 : f32
    %5 = vector.broadcast %cst_4 : f32 to vector<64x1xf32>
    %6 = arith.divf %4, %5 : vector<64x1xf32>
    %7 = vector.broadcast %6 : vector<64x1xf32> to vector<64x16xf32>
    %8 = arith.subf %2, %7 : vector<64x16xf32>
    %9 = arith.mulf %8, %8 : vector<64x16xf32>
    %cst_5 = arith.constant dense<0.000000e+00> : vector<64xf32>
    %10 = vector.multi_reduction <add>, %9, %cst_5 [1] : vector<64x16xf32> to vector<64xf32>
    %11 = vector.shape_cast %10 : vector<64xf32> to vector<64x1xf32>
    %cst_6 = arith.constant 1.600000e+01 : f32
    %12 = vector.broadcast %cst_6 : f32 to vector<64x1xf32>
    %13 = arith.divf %11, %12 : vector<64x1xf32>
    %14 = vector.broadcast %6 : vector<64x1xf32> to vector<64x16xf32>
    %15 = arith.subf %2, %14 : vector<64x16xf32>
    %cst_7 = arith.constant 9.99999974E-6 : f32
    %16 = vector.broadcast %cst_7 : f32 to vector<64x1xf32>
    %17 = arith.addf %13, %16 : vector<64x1xf32>
    %18 = math.rsqrt %17 : vector<64x1xf32>
    %19 = vector.broadcast %18 : vector<64x1xf32> to vector<64x16xf32>
    %20 = arith.mulf %15, %19 : vector<64x16xf32>
    %c0_8 = arith.constant 0 : index
    %c0_9 = arith.constant 0 : index
    %21 = vector.load %arg5[%c0_8, %c0_9] : memref<1x16xf32, #tpu.memory_space<vmem>>, vector<1x16xf32>
    %22 = vector.broadcast %21 : vector<1x16xf32> to vector<64x16xf32>
    %23 = arith.mulf %20, %22 : vector<64x16xf32>
    %c0_10 = arith.constant 0 : index
    %c0_11 = arith.constant 0 : index
    %24 = vector.load %arg6[%c0_10, %c0_11] : memref<1x16xf32, #tpu.memory_space<vmem>>, vector<1x16xf32>
    %25 = vector.broadcast %24 : vector<1x16xf32> to vector<64x16xf32>
    %26 = arith.addf %23, %25 : vector<64x16xf32>
    %27 = vector.shape_cast %26 : vector<64x16xf32> to vector<8x2x4x16xf32>
    %28 = tpu.transpose %27, [1, 0, 2, 3] : vector<8x2x4x16xf32> -> vector<2x8x4x16xf32>
    %29 = vector.shape_cast %28 : vector<2x8x4x16xf32> to vector<64x16xf32>
    %c0_12 = arith.constant 0 : index
    %c0_13 = arith.constant 0 : index
    %30 = vector.load %arg8[%c0_12, %c0_13] : memref<16x48xf32, #tpu.memory_space<vmem>>, vector<16x48xf32>
    %cst_14 = arith.constant dense<0.000000e+00> : vector<64x48xf32>
    %31 = tpu.matmul %29, %30, %cst_14 {dimension_numbers = #tpu.dot_dimension_numbers<[1], [0], [0], [1], [0, 0, 1, 1], [], []>} : vector<64x16xf32>, vector<16x48xf32>, vector<64x48xf32> -> vector<64x48xf32>
    %c0_15 = arith.constant 0 : index
    %c0_16 = arith.constant 0 : index
    %32 = vector.load %arg9[%c0_15, %c0_16] : memref<1x48xf32, #tpu.memory_space<vmem>>, vector<1x48xf32>
    %33 = vector.broadcast %32 : vector<1x48xf32> to vector<64x48xf32>
    %34 = arith.addf %31, %33 : vector<64x48xf32>
    %c0_17 = arith.constant 0 : index
    %c0_18 = arith.constant 0 : index
    %c0_19 = arith.constant 0 : index
    %35 = vector.load %arg12[%c0_17, %c0_18, %c0_19] : memref<2x32x32xf32, #tpu.memory_space<vmem>>, vector<2x32x32xf32>
    %c0_20 = arith.constant 0 : index
    %c0_21 = arith.constant 0 : index
    %c0_22 = arith.constant 0 : index
    %36 = vector.load %arg7[%c0_20, %c0_21, %c0_22] : memref<2x32x32xf32, #tpu.memory_space<vmem>>, vector<2x32x32xf32>
    %c0_23 = arith.constant 0 : index
    %c0_24 = arith.constant 0 : index
    %37 = vector.load %arg10[%c0_23, %c0_24] : memref<16x16xf32, #tpu.memory_space<vmem>>, vector<16x16xf32>
    %cst_25 = arith.constant 0.000000e+00 : f32
    %38 = vector.broadcast %cst_25 : f32 to vector<64x16xf32>
    %39 = vector.extract_strided_slice %34 {offsets = [0, 0], sizes = [64, 8], strides = [1, 1]} : vector<64x48xf32> to vector<64x8xf32>
    %40 = vector.shape_cast %39 : vector<64x8xf32> to vector<2x32x8xf32>
    %41 = vector.extract_strided_slice %34 {offsets = [0, 16], sizes = [64, 8], strides = [1, 1]} : vector<64x48xf32> to vector<64x8xf32>
    %42 = vector.shape_cast %41 : vector<64x8xf32> to vector<2x32x8xf32>
    %43 = vector.extract_strided_slice %34 {offsets = [0, 32], sizes = [64, 8], strides = [1, 1]} : vector<64x48xf32> to vector<64x8xf32>
    %44 = vector.shape_cast %43 : vector<64x8xf32> to vector<2x32x8xf32>
    %cst_26 = arith.constant dense<0.000000e+00> : vector<2x32x32xf32>
    %45 = tpu.matmul %40, %42, %cst_26 {dimension_numbers = #tpu.dot_dimension_numbers<[2], [2], [1], [1], [0, 0, 0, 1, 1, 1], [0], [0]>} : vector<2x32x8xf32>, vector<2x32x8xf32>, vector<2x32x32xf32> -> vector<2x32x32xf32>
    %46 = vector.extract_strided_slice %35 {offsets = [0, 0, 0], sizes = [1, 32, 32], strides = [1, 1, 1]} : vector<2x32x32xf32> to vector<1x32x32xf32>
    %47 = vector.shape_cast %46 : vector<1x32x32xf32> to vector<32x32xf32>
    %48 = vector.shape_cast %47 : vector<32x32xf32> to vector<1x32x32xf32>
    %49 = vector.broadcast %48 : vector<1x32x32xf32> to vector<2x32x32xf32>
    %50 = arith.addf %45, %49 : vector<2x32x32xf32>
    %51 = arith.addf %50, %36 : vector<2x32x32xf32>
    %cst_27 = arith.constant dense<0xFF800000> : vector<2x32xf32>
    %52 = vector.multi_reduction <maximumf>, %51, %cst_27 [2] : vector<2x32x32xf32> to vector<2x32xf32>
    %53 = vector.shape_cast %52 : vector<2x32xf32> to vector<2x32x1xf32>
    %54 = vector.broadcast %53 : vector<2x32x1xf32> to vector<2x32x32xf32>
    %55 = arith.subf %51, %54 : vector<2x32x32xf32>
    %56 = math.exp %55 : vector<2x32x32xf32>
    %cst_28 = arith.constant dense<0.000000e+00> : vector<2x32xf32>
    %57 = vector.multi_reduction <add>, %56, %cst_28 [2] : vector<2x32x32xf32> to vector<2x32xf32>
    %58 = vector.shape_cast %57 : vector<2x32xf32> to vector<2x32x1xf32>
    %59 = vector.broadcast %58 : vector<2x32x1xf32> to vector<2x32x32xf32>
    %60 = arith.divf %56, %59 : vector<2x32x32xf32>
    %cst_29 = arith.constant dense<0.000000e+00> : vector<2x32x8xf32>
    %61 = tpu.matmul %60, %44, %cst_29 {dimension_numbers = #tpu.dot_dimension_numbers<[2], [1], [1], [2], [0, 0, 0, 1, 1, 2], [0], [0]>} : vector<2x32x32xf32>, vector<2x32x8xf32>, vector<2x32x8xf32> -> vector<2x32x8xf32>
    %62 = vector.shape_cast %61 : vector<2x32x8xf32> to vector<64x8xf32>
    %63 = vector.extract_strided_slice %37 {offsets = [0, 0], sizes = [8, 16], strides = [1, 1]} : vector<16x16xf32> to vector<8x16xf32>
    %cst_30 = arith.constant dense<0.000000e+00> : vector<64x16xf32>
    %64 = tpu.matmul %62, %63, %cst_30 {dimension_numbers = #tpu.dot_dimension_numbers<[1], [0], [0], [1], [0, 0, 1, 1], [], []>} : vector<64x8xf32>, vector<8x16xf32>, vector<64x16xf32> -> vector<64x16xf32>
    %65 = arith.addf %38, %64 : vector<64x16xf32>
    %66 = vector.extract_strided_slice %34 {offsets = [0, 8], sizes = [64, 8], strides = [1, 1]} : vector<64x48xf32> to vector<64x8xf32>
    %67 = vector.shape_cast %66 : vector<64x8xf32> to vector<2x32x8xf32>
    %68 = vector.extract_strided_slice %34 {offsets = [0, 24], sizes = [64, 8], strides = [1, 1]} : vector<64x48xf32> to vector<64x8xf32>
    %69 = vector.shape_cast %68 : vector<64x8xf32> to vector<2x32x8xf32>
    %70 = vector.extract_strided_slice %34 {offsets = [0, 40], sizes = [64, 8], strides = [1, 1]} : vector<64x48xf32> to vector<64x8xf32>
    %71 = vector.shape_cast %70 : vector<64x8xf32> to vector<2x32x8xf32>
    %cst_31 = arith.constant dense<0.000000e+00> : vector<2x32x32xf32>
    %72 = tpu.matmul %67, %69, %cst_31 {dimension_numbers = #tpu.dot_dimension_numbers<[2], [2], [1], [1], [0, 0, 0, 1, 1, 1], [0], [0]>} : vector<2x32x8xf32>, vector<2x32x8xf32>, vector<2x32x32xf32> -> vector<2x32x32xf32>
    %73 = vector.extract_strided_slice %35 {offsets = [1, 0, 0], sizes = [1, 32, 32], strides = [1, 1, 1]} : vector<2x32x32xf32> to vector<1x32x32xf32>
    %74 = vector.shape_cast %73 : vector<1x32x32xf32> to vector<32x32xf32>
    %75 = vector.shape_cast %74 : vector<32x32xf32> to vector<1x32x32xf32>
    %76 = vector.broadcast %75 : vector<1x32x32xf32> to vector<2x32x32xf32>
    %77 = arith.addf %72, %76 : vector<2x32x32xf32>
    %78 = arith.addf %77, %36 : vector<2x32x32xf32>
    %cst_32 = arith.constant dense<0xFF800000> : vector<2x32xf32>
    %79 = vector.multi_reduction <maximumf>, %78, %cst_32 [2] : vector<2x32x32xf32> to vector<2x32xf32>
    %80 = vector.shape_cast %79 : vector<2x32xf32> to vector<2x32x1xf32>
    %81 = vector.broadcast %80 : vector<2x32x1xf32> to vector<2x32x32xf32>
    %82 = arith.subf %78, %81 : vector<2x32x32xf32>
    %83 = math.exp %82 : vector<2x32x32xf32>
    %cst_33 = arith.constant dense<0.000000e+00> : vector<2x32xf32>
    %84 = vector.multi_reduction <add>, %83, %cst_33 [2] : vector<2x32x32xf32> to vector<2x32xf32>
    %85 = vector.shape_cast %84 : vector<2x32xf32> to vector<2x32x1xf32>
    %86 = vector.broadcast %85 : vector<2x32x1xf32> to vector<2x32x32xf32>
    %87 = arith.divf %83, %86 : vector<2x32x32xf32>
    %cst_34 = arith.constant dense<0.000000e+00> : vector<2x32x8xf32>
    %88 = tpu.matmul %87, %71, %cst_34 {dimension_numbers = #tpu.dot_dimension_numbers<[2], [1], [1], [2], [0, 0, 0, 1, 1, 2], [0], [0]>} : vector<2x32x32xf32>, vector<2x32x8xf32>, vector<2x32x8xf32> -> vector<2x32x8xf32>
    %89 = vector.shape_cast %88 : vector<2x32x8xf32> to vector<64x8xf32>
    %90 = vector.extract_strided_slice %37 {offsets = [8, 0], sizes = [8, 16], strides = [1, 1]} : vector<16x16xf32> to vector<8x16xf32>
    %cst_35 = arith.constant dense<0.000000e+00> : vector<64x16xf32>
    %91 = tpu.matmul %89, %90, %cst_35 {dimension_numbers = #tpu.dot_dimension_numbers<[1], [0], [0], [1], [0, 0, 1, 1], [], []>} : vector<64x8xf32>, vector<8x16xf32>, vector<64x16xf32> -> vector<64x16xf32>
    %92 = arith.addf %65, %91 : vector<64x16xf32>
    %c0_36 = arith.constant 0 : index
    %c0_37 = arith.constant 0 : index
    %93 = vector.load %arg11[%c0_36, %c0_37] : memref<1x16xf32, #tpu.memory_space<vmem>>, vector<1x16xf32>
    %94 = vector.broadcast %93 : vector<1x16xf32> to vector<64x16xf32>
    %95 = arith.addf %92, %94 : vector<64x16xf32>
    %96 = vector.shape_cast %95 : vector<64x16xf32> to vector<2x8x4x16xf32>
    %97 = tpu.transpose %96, [1, 0, 2, 3] : vector<2x8x4x16xf32> -> vector<8x2x4x16xf32>
    %98 = vector.shape_cast %97 : vector<8x2x4x16xf32> to vector<64x16xf32>
    %99 = arith.addf %2, %98 : vector<64x16xf32>
    %100 = vector.shape_cast %99 : vector<64x16xf32> to vector<2x4x8x16xf32>
    %c0_38 = arith.constant 0 : index
    %c0_39 = arith.constant 0 : index
    %c0_40 = arith.constant 0 : index
    %c0_41 = arith.constant 0 : index
    %c0_42 = arith.constant 0 : index
    %101 = vector.load %arg13[%c0_38, %c0_39, %c0_40, %c0_41, %c0_42] : memref<1x2x4x8x16xf32, #tpu.memory_space<vmem>>, vector<1x2x4x8x16xf32>
    %102 = vector.shape_cast %101 : vector<1x2x4x8x16xf32> to vector<2x4x8x16xf32>
    %103 = vector.shape_cast %100 : vector<2x4x8x16xf32> to vector<1x2x4x8x16xf32>
    tpu.vector_store %arg13[%c0_38, %c0_39, %c0_40, %c0_41, %c0_42], %103 {strides = array<i32>} : memref<1x2x4x8x16xf32, #tpu.memory_space<vmem>>, vector<1x2x4x8x16xf32>,
    return
  }
  func.func @transform_0(%arg0: i32, %arg1: i32, %arg2: i32, %arg3: i32) -> (i32, i32, i32, i32, i32) {
    %c0_i32 = arith.constant 0 : i32
    %c0_i32_0 = arith.constant 0 : i32
    return %arg0, %arg1, %arg2, %arg3, %c0_i32 : i32, i32, i32, i32, i32
  }
  func.func @transform_1(%arg0: i32, %arg1: i32, %arg2: i32, %arg3: i32) -> (i32, i32) {
    %c0_i32 = arith.constant 0 : i32
    %c0_i32_0 = arith.constant 0 : i32
    %c0_i32_1 = arith.constant 0 : i32
    return %c0_i32, %c0_i32_0 : i32, i32
  }
  func.func @transform_2(%arg0: i32, %arg1: i32, %arg2: i32, %arg3: i32) -> (i32, i32) {
    %c0_i32 = arith.constant 0 : i32
    %c0_i32_0 = arith.constant 0 : i32
    %c0_i32_1 = arith.constant 0 : i32
    return %c0_i32, %c0_i32_0 : i32, i32
  }
  func.func @transform_3(%arg0: i32, %arg1: i32, %arg2: i32, %arg3: i32) -> (i32, i32, i32) {
    %c2_i32 = arith.constant 2 : i32
    %0 = arith.muli %arg1, %c2_i32 : i32
    %1 = arith.addi %0, %arg2 : i32
    %c1_i32 = arith.constant 1 : i32
    %2 = arith.muli %1, %c1_i32 : i32
    %3 = arith.addi %2, %arg3 : i32
    %c0_i32 = arith.constant 0 : i32
    %c0_i32_0 = arith.constant 0 : i32
    %c0_i32_1 = arith.constant 0 : i32
    return %3, %c0_i32, %c0_i32_0 : i32, i32, i32
  }
  func.func @transform_4(%arg0: i32, %arg1: i32, %arg2: i32, %arg3: i32) -> (i32, i32) {
    %c0_i32 = arith.constant 0 : i32
    %c0_i32_0 = arith.constant 0 : i32
    %c0_i32_1 = arith.constant 0 : i32
    return %c0_i32, %c0_i32_0 : i32, i32
  }
  func.func @transform_5(%arg0: i32, %arg1: i32, %arg2: i32, %arg3: i32) -> (i32, i32) {
    %c0_i32 = arith.constant 0 : i32
    %c0_i32_0 = arith.constant 0 : i32
    %c0_i32_1 = arith.constant 0 : i32
    return %c0_i32, %c0_i32_0 : i32, i32
  }
  func.func @transform_6(%arg0: i32, %arg1: i32, %arg2: i32, %arg3: i32) -> (i32, i32) {
    %c0_i32 = arith.constant 0 : i32
    %c0_i32_0 = arith.constant 0 : i32
    %c0_i32_1 = arith.constant 0 : i32
    return %c0_i32, %c0_i32_0 : i32, i32
  }
  func.func @transform_7(%arg0: i32, %arg1: i32, %arg2: i32, %arg3: i32) -> (i32, i32) {
    %c0_i32 = arith.constant 0 : i32
    %c0_i32_0 = arith.constant 0 : i32
    %c0_i32_1 = arith.constant 0 : i32
    return %c0_i32, %c0_i32_0 : i32, i32
  }
  func.func @transform_8(%arg0: i32, %arg1: i32, %arg2: i32, %arg3: i32) -> (i32, i32, i32) {
    %c0_i32 = arith.constant 0 : i32
    %c0_i32_0 = arith.constant 0 : i32
    %c0_i32_1 = arith.constant 0 : i32
    %c0_i32_2 = arith.constant 0 : i32
    return %c0_i32, %c0_i32_0, %c0_i32_1 : i32, i32, i32
  }
  func.func @transform_9(%arg0: i32, %arg1: i32, %arg2: i32, %arg3: i32) -> (i32, i32, i32, i32, i32) {
    %c0_i32 = arith.constant 0 : i32
    %c0_i32_0 = arith.constant 0 : i32
    return %arg0, %arg1, %arg2, %arg3, %c0_i32 : i32, i32, i32, i32, i32
  }
}

module attributes {stable_mosaic.version = 11 : i64} {
  func.func @_linear_res_kernel(%arg0: i32, %arg1: memref<128x16xf32, #tpu.memory_space<vmem>>, %arg2: memref<128x16xf32, #tpu.memory_space<vmem>>, %arg3: memref<16x16xf32, #tpu.memory_space<vmem>>, %arg4: memref<1x16xf32, #tpu.memory_space<vmem>>, %arg5: memref<128x16xf32, #tpu.memory_space<vmem>>) attributes {dimension_semantics = [#tpu.dimension_semantics<parallel>], iteration_bounds = array<i64: 2>, scalar_prefetch = 0 : i64, scratch_operands = 0 : i64, tpu.core_type = #tpu.core_type<tc>, window_params = [{transform_indices = @transform_0, window_bounds = array<i64: 128, 16>}, {transform_indices = @transform_1, window_bounds = array<i64: 128, 16>}, {pipeline_mode = #tpu.pipeline_mode<synchronous>, transform_indices = @transform_2, window_bounds = array<i64: 16, 16>}, {pipeline_mode = #tpu.pipeline_mode<synchronous>, transform_indices = @transform_3, window_bounds = array<i64: 1, 16>}, {transform_indices = @transform_4, window_bounds = array<i64: 128, 16>}]} {
    %c0 = arith.constant 0 : index
    %c0_0 = arith.constant 0 : index
    %0 = vector.load %arg1[%c0, %c0_0] : memref<128x16xf32, #tpu.memory_space<vmem>>, vector<128x16xf32>
    %c0_1 = arith.constant 0 : index
    %c0_2 = arith.constant 0 : index
    %1 = vector.load %arg3[%c0_1, %c0_2] : memref<16x16xf32, #tpu.memory_space<vmem>>, vector<16x16xf32>
    %cst = arith.constant dense<0.000000e+00> : vector<128x16xf32>
    %2 = tpu.matmul %0, %1, %cst {dimension_numbers = #tpu.dot_dimension_numbers<[1], [0], [0], [1], [0, 0, 1, 1], [], []>} : vector<128x16xf32>, vector<16x16xf32>, vector<128x16xf32> -> vector<128x16xf32>
    %c0_3 = arith.constant 0 : index
    %c0_4 = arith.constant 0 : index
    %3 = vector.load %arg4[%c0_3, %c0_4] : memref<1x16xf32, #tpu.memory_space<vmem>>, vector<1x16xf32>
    %4 = vector.broadcast %3 : vector<1x16xf32> to vector<128x16xf32>
    %5 = arith.addf %2, %4 : vector<128x16xf32>
    %c0_5 = arith.constant 0 : index
    %c0_6 = arith.constant 0 : index
    %6 = vector.load %arg2[%c0_5, %c0_6] : memref<128x16xf32, #tpu.memory_space<vmem>>, vector<128x16xf32>
    %7 = arith.addf %6, %5 : vector<128x16xf32>
    %c0_7 = arith.constant 0 : index
    %c0_8 = arith.constant 0 : index
    %8 = vector.load %arg5[%c0_7, %c0_8] : memref<128x16xf32, #tpu.memory_space<vmem>>, vector<128x16xf32>
    tpu.vector_store %arg5[%c0_7, %c0_8], %7 {strides = array<i32>} : memref<128x16xf32, #tpu.memory_space<vmem>>, vector<128x16xf32>,
    return
  }
  func.func @transform_0(%arg0: i32) -> (i32, i32) {
    %c0_i32 = arith.constant 0 : i32
    %c0_i32_0 = arith.constant 0 : i32
    return %arg0, %c0_i32 : i32, i32
  }
  func.func @transform_1(%arg0: i32) -> (i32, i32) {
    %c0_i32 = arith.constant 0 : i32
    %c0_i32_0 = arith.constant 0 : i32
    return %arg0, %c0_i32 : i32, i32
  }
  func.func @transform_2(%arg0: i32) -> (i32, i32) {
    %c0_i32 = arith.constant 0 : i32
    %c0_i32_0 = arith.constant 0 : i32
    %c0_i32_1 = arith.constant 0 : i32
    return %c0_i32, %c0_i32_0 : i32, i32
  }
  func.func @transform_3(%arg0: i32) -> (i32, i32) {
    %c0_i32 = arith.constant 0 : i32
    %c0_i32_0 = arith.constant 0 : i32
    %c0_i32_1 = arith.constant 0 : i32
    return %c0_i32, %c0_i32_0 : i32, i32
  }
  func.func @transform_4(%arg0: i32) -> (i32, i32) {
    %c0_i32 = arith.constant 0 : i32
    %c0_i32_0 = arith.constant 0 : i32
    return %arg0, %c0_i32 : i32, i32
  }
}

</mosaic_0001>

<bundles_post_ra>
// kernel: rstb_forward.6
= control target key start
LH: loop header
LB: loop body
LE: loop exit
PB: predicated region body
PF: predicated region fallthrough
CT: control target
= control target key end

     0   :  { %s1406_s24 = smov 0   ;;  %s1802_s0 = inlined_call_operand.vmem [shape: f32[256,16], index: 0, kind: input, shape index: {}]   ;;  %s1803_s1 = inlined_call_operand.vmem [shape: f32[1,16], index: 1, kind: input, shape index: {}]   ;;  %s1804_s2 = inlined_call_operand.vmem [shape: f32[1,16], index: 2, kind: input, shape index: {}]   ;;  %s1805_s3 = inlined_call_operand.vmem [shape: f32[16,32], index: 3, kind: input, shape index: {}]   ;;  %s1806_s4 = inlined_call_operand.vmem [shape: f32[1,32], index: 4, kind: input, shape index: {}]   ;;  %s1807_s5 = inlined_call_operand.vmem [shape: f32[32,16], index: 5, kind: input, shape index: {}]   ;;  %s1808_s6 = inlined_call_operand.vmem [shape: f32[1,16], index: 6, kind: input, shape index: {}]   ;;  %s1809_s7 = inlined_call_operand.vmem [shape: f32[256,16], index: 7, kind: output, shape index: {}]  }
   0x1 LB: > { %s1129_s25 = sadd.s32 4294967295, %s1364_s24   ;;  %p1133_p0 = scmp.ge.s32.totalorder %s1364_s24, 1  ;;  %s1364_s24 = sphi %s1406_s24, %s17_s24  }
   0x2   : > { %p238_p1 = scmp.lt.s32.totalorder %s1364_s24, 3 }
   0x4   : > { %p239_p2 = pnand %p1133_p0, %p238_p1 }
   0x5   : > { %s1134_s26 = sshll.u32 (!%p239_p2), %s1129_s25, 4  ;;  %vm298_vm0 = vcmask (!%p239_p2), 130048   ;;  %vm847_vm1 = vcmask (!%p239_p2), 261120  }
   0x6   : > { %242 = sbr.rel (%p239_p2) target bundleno = 813 (0x32d), region = 48  ;;  %p271_p3 = scmp.lt.s32.totalorder (!%p239_p2), %s1134_s26, 31 }
   0xd   : > { %s1811_s26 = smov (!%p271_p3, %s1134_s26), 31 }
   0xe   : > { %s1135_s27 = sshll.u32 %s1811_s26, 3 }
   0xf   : > { %s1422_s30 = scalar_lea.vmem %s1802_s0, %s1135_s27  ;;  %s1749_s10 = scalar_lea.vmem %s1809_s7, %s1135_s27 }
  0x10   : > { %v1425_v0 = vld [vmem:[%s1422_s30] sm:$0xff]  ;;  %v1428_v1 = vld [vmem:[%s1422_s30 + $0x10] sm:$0xff]  ;;  %v1431_v2 = vld [vmem:[%s1422_s30 + $0x8] sm:$0xff] }
  0x11   : > { %v299_v3 = vsel %vm298_vm0, %v1425_v0, 0.0  ;;  %v305_v4 = vsel %vm298_vm0, %v1428_v1, 0.0  ;;  %v1438_v5 = vld [vmem:[%s1422_s30 + $0x18] sm:$0xff]  ;;  %v302_v6 = vsel %vm298_vm0, %v1431_v2, 0.0  ;;  %v1445_v8 = vld [vmem:[%s1422_s30 + $0x20] sm:$0xff]  ;;  %v1448_v9 = vld [vmem:[%s1422_s30 + $0x28] sm:$0xff] }
  0x12   : > { %300 = vadd.xlane.f32.xlu0 %v299_v3  ;;  %306 = vadd.xlane.f32.xlu1 %v305_v4  ;;  %v308_v7 = vsel %vm298_vm0, %v1438_v5, 0.0  ;;  %v311_v10 = vsel %vm298_vm0, %v1445_v8, 0.0  ;;  %v314_v11 = vsel %vm298_vm0, %v1448_v9, 0.0  ;;  %v1455_v12 = vld [vmem:[%s1422_s30 + $0x30] sm:$0xff]  ;;  %v1458_v13 = vld [vmem:[%s1422_s30 + $0x38] sm:$0xff]  ;;  %v1465_v16 = vld [vmem:[%s1422_s30 + $0x40] sm:$0xff] }
  0x13   : > { %v317_v14 = vsel %vm298_vm0, %v1455_v12, 0.0  ;;  %v320_v15 = vsel %vm298_vm0, %v1458_v13, 0.0  ;;  %v1468_v17 = vld [vmem:[%s1422_s30 + $0x48] sm:$0xff]  ;;  %v323_v18 = vsel %vm298_vm0, %v1465_v16, 0.0  ;;  %v1475_v20 = vld [vmem:[%s1422_s30 + $0x50] sm:$0xff]  ;;  %v1478_v21 = vld [vmem:[%s1422_s30 + $0x58] sm:$0xff] }
  0x14   : > { %v326_v19 = vsel %vm298_vm0, %v1468_v17, 0.0  ;;  %v329_v22 = vsel %vm298_vm0, %v1475_v20, 0.0  ;;  %v332_v23 = vsel %vm298_vm0, %v1478_v21, 0.0  ;;  %v1485_v24 = vld [vmem:[%s1422_s30 + $0x60] sm:$0xff]  ;;  %v1488_v25 = vld [vmem:[%s1422_s30 + $0x68] sm:$0xff]  ;;  %v1495_v28 = vld [vmem:[%s1422_s30 + $0x70] sm:$0xff] }
  0x15   : > { %v335_v26 = vsel %vm298_vm0, %v1485_v24, 0.0  ;;  %v338_v27 = vsel %vm298_vm0, %v1488_v25, 0.0  ;;  %v1498_v29 = vld [vmem:[%s1422_s30 + $0x78] sm:$0xff]  ;;  %v341_v30 = vsel %vm298_vm0, %v1495_v28, 0.0 }
  0x16   : > { %303 = vadd.xlane.f32.xlu0 %v302_v6  ;;  %309 = vadd.xlane.f32.xlu1 %v308_v7  ;;  %v344_v31 = vsel %vm298_vm0, %v1498_v29, 0.0 }
  0x1a   : > { %312 = vadd.xlane.f32.xlu0 %v311_v10  ;;  %315 = vadd.xlane.f32.xlu1 %v314_v11 }
  0x1e   : > { %318 = vadd.xlane.f32.xlu0 %v317_v14  ;;  %321 = vadd.xlane.f32.xlu1 %v320_v15 }
  0x22   : > { %324 = vadd.xlane.f32.xlu0 %v323_v18  ;;  %327 = vadd.xlane.f32.xlu1 %v326_v19 }
  0x26   : > { %330 = vadd.xlane.f32.xlu0 %v329_v22  ;;  %333 = vadd.xlane.f32.xlu1 %v332_v23 }
  0x2a   : > { %336 = vadd.xlane.f32.xlu0 %v335_v26  ;;  %339 = vadd.xlane.f32.xlu1 %v338_v27 }
  0x2e   : > { %342 = vadd.xlane.f32.xlu0 %v341_v30  ;;  %345 = vadd.xlane.f32.xlu1 %v344_v31 }
  0x9f   : > { %v301_v32 = vpop.xlane.xlu0 %300  ;;  %v307_v33 = vpop.xlane.xlu1 %306 }
  0xa0   : > { %v348_v34 = vmul.f32 0.0625, %v301_v32  ;;  %v350_v35 = vmul.f32 0.0625, %v307_v33 }
  0xa2   : > { %v1505_v36 = vsub.f32 %v1425_v0, %v348_v34  ;;  %v1508_v37 = vsub.f32 %v1428_v1, %v350_v35 }
  0xa3   : > { %v304_v38 = vpop.xlane.xlu0 %303  ;;  %v310_v39 = vpop.xlane.xlu1 %309 }
  0xa4   : > { %v349_v40 = vmul.f32 0.0625, %v304_v38  ;;  %v351_v41 = vmul.f32 0.0625, %v310_v39  ;;  %v380_v42 = vmul.f32 %v1505_v36, %v1505_v36  ;;  %v382_v43 = vmul.f32 %v1508_v37, %v1508_v37 }
  0xa6   : > { %v1515_v44 = vsub.f32 %v1431_v2, %v349_v40  ;;  %v1518_v45 = vsub.f32 %v1438_v5, %v351_v41  ;;  %v396_v46 = vsel %vm298_vm0, %v380_v42, 0.0  ;;  %v402_v49 = vsel %vm298_vm0, %v382_v43, 0.0 }
  0xa7   : > { %397 = vadd.xlane.f32.xlu0 %v396_v46  ;;  %v313_v47 = vpop.xlane.xlu0 %312  ;;  %v316_v48 = vpop.xlane.xlu1 %315 }
  0xa8   : > { %v352_v50 = vmul.f32 0.0625, %v313_v47  ;;  %v353_v51 = vmul.f32 0.0625, %v316_v48  ;;  %v381_v52 = vmul.f32 %v1515_v44, %v1515_v44  ;;  %v383_v53 = vmul.f32 %v1518_v45, %v1518_v45 }
  0xaa   : > { %v1527_v54 = vsub.f32 %v1445_v8, %v352_v50  ;;  %v1530_v55 = vsub.f32 %v1448_v9, %v353_v51  ;;  %v399_v56 = vsel %vm298_vm0, %v381_v52, 0.0  ;;  %v405_v59 = vsel %vm298_vm0, %v383_v53, 0.0 }
  0xab   : > { %403 = vadd.xlane.f32.xlu0 %v402_v49  ;;  %400 = vadd.xlane.f32.xlu1 %v399_v56  ;;  %v319_v57 = vpop.xlane.xlu0 %318  ;;  %v322_v58 = vpop.xlane.xlu1 %321 }
  0xac   : > { %v354_v60 = vmul.f32 0.0625, %v319_v57  ;;  %v355_v61 = vmul.f32 0.0625, %v322_v58  ;;  %v384_v62 = vmul.f32 %v1527_v54, %v1527_v54  ;;  %v385_v63 = vmul.f32 %v1530_v55, %v1530_v55 }
  0xae   : > { %v1539_v3 = vsub.f32 %v1455_v12, %v354_v60  ;;  %v1542_v4 = vsub.f32 %v1458_v13, %v355_v61  ;;  %v408_v6 = vsel %vm298_vm0, %v384_v62, 0.0  ;;  %v411_v11 = vsel %vm298_vm0, %v385_v63, 0.0 }
  0xaf   : > { %406 = vadd.xlane.f32.xlu1 %v405_v59  ;;  %409 = vadd.xlane.f32.xlu0 %v408_v6  ;;  %v325_v7 = vpop.xlane.xlu0 %324  ;;  %v328_v10 = vpop.xlane.xlu1 %327 }
  0xb0   : > { %v356_v14 = vmul.f32 0.0625, %v325_v7  ;;  %v357_v15 = vmul.f32 0.0625, %v328_v10  ;;  %v386_v18 = vmul.f32 %v1539_v3, %v1539_v3  ;;  %v387_v19 = vmul.f32 %v1542_v4, %v1542_v4 }
  0xb2   : > { %v1551_v22 = vsub.f32 %v1465_v16, %v356_v14  ;;  %v1554_v23 = vsub.f32 %v1468_v17, %v357_v15  ;;  %v414_v26 = vsel %vm298_vm0, %v386_v18, 0.0  ;;  %v417_v31 = vsel %vm298_vm0, %v387_v19, 0.0  ;;  %v554_v18 = vld [vmem:[%s1805_s3] sm:$0xff]  ;;  %v555_v19 = vld [vmem:[%s1805_s3 + $0x8] sm:$0xff] }
  0xb3   : > { %412 = vadd.xlane.f32.xlu1 %v411_v11  ;;  %415 = vadd.xlane.f32.xlu0 %v414_v26  ;;  %v331_v27 = vpop.xlane.xlu0 %330  ;;  %v334_v30 = vpop.xlane.xlu1 %333  ;;  %v1274_v26 = vpack.c.bf16 %v555_v19, %v554_v18 }
  0xb4   : > { %v358_v32 = vmul.f32 0.0625, %v331_v27  ;;  %v359_v33 = vmul.f32 0.0625, %v334_v30  ;;  %v388_v34 = vmul.f32 %v1551_v22, %v1551_v22  ;;  %v389_v35 = vmul.f32 %v1554_v23, %v1554_v23 }
  0xb5   : > { %1275 = vmatprep.subr.bf16.mxu0 %v1274_v26 }
  0xb6   : > { %v1563_v38 = vsub.f32 %v1475_v20, %v358_v32  ;;  %v1566_v39 = vsub.f32 %v1478_v21, %v359_v33  ;;  %v420_v40 = vsel %vm298_vm0, %v388_v34, 0.0  ;;  %v423_v43 = vsel %vm298_vm0, %v389_v35, 0.0  ;;  %1277 = vmatpush3.bf16.msra.mxu0 %v1274_v26 }
  0xb7   : > { %418 = vadd.xlane.f32.xlu1 %v417_v31  ;;  %421 = vadd.xlane.f32.xlu0 %v420_v40  ;;  %v337_v41 = vpop.xlane.xlu0 %336  ;;  %v340_v42 = vpop.xlane.xlu1 %339 }
  0xb8   : > { %v360_v46 = vmul.f32 0.0625, %v337_v41  ;;  %v361_v47 = vmul.f32 0.0625, %v340_v42  ;;  %v390_v48 = vmul.f32 %v1563_v38, %v1563_v38  ;;  %v391_v49 = vmul.f32 %v1566_v39, %v1566_v39 }
  0xba   : > { %v1575_v50 = vsub.f32 %v1485_v24, %v360_v46  ;;  %v1578_v51 = vsub.f32 %v1488_v25, %v361_v47  ;;  %v426_v52 = vsel %vm298_vm0, %v390_v48, 0.0  ;;  %v429_v57 = vsel %vm298_vm0, %v391_v49, 0.0 }
  0xbb   : > { %424 = vadd.xlane.f32.xlu1 %v423_v43  ;;  %427 = vadd.xlane.f32.xlu0 %v426_v52  ;;  %v343_v53 = vpop.xlane.xlu0 %342  ;;  %v346_v56 = vpop.xlane.xlu1 %345 }
  0xbc   : > { %v362_v58 = vmul.f32 0.0625, %v343_v53  ;;  %v363_v59 = vmul.f32 0.0625, %v346_v56  ;;  %v392_v60 = vmul.f32 %v1575_v50, %v1575_v50  ;;  %v393_v61 = vmul.f32 %v1578_v51, %v1578_v51 }
  0xbe   : > { %v1587_v62 = vsub.f32 %v1495_v28, %v362_v58  ;;  %v1590_v63 = vsub.f32 %v1498_v29, %v363_v59  ;;  %v432_v6 = vsel %vm298_vm0, %v392_v60, 0.0  ;;  %v435_v7 = vsel %vm298_vm0, %v393_v61, 0.0  ;;  %v1609_v61 = vld [vmem:[%s1803_s1] ss:$0 sm:$0xff] }
  0xbf   : > { %430 = vadd.xlane.f32.xlu1 %v429_v57  ;;  %433 = vadd.xlane.f32.xlu0 %v432_v6 }
  0xc0   : > { %v394_v10 = vmul.f32 %v1587_v62, %v1587_v62  ;;  %v395_v11 = vmul.f32 %v1590_v63, %v1590_v63 }
  0xc2   : > { %v438_v14 = vsel %vm298_vm0, %v394_v10, 0.0  ;;  %v441_v15 = vsel %vm298_vm0, %v395_v11, 0.0 }
  0xc3   : > { %436 = vadd.xlane.f32.xlu1 %v435_v7  ;;  %439 = vadd.xlane.f32.xlu0 %v438_v14 }
  0xc7   : > { %442 = vadd.xlane.f32.xlu1 %v441_v15  ;;  %v1615_v15 = vld [vmem:[%s1804_s2] ss:$0 sm:$0xff] }
 0x134   : > { %v398_v27 = vpop.xlane.xlu0 %397 }
 0x135   : > { %v444_v30 = vmul.f32 0.0625, %v398_v27 }
 0x137   : > { %v460_v31 = vadd.f32 1e-05, %v444_v30 }
 0x138   : > { %v401_v32 = vpop.xlane.xlu1 %400  ;;  %v404_v33 = vpop.xlane.xlu0 %403 }
 0x139   : > { %1294 = vrsqrt.f32 %v460_v31  ;;  %v445_v34 = vmul.f32 0.0625, %v401_v32  ;;  %v446_v35 = vmul.f32 0.0625, %v404_v33 }
 0x13b   : > { %v461_v40 = vadd.f32 1e-05, %v445_v34  ;;  %v462_v41 = vadd.f32 1e-05, %v446_v35 }
 0x13c   : > { %v407_v42 = vpop.xlane.xlu1 %406  ;;  %v410_v43 = vpop.xlane.xlu0 %409 }
 0x13d   : > { %1296 = vrsqrt.f32 %v461_v40  ;;  %v447_v46 = vmul.f32 0.0625, %v407_v42  ;;  %v448_v47 = vmul.f32 0.0625, %v410_v43 }
 0x13e   : > { %1298 = vrsqrt.f32 %v462_v41 }
 0x13f   : > { %v463_v48 = vadd.f32 1e-05, %v447_v46  ;;  %v464_v49 = vadd.f32 1e-05, %v448_v47 }
 0x140   : > { %v413_v52 = vpop.xlane.xlu1 %412  ;;  %v416_v53 = vpop.xlane.xlu0 %415 }
 0x141   : > { %1300 = vrsqrt.f32 %v463_v48  ;;  %v449_v56 = vmul.f32 0.0625, %v413_v52  ;;  %v450_v57 = vmul.f32 0.0625, %v416_v53 }
 0x142   : > { %1302 = vrsqrt.f32 %v464_v49 }
 0x143   : > { %v1295_v58 = vpop.eup %1294  ;;  %v465_v59 = vadd.f32 1e-05, %v449_v56  ;;  %v466_v60 = vadd.f32 1e-05, %v450_v57 }
 0x144   : > { %v419_v6 = vpop.xlane.xlu1 %418  ;;  %v422_v7 = vpop.xlane.xlu0 %421  ;;  %v492_v10 = vmul.f32 %v1295_v58, %v1505_v36 }
 0x145   : > { %1304 = vrsqrt.f32 %v465_v59  ;;  %v451_v11 = vmul.f32 0.0625, %v419_v6  ;;  %v452_v14 = vmul.f32 0.0625, %v422_v7 }
 0x146   : > { %1306 = vrsqrt.f32 %v466_v60  ;;  %v515_v18 = vmul.f32 %v1609_v61, %v492_v10 }
 0x147   : > { %v1297_v19 = vpop.eup %1296  ;;  %v467_v26 = vadd.f32 1e-05, %v451_v11  ;;  %v468_v27 = vadd.f32 1e-05, %v452_v14 }
 0x148   : > { %v1299_v30 = vpop.eup %1298  ;;  %v425_v31 = vpop.xlane.xlu1 %424  ;;  %v538_v33 = vadd.f32 %v1615_v15, %v515_v18  ;;  %v493_v36 = vmul.f32 %v1297_v19, %v1515_v44 }
 0x149   : > { %v428_v32 = vpop.xlane.xlu0 %427  ;;  %1308 = vrsqrt.f32 %v467_v26  ;;  %v453_v34 = vmul.f32 0.0625, %v425_v31  ;;  %v494_v40 = vmul.f32 %v1299_v30, %v1508_v37 }
 0x14a   : > { %v454_v35 = vmul.f32 0.0625, %v428_v32  ;;  %1310 = vrsqrt.f32 %v468_v27  ;;  %1218 = vmatprep.mubr.msk.f32.mxu0 %vm298_vm0, %v538_v33  ;;  %v516_v41 = vmul.f32 %v1609_v61, %v493_v36 }
 0x14b   : > { %v1301_v42 = vpop.eup %1300  ;;  %v469_v43 = vadd.f32 1e-05, %v453_v34  ;;  %v517_v47 = vmul.f32 %v1609_v61, %v494_v40 }
 0x14c   : > { %v470_v46 = vadd.f32 1e-05, %v454_v35  ;;  %v1303_v48 = vpop.eup %1302  ;;  %v431_v49 = vpop.xlane.xlu1 %430  ;;  %v539_v44 = vadd.f32 %v1615_v15, %v516_v41  ;;  %v495_v53 = vmul.f32 %v1301_v42, %v1518_v45 }
 0x14d   : > { %v434_v52 = vpop.xlane.xlu0 %433  ;;  %1312 = vrsqrt.f32 %v469_v43  ;;  %v455_v56 = vmul.f32 0.0625, %v431_v49  ;;  %v540_v57 = vadd.f32 %v1615_v15, %v517_v47  ;;  %v496_v59 = vmul.f32 %v1303_v48, %v1527_v54 }
 0x14e   : > { %v456_v37 = vmul.f32 0.0625, %v434_v52  ;;  %1314 = vrsqrt.f32 %v470_v46  ;;  %1219 = vmatmul.mubr.msk.f32.vlgmr.msra.gmra.mrb[0].mxu0 %vm298_vm0, %v539_v44  ;;  %v518_v58 = vmul.f32 %v1609_v61, %v495_v53 }
 0x14f   : > { %v1305_v60 = vpop.eup %1304  ;;  %v471_v6 = vadd.f32 1e-05, %v455_v56  ;;  %1221 = vmatprep.mubr.msk.f32.mxu0 %vm298_vm0, %v540_v57  ;;  %v519_v18 = vmul.f32 %v1609_v61, %v496_v59 }
 0x150   : > { %v472_v7 = vadd.f32 1e-05, %v456_v37  ;;  %v1307_v10 = vpop.eup %1306  ;;  %v437_v11 = vpop.xlane.xlu1 %436  ;;  %v541_v14 = vadd.f32 %v1615_v15, %v518_v58  ;;  %v497_v19 = vmul.f32 %v1305_v60, %v1530_v55 }
 0x151   : > { %v440_v45 = vpop.xlane.xlu0 %439  ;;  %1316 = vrsqrt.f32 %v471_v6  ;;  %v457_v26 = vmul.f32 0.0625, %v437_v11  ;;  %v498_v30 = vmul.f32 %v1307_v10, %v1539_v3  ;;  %v542_v54 = vadd.f32 %v1615_v15, %v519_v18 }
 0x152   : > { %v458_v27 = vmul.f32 0.0625, %v440_v45  ;;  %1318 = vrsqrt.f32 %v472_v7  ;;  %1222 = vmatmul.mubr.msk.f32.gmra.mrb[2].mxu0 %vm298_vm0, %v541_v14  ;;  %v520_v31 = vmul.f32 %v1609_v61, %v497_v19 }
 0x153   : > { %v1309_v32 = vpop.eup %1308  ;;  %v473_v33 = vadd.f32 1e-05, %v457_v26  ;;  %v521_v34 = vmul.f32 %v1609_v61, %v498_v30  ;;  %1224 = vmatprep.mubr.msk.f32.mxu0 %vm298_vm0, %v542_v54 }
 0x154   : > { %v474_v36 = vadd.f32 1e-05, %v458_v27  ;;  %v1311_v35 = vpop.eup %1310  ;;  %v443_v55 = vpop.xlane.xlu1 %442  ;;  %v543_v40 = vadd.f32 %v1615_v15, %v520_v31  ;;  %v499_v3 = vmul.f32 %v1309_v32, %v1542_v4  ;;  %v836_v31 = vld [vmem:[%s1807_s5] sm:$0xff] }
 0x155   : > { %1320 = vrsqrt.f32 %v473_v33  ;;  %v459_v41 = vmul.f32 0.0625, %v443_v55  ;;  %v544_v42 = vadd.f32 %v1615_v15, %v521_v34  ;;  %v500_v43 = vmul.f32 %v1311_v35, %v1551_v22 }
 0x156   : > { %1322 = vrsqrt.f32 %v474_v36  ;;  %1225 = vmatmul.mubr.msk.f32.gmra.mrb[4].mxu0 %vm298_vm0, %v543_v40  ;;  %v522_v46 = vmul.f32 %v1609_v61, %v499_v3  ;;  %v1695_v36 = vld [vmem:[%s1806_s4] ss:$0 sm:$0xff] }
 0x157   : > { %v1313_v47 = vpop.eup %1312  ;;  %v475_v48 = vadd.f32 1e-05, %v459_v41  ;;  %1227 = vmatprep.mubr.msk.f32.mxu0 %vm298_vm0, %v544_v42  ;;  %v523_v49 = vmul.f32 %v1609_v61, %v500_v43 }
 0x158   : > { %v1315_v52 = vpop.eup %1314  ;;  %v545_v4 = vadd.f32 %v1615_v15, %v522_v46  ;;  %v501_v44 = vmul.f32 %v1313_v47, %v1554_v23 }
 0x159   : > { %1324 = vrsqrt.f32 %v475_v48  ;;  %v546_v53 = vadd.f32 %v1615_v15, %v523_v49  ;;  %v502_v22 = vmul.f32 %v1315_v52, %v1563_v38 }
 0x15a   : > { %1228 = vmatmul.mubr.msk.f32.gmra.mrb[6].mxu0 %vm298_vm0, %v545_v4  ;;  %v524_v56 = vmul.f32 %v1609_v61, %v501_v44 }
 0x15b   : > { %v1317_v37 = vpop.eup %1316  ;;  %1230 = vmatprep.mubr.msk.f32.mxu0 %vm298_vm0, %v546_v53  ;;  %v525_v57 = vmul.f32 %v1609_v61, %v502_v22 }
 0x15c   : > { %v1319_v58 = vpop.eup %1318  ;;  %v547_v59 = vadd.f32 %v1615_v15, %v524_v56  ;;  %v503_v60 = vmul.f32 %v1317_v37, %v1566_v39 }
 0x15d   : > { %v548_v23 = vadd.f32 %v1615_v15, %v525_v57  ;;  %v504_v6 = vmul.f32 %v1319_v58, %v1575_v50 }
 0x15e   : > { %1231 = vmatmul.mubr.msk.f32.gmra.mrb[8].mxu0 %vm298_vm0, %v547_v59  ;;  %v526_v38 = vmul.f32 %v1609_v61, %v503_v60 }
 0x15f   : > { %v1321_v7 = vpop.eup %1320  ;;  %1233 = vmatprep.mubr.msk.f32.mxu0 %vm298_vm0, %v548_v23  ;;  %v527_v10 = vmul.f32 %v1609_v61, %v504_v6 }
 0x160   : > { %v1323_v11 = vpop.eup %1322  ;;  %v549_v45 = vadd.f32 %v1615_v15, %v526_v38  ;;  %v505_v14 = vmul.f32 %v1321_v7, %v1578_v51 }
 0x161   : > { %v550_v39 = vadd.f32 %v1615_v15, %v527_v10  ;;  %v506_v18 = vmul.f32 %v1323_v11, %v1587_v62 }
 0x162   : > { %1234 = vmatmul.mubr.msk.f32.gmra.mrb[10].mxu0 %vm298_vm0, %v549_v45  ;;  %v528_v50 = vmul.f32 %v1609_v61, %v505_v14 }
 0x163   : > { %v1325_v19 = vpop.eup %1324  ;;  %1236 = vmatprep.mubr.msk.f32.mxu0 %vm298_vm0, %v550_v39  ;;  %v529_v26 = vmul.f32 %v1609_v61, %v506_v18 }
 0x164   : > { %v551_v27 = vadd.f32 %v1615_v15, %v528_v50  ;;  %v507_v30 = vmul.f32 %v1325_v19, %v1590_v63  ;;  %v837_v63 = vld [vmem:[%s1807_s5 + $0x8] sm:$0xff] }
 0x165   : > { %v552_v54 = vadd.f32 %v1615_v15, %v529_v26  ;;  %v1278_v32 = vpack.c.bf16 %v837_v63, %v836_v31 }
 0x166   : > { %1237 = vmatmul.mubr.msk.f32.gmra.mrb[12].mxu0 %vm298_vm0, %v551_v27  ;;  %v530_v51 = vmul.f32 %v1609_v61, %v507_v30  ;;  %v838_v61 = vld [vmem:[%s1807_s5 + $0x10] sm:$0xff] }
 0x167   : > { %1239 = vmatprep.mubr.msk.f32.mxu0 %vm298_vm0, %v552_v54  ;;  %1279 = vmatprep.subr.bf16.mxu1 %v1278_v32 }
 0x168   : > { %v553_v62 = vadd.f32 %v1615_v15, %v530_v51  ;;  %1281 = vmatpush3.bf16.msra.mxu1 %v1278_v32  ;;  %v839_v15 = vld [vmem:[%s1807_s5 + $0x18] sm:$0xff] }
 0x169   : > { %v1282_v33 = vpack.c.bf16 %v839_v15, %v838_v61 }
 0x16a   : > { %1240 = vmatmul.mubr.msk.f32.gmra.mrb[14].mxu0 %vm298_vm0, %v553_v62 }
 0x16b   : > { %1283 = vmatprep.subr.bf16.mxu1 %v1282_v33 }
 0x16c   : > { %1285 = vmatpush3.bf16.msra.mxu1 %v1282_v33 }
 0x221   : > { %v1220_v34 = vpop.f32.mrb[0].mxu0 }
 0x222   : > { %v683_v35 = vadd.f32 %v1220_v34, %v1695_v36  ;;  %v677_v55 = vpop.f32.mrb[1].mxu0 }
 0x223   : > { %v678_v40 = vadd.f32 %v1695_v36, %v677_v55 }
 0x224   : > { %v773_v3 = vmul.f32 0.70710677, %v683_v35  ;;  %v757_v18 = vmul.f32 0.5, %v683_v35 }
 0x225   : > { %v772_v41 = vmul.f32 0.70710677, %v678_v40  ;;  %v1223_v42 = vpop.f32.mrb[2].mxu0  ;;  %v756_v11 = vmul.f32 0.5, %v678_v40 }
 0x226   : > { %1326 = verf.f32 %v773_v3  ;;  %v693_v43 = vadd.f32 %v1223_v42, %v1695_v36  ;;  %v687_v46 = vpop.f32.mrb[3].mxu0 }
 0x227   : > { %1328 = verf.f32 %v772_v41  ;;  %v688_v47 = vadd.f32 %v1695_v36, %v687_v46 }
 0x228   : > { %v775_v48 = vmul.f32 0.70710677, %v693_v43  ;;  %v759_v33 = vmul.f32 0.5, %v693_v43 }
 0x229   : > { %v774_v49 = vmul.f32 0.70710677, %v688_v47  ;;  %v1226_v52 = vpop.f32.mrb[4].mxu0  ;;  %v758_v63 = vmul.f32 0.5, %v688_v47 }
 0x22a   : > { %1330 = verf.f32 %v775_v48  ;;  %v703_v4 = vadd.f32 %v1226_v52, %v1695_v36  ;;  %v697_v44 = vpop.f32.mrb[5].mxu0 }
 0x22b   : > { %1332 = verf.f32 %v774_v49  ;;  %v698_v53 = vadd.f32 %v1695_v36, %v697_v44 }
 0x22c   : > { %v777_v22 = vmul.f32 0.70710677, %v703_v4  ;;  %v761_v44 = vmul.f32 0.5, %v703_v4 }
 0x22d   : > { %v776_v56 = vmul.f32 0.70710677, %v698_v53  ;;  %v1229_v37 = vpop.f32.mrb[6].mxu0  ;;  %v760_v48 = vmul.f32 0.5, %v698_v53 }
 0x22e   : > { %1334 = verf.f32 %v777_v22  ;;  %v1704_v57 = vadd.f32 %v1229_v37, %v1695_v36  ;;  %v707_v58 = vpop.f32.mrb[7].mxu0 }
 0x22f   : > { %1336 = verf.f32 %v776_v56  ;;  %v708_v59 = vadd.f32 %v1695_v36, %v707_v58 }
 0x230   : > { %v1327_v60 = vpop.eup %1326  ;;  %v779_v23 = vmul.f32 0.70710677, %v1704_v57  ;;  %v763_v4 = vmul.f32 0.5, %v1704_v57 }
 0x231   : > { %v1329_v6 = vpop.eup %1328  ;;  %v805_v38 = vadd.f32 1.0, %v1327_v60  ;;  %v778_v7 = vmul.f32 0.70710677, %v708_v59  ;;  %v1232_v10 = vpop.f32.mrb[8].mxu0 }
 0x232   : > { %1338 = verf.f32 %v779_v23  ;;  %v1709_v45 = vadd.f32 %v1232_v10, %v1695_v36  ;;  %v717_v14 = vpop.f32.mrb[9].mxu0  ;;  %v804_v39 = vadd.f32 1.0, %v1329_v6 }
 0x233   : > { %1340 = verf.f32 %v778_v7  ;;  %v718_v50 = vadd.f32 %v1695_v36, %v717_v14  ;;  %v821_v54 = vmul.f32 %v805_v38, %v757_v18  ;;  %v762_v7 = vmul.f32 0.5, %v708_v59 }
 0x234   : > { %v1331_v19 = vpop.eup %1330  ;;  %v781_v26 = vmul.f32 0.70710677, %v1709_v45  ;;  %v820_v27 = vmul.f32 %v804_v39, %v756_v11 }
 0x235   : > { %v1333_v30 = vpop.eup %1332  ;;  %v807_v51 = vadd.f32 1.0, %v1331_v19  ;;  %v780_v62 = vmul.f32 0.70710677, %v718_v50  ;;  %v1235_v31 = vpop.f32.mrb[10].mxu0 }
 0x236   : > { %v806_v32 = vadd.f32 1.0, %v1333_v30  ;;  %1342 = verf.f32 %v781_v26  ;;  %v1714_v61 = vadd.f32 %v1235_v31, %v1695_v36  ;;  %v727_v15 = vpop.f32.mrb[11].mxu0  ;;  %1250 = vmatprep.mubr.msk.f32.mxu1 %vm847_vm1, %v820_v27  ;;  %v765_v31 = vmul.f32 0.5, %v1709_v45 }
 0x237   : > { %1344 = verf.f32 %v780_v62  ;;  %v728_v34 = vadd.f32 %v1695_v36, %v727_v15  ;;  %1251 = vmatmul.mubr.msk.f32.vlgmr.msra.gmra.mrb[0].mxu1 %vm847_vm1, %v821_v54  ;;  %v823_v41 = vmul.f32 %v807_v51, %v759_v33  ;;  %v764_v51 = vmul.f32 0.5, %v718_v50 }
 0x238   : > { %v1335_v35 = vpop.eup %1334  ;;  %v822_v55 = vmul.f32 %v806_v32, %v758_v63  ;;  %v783_v40 = vmul.f32 0.70710677, %v1714_v61  ;;  %v767_v50 = vmul.f32 0.5, %v1714_v61 }
 0x239   : > { %v1337_v3 = vpop.eup %1336  ;;  %v809_v42 = vadd.f32 1.0, %v1335_v35  ;;  %v782_v46 = vmul.f32 0.70710677, %v728_v34  ;;  %v1238_v47 = vpop.f32.mrb[12].mxu0  ;;  %v766_v33 = vmul.f32 0.5, %v728_v34 }
 0x23a   : > { %v808_v49 = vadd.f32 1.0, %v1337_v3  ;;  %1346 = verf.f32 %v783_v40  ;;  %v743_v52 = vadd.f32 %v1238_v47, %v1695_v36  ;;  %v737_v43 = vpop.f32.mrb[13].mxu0  ;;  %1253 = vmatprep.mubr.msk.f32.mxu1 %vm847_vm1, %v822_v55 }
 0x23b   : > { %1348 = verf.f32 %v782_v46  ;;  %v738_v22 = vadd.f32 %v1695_v36, %v737_v43  ;;  %1254 = vmatmul.mubr.msk.f32.gmra.mrb[2].mxu1 %vm847_vm1, %v823_v41  ;;  %v825_v23 = vmul.f32 %v809_v42, %v761_v44 }
 0x23c   : > { %v1339_v56 = vpop.eup %1338  ;;  %v824_v37 = vmul.f32 %v808_v49, %v760_v48  ;;  %v785_v58 = vmul.f32 0.70710677, %v743_v52  ;;  %v769_v47 = vmul.f32 0.5, %v743_v52  ;;  %v1157_v52 = vld [vmem:[%s1808_s6] ss:$0 sm:$0xff] }
 0x23d   : > { %v1341_v60 = vpop.eup %1340  ;;  %v811_v6 = vadd.f32 1.0, %v1339_v56  ;;  %v784_v53 = vmul.f32 0.70710677, %v738_v22  ;;  %v1241_v38 = vpop.f32.mrb[14].mxu0  ;;  %v768_v42 = vmul.f32 0.5, %v738_v22 }
 0x23e   : > { %v810_v10 = vadd.f32 1.0, %v1341_v60  ;;  %1350 = verf.f32 %v785_v58  ;;  %v753_v11 = vadd.f32 %v1241_v38, %v1695_v36  ;;  %v747_v14 = vpop.f32.mrb[15].mxu0  ;;  %1256 = vmatprep.mubr.msk.f32.mxu1 %vm847_vm1, %v824_v37 }
 0x23f   : > { %1352 = verf.f32 %v784_v53  ;;  %v748_v39 = vadd.f32 %v1695_v36, %v747_v14  ;;  %1257 = vmatmul.mubr.msk.f32.gmra.mrb[4].mxu1 %vm847_vm1, %v825_v23  ;;  %v827_v30 = vmul.f32 %v811_v6, %v763_v4 }
 0x240   : > { %v1343_v18 = vpop.eup %1342  ;;  %v826_v19 = vmul.f32 %v810_v10, %v762_v7  ;;  %v787_v26 = vmul.f32 0.70710677, %v753_v11  ;;  %v771_v37 = vmul.f32 0.5, %v753_v11 }
 0x241   : > { %v1345_v27 = vpop.eup %1344  ;;  %v813_v59 = vadd.f32 1.0, %v1343_v18  ;;  %v786_v54 = vmul.f32 0.70710677, %v748_v39  ;;  %v770_v44 = vmul.f32 0.5, %v748_v39 }
 0x242   : > { %v812_v62 = vadd.f32 1.0, %v1345_v27  ;;  %1354 = verf.f32 %v787_v26  ;;  %1259 = vmatprep.mubr.msk.f32.mxu1 %vm847_vm1, %v826_v19 }
 0x243   : > { %1356 = verf.f32 %v786_v54  ;;  %1260 = vmatmul.mubr.msk.f32.gmra.mrb[6].mxu1 %vm847_vm1, %v827_v30  ;;  %v829_v32 = vmul.f32 %v813_v59, %v765_v31 }
 0x244   : > { %v1347_v36 = vpop.eup %1346  ;;  %v828_v57 = vmul.f32 %v812_v62, %v764_v51 }
 0x245   : > { %v1349_v63 = vpop.eup %1348  ;;  %v815_v15 = vadd.f32 1.0, %v1347_v36 }
 0x246   : > { %v814_v35 = vadd.f32 1.0, %v1349_v63  ;;  %1262 = vmatprep.mubr.msk.f32.mxu1 %vm847_vm1, %v828_v57 }
 0x247   : > { %1263 = vmatmul.mubr.msk.f32.gmra.mrb[8].mxu1 %vm847_vm1, %v829_v32  ;;  %v831_v45 = vmul.f32 %v815_v15, %v767_v50 }
 0x248   : > { %v1351_v55 = vpop.eup %1350  ;;  %v830_v40 = vmul.f32 %v814_v35, %v766_v33 }
 0x249   : > { %v1353_v3 = vpop.eup %1352  ;;  %v817_v41 = vadd.f32 1.0, %v1351_v55 }
 0x24a   : > { %v816_v46 = vadd.f32 1.0, %v1353_v3  ;;  %1265 = vmatprep.mubr.msk.f32.mxu1 %vm847_vm1, %v830_v40 }
 0x24b   : > { %1266 = vmatmul.mubr.msk.f32.gmra.mrb[10].mxu1 %vm847_vm1, %v831_v45  ;;  %v833_v43 = vmul.f32 %v817_v41, %v769_v47 }
 0x24c   : > { %v1355_v34 = vpop.eup %1354  ;;  %v832_v48 = vmul.f32 %v816_v46, %v768_v42 }
 0x24d   : > { %v1357_v49 = vpop.eup %1356  ;;  %v819_v61 = vadd.f32 1.0, %v1355_v34 }
 0x24e   : > { %v818_v56 = vadd.f32 1.0, %v1357_v49  ;;  %1268 = vmatprep.mubr.msk.f32.mxu1 %vm847_vm1, %v832_v48 }
 0x24f   : > { %1269 = vmatmul.mubr.msk.f32.gmra.mrb[12].mxu1 %vm847_vm1, %v833_v43  ;;  %v835_v58 = vmul.f32 %v819_v61, %v771_v37 }
 0x250   : > { %v834_v22 = vmul.f32 %v818_v56, %v770_v44 }
 0x252   : > { %1271 = vmatprep.mubr.msk.f32.mxu1 %vm847_vm1, %v834_v22 }
 0x253   : > { %1272 = vmatmul.mubr.msk.f32.gmra.mrb[14].mxu1 %vm847_vm1, %v835_v58 }
 0x30a   : > { %v1252_v60 = vpop.f32.mrb[0].mxu1 }
 0x30b   : > { %v968_v23 = vadd.f32 %v1252_v60, %v1157_v52  ;;  %v962_v6 = vpop.f32.mrb[1].mxu1 }
 0x30c   : > { %v963_v53 = vadd.f32 %v1157_v52, %v962_v6 }
 0x30d   : > { %v1042_v38 = vadd.f32 %v968_v23, %v1431_v2 }
 0x30e   : > { %v1041_v7 = vadd.f32 %v963_v53, %v1425_v0  ;;  %v1255_v10 = vpop.f32.mrb[2].mxu1 }
 0x30f   : > { %1058 = vst.msk [vmem:[%s1749_s10 + $0x8] sm:$0xff] %vm298_vm0, %v1042_v38  ;;  %v978_v11 = vadd.f32 %v1255_v10, %v1157_v52  ;;  %v972_v14 = vpop.f32.mrb[3].mxu1 }
 0x310   : > { %1057 = vst.msk [vmem:[%s1749_s10] sm:$0xff] %vm298_vm0, %v1041_v7  ;;  %v973_v4 = vadd.f32 %v1157_v52, %v972_v14 }
 0x311   : > { %v1044_v39 = vadd.f32 %v978_v11, %v1438_v5 }
 0x312   : > { %v1043_v18 = vadd.f32 %v973_v4, %v1428_v1  ;;  %v1258_v19 = vpop.f32.mrb[4].mxu1 }
 0x313   : > { %1060 = vst.msk [vmem:[%s1749_s10 + $0x18] sm:$0xff] %vm298_vm0, %v1044_v39  ;;  %v988_v2 = vadd.f32 %v1258_v19, %v1157_v52  ;;  %v982_v0 = vpop.f32.mrb[5].mxu1 }
 0x314   : > { %1059 = vst.msk [vmem:[%s1749_s10 + $0x10] sm:$0xff] %vm298_vm0, %v1043_v18  ;;  %v983_v26 = vadd.f32 %v1157_v52, %v982_v0 }
 0x315   : > { %v1046_v27 = vadd.f32 %v988_v2, %v1448_v9 }
 0x316   : > { %v1045_v30 = vadd.f32 %v983_v26, %v1445_v8  ;;  %v1261_v59 = vpop.f32.mrb[6].mxu1 }
 0x317   : > { %1062 = vst.msk [vmem:[%s1749_s10 + $0x28] sm:$0xff] %vm298_vm0, %v1046_v27  ;;  %v998_v5 = vadd.f32 %v1261_v59, %v1157_v52  ;;  %v992_v1 = vpop.f32.mrb[7].mxu1 }
 0x318   : > { %1061 = vst.msk [vmem:[%s1749_s10 + $0x20] sm:$0xff] %vm298_vm0, %v1045_v30  ;;  %v993_v54 = vadd.f32 %v1157_v52, %v992_v1 }
 0x319   : > { %v1048_v51 = vadd.f32 %v998_v5, %v1458_v13 }
 0x31a   : > { %v1047_v62 = vadd.f32 %v993_v54, %v1455_v12  ;;  %v1264_v31 = vpop.f32.mrb[8].mxu1 }
 0x31b   : > { %1064 = vst.msk [vmem:[%s1749_s10 + $0x38] sm:$0xff] %vm298_vm0, %v1048_v51  ;;  %v1008_v9 = vadd.f32 %v1264_v31, %v1157_v52  ;;  %v1002_v8 = vpop.f32.mrb[9].mxu1 }
 0x31c   : > { %1063 = vst.msk [vmem:[%s1749_s10 + $0x30] sm:$0xff] %vm298_vm0, %v1047_v62  ;;  %v1003_v36 = vadd.f32 %v1157_v52, %v1002_v8 }
 0x31d   : > { %v1050_v57 = vadd.f32 %v1008_v9, %v1468_v17 }
 0x31e   : > { %v1049_v63 = vadd.f32 %v1003_v36, %v1465_v16  ;;  %v1267_v32 = vpop.f32.mrb[10].mxu1 }
 0x31f   : > { %1066 = vst.msk [vmem:[%s1749_s10 + $0x48] sm:$0xff] %vm298_vm0, %v1050_v57  ;;  %v1018_v13 = vadd.f32 %v1267_v32, %v1157_v52  ;;  %v1012_v12 = vpop.f32.mrb[11].mxu1 }
 0x320   : > { %1065 = vst.msk [vmem:[%s1749_s10 + $0x40] sm:$0xff] %vm298_vm0, %v1049_v63  ;;  %v1013_v15 = vadd.f32 %v1157_v52, %v1012_v12 }
 0x321   : > { %v1052_v33 = vadd.f32 %v1018_v13, %v1478_v21 }
 0x322   : > { %v1051_v35 = vadd.f32 %v1013_v15, %v1475_v20  ;;  %v1270_v50 = vpop.f32.mrb[12].mxu1 }
 0x323   : > { %1068 = vst.msk [vmem:[%s1749_s10 + $0x58] sm:$0xff] %vm298_vm0, %v1052_v33  ;;  %v1028_v16 = vadd.f32 %v1270_v50, %v1157_v52  ;;  %v1022_v17 = vpop.f32.mrb[13].mxu1 }
 0x324   : > { %1067 = vst.msk [vmem:[%s1749_s10 + $0x50] sm:$0xff] %vm298_vm0, %v1051_v35  ;;  %v1023_v55 = vadd.f32 %v1157_v52, %v1022_v17 }
 0x325   : > { %v1054_v40 = vadd.f32 %v1028_v16, %v1488_v25 }
 0x326   : > { %v1053_v3 = vadd.f32 %v1023_v55, %v1485_v24  ;;  %v1273_v45 = vpop.f32.mrb[14].mxu1 }
 0x327   : > { %1070 = vst.msk [vmem:[%s1749_s10 + $0x68] sm:$0xff] %vm298_vm0, %v1054_v40  ;;  %v1038_v21 = vadd.f32 %v1273_v45, %v1157_v52  ;;  %v1032_v41 = vpop.f32.mrb[15].mxu1 }
 0x328   : > { %1069 = vst.msk [vmem:[%s1749_s10 + $0x60] sm:$0xff] %vm298_vm0, %v1053_v3  ;;  %v1033_v20 = vadd.f32 %v1157_v52, %v1032_v41 }
 0x329   : > { %v1056_v42 = vadd.f32 %v1038_v21, %v1498_v29 }
 0x32a   : > { %v1055_v46 = vadd.f32 %v1033_v20, %v1495_v28 }
 0x32b   : > { %1072 = vst.msk [vmem:[%s1749_s10 + $0x78] sm:$0xff] %vm298_vm0, %v1056_v42 }
 0x32c   : > { %1071 = vst.msk [vmem:[%s1749_s10 + $0x70] sm:$0xff] %vm298_vm0, %v1055_v46 }
 0x32d PF: > { %s17_s24 = sadd.s32 1, %s1364_s24  }
 0x32e   : > { %p14_p4 = scmp.ge.s32.totalorder %s17_s24, 4  }
 0x330   :  { %16 = sbr.rel (!%p14_p4) target bundleno = 1 (0x1), region = 78 }

// kernel: rstb_forward.5
= control target key start
LH: loop header
LB: loop body
LE: loop exit
PB: predicated region body
PF: predicated region fallthrough
CT: control target
= control target key end

     0   :  { %13 = vsyncpa [#allocation3], 0  ;;  %s3657_s0 = inlined_call_operand.hbm [shape: f32[2,2,8,8,16], index: 0, kind: input, shape index: {}]   ;;  %s3658_s1 = inlined_call_operand.vmem [shape: f32[1,16], index: 1, kind: input, shape index: {}]   ;;  %s3659_s2 = inlined_call_operand.vmem [shape: f32[1,16], index: 2, kind: input, shape index: {}]   ;;  %s3660_s3 = inlined_call_operand.vmem [shape: f32[16,48], index: 3, kind: input, shape index: {}]   ;;  %s3661_s4 = inlined_call_operand.vmem [shape: f32[1,48], index: 4, kind: input, shape index: {}]   ;;  %s3662_s5 = inlined_call_operand.vmem [shape: f32[16,16], index: 5, kind: input, shape index: {}]   ;;  %s3663_s6 = inlined_call_operand.vmem [shape: f32[1,16], index: 6, kind: input, shape index: {}]   ;;  %s3664_s7 = inlined_call_operand.vmem [shape: f32[2,32,32], index: 7, kind: input, shape index: {}]   ;;  %s3665_s8 = inlined_call_operand.vmem [shape: f32[2,2,8,8,16], index: 8, kind: output, shape index: {}]  }
   0x1   :  { %15 = vsyncpa [#allocation3 + $0x1], 0  ;;  %s3082_s27 = smov 0   ;;  %s3084_s28 = smov 0  }
   0x2   :  { %s3086_s29 = smov 0   ;;  %s3088_s30 = smov 0  }
   0x3   :  { %s3090_s9 = smov 0   ;;  %s3092_s10 = smov 0  }
   0x4   :  { %s3094_s11 = smov 0   ;;  %s3096_s12 = smov 0  }
   0x5 LB: > { %3670 = sst [smem:[#allocation9_spill]] %s3016_s10  ;;  %s39_s13 = sadd.s32 1, %s3016_s10  ;;  %s3024_s12 = sphi %s3096_s12, %s21_s12   ;;  %s3020_s11 = sphi %s3094_s11, %s3690_s11   ;;  %s3016_s10 = sphi %s3092_s10, %s3683_s10   ;;  %s3012_s9 = sphi %s3090_s9, %s3689_s9   ;;  %s3008_s30 = sphi %s3088_s30, %s3688_s30   ;;  %s3004_s29 = sphi %s3086_s29, %s3687_s29   ;;  %s3000_s28 = sphi %s3084_s28, %s3686_s28   ;;  %s2996_s27 = sphi %s3082_s27, %s3685_s27  }
   0x6   : > { %3671 = sst [smem:[#allocation10_spill]] %s3020_s11  ;;  %p41_p0 = scmp.ge.s32.totalorder %s39_s13, 2 }
   0x7   : > { %s47_s14 = sadd.s32 1, %s3020_s11  ;;  %s2263_s15 = sadd.s32 4294967295, %s3024_s12  }
   0x8   : > { %p67_p1 = scmp.ne.s32.totalorder %s3004_s29, %s3000_s28  ;;  %s3692_s13 = smov (%p41_p0, %s39_s13), 0 }
   0x9   : > { %3672 = sst [smem:[#allocation11_spill]] %s3692_s13  ;;  %s3694_s14 = smov (!%p41_p0, %s47_s14), %s3020_s11 }
   0xa   : > { %s54_s16 = ssub.s32 %s3016_s10, %s3692_s13  ;;  %p68_p2 = scmp.eq.s32.totalorder %s3024_s12, 0 }
   0xb   : > { %p49_p3 = scmp.ge.s32.totalorder %s3694_s14, 2  ;;  %p73_p4 = scmp.ne.s32.totalorder %s3000_s28, %s2996_s27 }
   0xc   : > { %p3135_p5 = por %p68_p2, %p67_p1  ;;  %p74_p6 = scmp.eq.s32.totalorder %s2263_s15, 0 }
   0xd   : > { %s3696_s14 = smov (%p49_p3, %s3694_s14), 0  ;;  %p250_p8 = scmp.eq.s32.totalorder %s2263_s15, 3 }
   0xe   : > { %3674 = sst [smem:[#allocation12_spill]] %s3696_s14  ;;  %p3141_p7 = por %p74_p6, %p73_p4 }
   0xf   : > { %s51_s19 = ssub.s32 %s3020_s11, %s3696_s14  ;;  %s60_s20 = sadd.s32 1, %s3004_s29 }
  0x10   : > { %s55_s21 = sor.u32 %s54_s16, %s51_s19  ;;  %p3151_p9 = por %p250_p8, %p67_p1 }
  0x11   : > { %p58_p10 = scmp.eq.s32.totalorder %s55_s21, 0  ;;  %p2266_p11 = scmp.ge.s32.totalorder %s3024_s12, 4 }
  0x13   : > { %s3156_s23 = scalar_select %p58_p10, %s3004_s29, %s60_s20  }
  0x14   : > { %293 = sbr.rel (%p2266_p11) target bundleno = 43 (0x2b), region = 44 }
  0x15   : > { %3677 = sst [smem:[#allocation13_spill]] %s3156_s23 }
  0x1b   : > { %s297_s24 = sand.u32 1, %s3004_s29   ;;  %s2268_s25 = sshll.u32 %s3016_s10, 2 }
  0x1c   : > { %s2267_s26 = sshll.u32 %s297_s24, 6  ;;  %s2269_s27 = sshll.u32 %s3020_s11, 4 }
  0x1d   : > { %s311_s15 = sadd.s32 %s2269_s27, %s2268_s25  ;;  %s301_s16 = scalar_lea.vmem [#allocation2], %s2267_s26 }
  0x1e   : > { %s326_s19 = sshll.u32 %s301_s16, 4  ;;  %s2270_s20 = sshll.u32 %s311_s15, 7  ;;  %s327_s19 = int_to_ptr.vmem [resolvable:$true] %s326_s19 }
  0x1f   : > { %s2706_s21 = scalar_select %p3135_p5, [#allocation0], [#allocation7] }
  0x20   : > { %s3026_s14 = smov 1024   ;;  %s3027_s23 = smov 512  }
  0x21   : > { %2707 = sst [smem:[#allocation6]] (%p3135_p5), %s3026_s14  ;;  %s3028_s10 = smov 4  }
  0x22   : > { %s318_s13 = sld [smem:[%s2706_s21]]   ;;  %s3029_s25 = smov 128  }
  0x23   : > { %2708 = sst [smem:[#allocation6 + $0x1]] (%p3135_p5), %s3027_s23  ;;  %s313_s15 = scalar_lea.hbm %s3657_s0, %s2270_s20 }
  0x24   : > { %2709 = sst [smem:[#allocation6 + $0x2]] (%p3135_p5), %s3028_s10  ;;  %s3030_s16 = smov 8  }
  0x25   : > { %2710 = sst [smem:[#allocation6 + $0x3]] (%p3135_p5), %s3029_s25  ;;  %s298_s11 = scalar_lea.sflag [#allocation3], %s297_s24 }
  0x26   : > { %2711 = sst [smem:[#allocation6 + $0x4]] (%p3135_p5), %s3029_s25  ;;  %s3031_s23 = smov [#allocation5]  }
  0x27   : > { %2712 = sst [smem:[#allocation6 + $0x5]] (%p3135_p5), %s3030_s16 }
  0x28   : > { %s2271_s14 = sshll.u32 %s318_s13, 26 }
  0x29   : > { %s2272_s21 = sadd.s32 134217728, %s2271_s14 }
  0x2a   : > { %2713 = dma.general (%p3135_p5), %s313_s15, 1024, %s327_s19, %s298_s11, %s3031_s23, [#allocation6], %s2272_s21, 0  }
  0x2b PF: > { %p2273_p12 = scmp.ge.s32.totalorder %s3024_s12, 1  ;;  %p347_p13 = scmp.lt.s32.totalorder %s3024_s12, 5 }
  0x2d   : > { %p348_p0 = pnand %p2273_p12, %p347_p13 }
  0x2e   : > { %s353_s10 = sand.u32 (!%p348_p0), 1, %s3000_s28  }
  0x2f   : > { %351 = sbr.rel (%p348_p0) target bundleno = 2343 (0x927), region = 52  ;;  %s3184_s20 = sshll.u32 (!%p348_p0), %s353_s10, 6 }
  0x30   : > { %s354_s25 = scalar_lea.sflag (!%p348_p0), [#allocation3], %s353_s10  ;;  %s3187_s13 = scalar_lea.vmem (!%p348_p0), [#allocation2], %s3184_s20 }
  0x36   : > { %2991 = dma.done.wait (%p3141_p7), %s354_s25, 1024  }
  0x37   : > { %2993 = vsyncadd (%p3141_p7), %s354_s25, 4294966272  ;;  %vm401_vm0 = vcmask 130048   ;;  %v393_v0 = vld [vmem:[%s3187_s13] sm:$0xff]  ;;  %v395_v1 = vld [vmem:[%s3187_s13 + $0x10] sm:$0xff]  ;;  %vm713_vm1 = vcmask 64512   ;;  %s3032_s21 = smov 112  }
  0x38   : > { %v394_v2 = vld [vmem:[%s3187_s13 + $0x8] sm:$0xff]  ;;  %v402_v3 = vsel %vm401_vm0, %v393_v0, 0.0  ;;  %v408_v4 = vsel %vm401_vm0, %v395_v1, 0.0  ;;  %v396_v5 = vld [vmem:[%s3187_s13 + $0x18] sm:$0xff]  ;;  %v397_v8 = vld [vmem:[%s3187_s13 + $0x20] sm:$0xff]  ;;  %s3033_s23 = smov 96  }
  0x39   : > { %403 = vadd.xlane.f32.xlu0 %v402_v3  ;;  %409 = vadd.xlane.f32.xlu1 %v408_v4  ;;  %v405_v6 = vsel %vm401_vm0, %v394_v2, 0.0  ;;  %v411_v7 = vsel %vm401_vm0, %v396_v5, 0.0  ;;  %v398_v9 = vld [vmem:[%s3187_s13 + $0x28] sm:$0xff]  ;;  %v414_v10 = vsel %vm401_vm0, %v397_v8, 0.0  ;;  %v399_v12 = vld [vmem:[%s3187_s13 + $0x30] sm:$0xff]  ;;  %v400_v13 = vld [vmem:[%s3187_s13 + $0x38] sm:$0xff] }
  0x3a   : > { %v417_v11 = vsel %vm401_vm0, %v398_v9, 0.0  ;;  %v420_v14 = vsel %vm401_vm0, %v399_v12, 0.0  ;;  %v423_v15 = vsel %vm401_vm0, %v400_v13, 0.0  ;;  %v553_v56 = vld [vmem:[%s3660_s3] sm:$0xff]  ;;  %v554_v57 = vld [vmem:[%s3660_s3 + $0x8] sm:$0xff]  ;;  %s3034_s10 = smov 104   ;;  %vm3328_vm2 = vmpackc.low %vm713_vm1, %vm713_vm1 }
  0x3b   : > { %v2614_v58 = vpack.c.bf16 %v554_v57, %v553_v56  ;;  %vm928_vm3 = vcmask 261120   ;;  %s3035_s15 = smov 120   ;;  %s3036_s18 = smov 88  }
  0x3c   : > { %s3596_s14 = scalar_lea.vmem [#allocation4], %s3184_s20  ;;  %s2361_s20 = sshll.u32 (%p3151_p9), %s3008_s30, 2 }
  0x3d   : > { %406 = vadd.xlane.f32.xlu0 %v405_v6  ;;  %412 = vadd.xlane.f32.xlu1 %v411_v7 }
  0x3e   : > { %2615 = vmatprep.subr.bf16.mxu0 %v2614_v58 }
  0x3f   : > { %2617 = vmatpush3.bf16.msra.mxu0 %v2614_v58 }
  0x41   : > { %415 = vadd.xlane.f32.xlu0 %v414_v10  ;;  %418 = vadd.xlane.f32.xlu1 %v417_v11 }
  0x45   : > { %421 = vadd.xlane.f32.xlu0 %v420_v14  ;;  %424 = vadd.xlane.f32.xlu1 %v423_v15 }
  0xc6   : > { %v404_v16 = vpop.xlane.xlu0 %403  ;;  %v410_v17 = vpop.xlane.xlu1 %409 }
  0xc7   : > { %v427_v18 = vmul.f32 0.0625, %v404_v16  ;;  %v429_v19 = vmul.f32 0.0625, %v410_v17 }
  0xc9   : > { %v3209_v20 = vsub.f32 %v393_v0, %v427_v18  ;;  %v3211_v21 = vsub.f32 %v395_v1, %v429_v19 }
  0xca   : > { %v407_v22 = vpop.xlane.xlu0 %406  ;;  %v413_v23 = vpop.xlane.xlu1 %412 }
  0xcb   : > { %v428_v24 = vmul.f32 0.0625, %v407_v22  ;;  %v430_v25 = vmul.f32 0.0625, %v413_v23  ;;  %v443_v26 = vmul.f32 %v3209_v20, %v3209_v20  ;;  %v445_v27 = vmul.f32 %v3211_v21, %v3211_v21  ;;  %v2276_v22 = vld [vmem:[%s3658_s1] ss:$0 sm:$0xff] }
  0xcd   : > { %v3217_v28 = vsub.f32 %v394_v2, %v428_v24  ;;  %v3219_v29 = vsub.f32 %v396_v5, %v430_v25  ;;  %v451_v30 = vsel %vm401_vm0, %v443_v26, 0.0  ;;  %v457_v33 = vsel %vm401_vm0, %v445_v27, 0.0 }
  0xce   : > { %452 = vadd.xlane.f32.xlu0 %v451_v30  ;;  %v416_v31 = vpop.xlane.xlu0 %415  ;;  %v419_v32 = vpop.xlane.xlu1 %418 }
  0xcf   : > { %v431_v34 = vmul.f32 0.0625, %v416_v31  ;;  %v432_v35 = vmul.f32 0.0625, %v419_v32  ;;  %v444_v36 = vmul.f32 %v3217_v28, %v3217_v28  ;;  %v446_v37 = vmul.f32 %v3219_v29, %v3219_v29 }
  0xd1   : > { %v3227_v38 = vsub.f32 %v397_v8, %v431_v34  ;;  %v3229_v39 = vsub.f32 %v398_v9, %v432_v35  ;;  %v454_v40 = vsel %vm401_vm0, %v444_v36, 0.0  ;;  %v460_v43 = vsel %vm401_vm0, %v446_v37, 0.0 }
  0xd2   : > { %458 = vadd.xlane.f32.xlu0 %v457_v33  ;;  %455 = vadd.xlane.f32.xlu1 %v454_v40  ;;  %v422_v41 = vpop.xlane.xlu0 %421  ;;  %v425_v42 = vpop.xlane.xlu1 %424 }
  0xd3   : > { %v433_v44 = vmul.f32 0.0625, %v422_v41  ;;  %v434_v45 = vmul.f32 0.0625, %v425_v42  ;;  %v447_v46 = vmul.f32 %v3227_v38, %v3227_v38  ;;  %v448_v47 = vmul.f32 %v3229_v39, %v3229_v39 }
  0xd5   : > { %v3237_v48 = vsub.f32 %v399_v12, %v433_v44  ;;  %v3239_v49 = vsub.f32 %v400_v13, %v434_v45  ;;  %v463_v50 = vsel %vm401_vm0, %v447_v46, 0.0  ;;  %v466_v51 = vsel %vm401_vm0, %v448_v47, 0.0 }
  0xd6   : > { %461 = vadd.xlane.f32.xlu1 %v460_v43  ;;  %464 = vadd.xlane.f32.xlu0 %v463_v50 }
  0xd7   : > { %v449_v52 = vmul.f32 %v3237_v48, %v3237_v48  ;;  %v450_v53 = vmul.f32 %v3239_v49, %v3239_v49 }
  0xd9   : > { %v469_v54 = vsel %vm401_vm0, %v449_v52, 0.0  ;;  %v472_v55 = vsel %vm401_vm0, %v450_v53, 0.0 }
  0xda   : > { %467 = vadd.xlane.f32.xlu1 %v466_v51  ;;  %470 = vadd.xlane.f32.xlu0 %v469_v54 }
  0xde   : > { %473 = vadd.xlane.f32.xlu1 %v472_v55 }
 0x15b   : > { %v453_v59 = vpop.xlane.xlu0 %452 }
 0x15c   : > { %v475_v60 = vmul.f32 0.0625, %v453_v59 }
 0x15e   : > { %v483_v61 = vadd.f32 1e-05, %v475_v60 }
 0x15f   : > { %v456_v62 = vpop.xlane.xlu1 %455  ;;  %v459_v63 = vpop.xlane.xlu0 %458 }
 0x160   : > { %2870 = vrsqrt.f32 %v483_v61  ;;  %v476_v0 = vmul.f32 0.0625, %v456_v62  ;;  %v477_v1 = vmul.f32 0.0625, %v459_v63  ;;  %v2278_v61 = vld [vmem:[%s3661_s4] ss:$0 sm:$0xff] }
 0x162   : > { %v484_v2 = vadd.f32 1e-05, %v476_v0  ;;  %v485_v3 = vadd.f32 1e-05, %v477_v1 }
 0x163   : > { %v462_v4 = vpop.xlane.xlu1 %461  ;;  %v465_v5 = vpop.xlane.xlu0 %464 }
 0x164   : > { %2872 = vrsqrt.f32 %v484_v2  ;;  %v478_v6 = vmul.f32 0.0625, %v462_v4  ;;  %v479_v7 = vmul.f32 0.0625, %v465_v5 }
 0x165   : > { %2874 = vrsqrt.f32 %v485_v3 }
 0x166   : > { %v486_v8 = vadd.f32 1e-05, %v478_v6  ;;  %v487_v9 = vadd.f32 1e-05, %v479_v7 }
 0x167   : > { %v468_v10 = vpop.xlane.xlu1 %467  ;;  %v471_v11 = vpop.xlane.xlu0 %470 }
 0x168   : > { %2876 = vrsqrt.f32 %v486_v8  ;;  %v480_v12 = vmul.f32 0.0625, %v468_v10  ;;  %v481_v13 = vmul.f32 0.0625, %v471_v11 }
 0x169   : > { %2878 = vrsqrt.f32 %v487_v9 }
 0x16a   : > { %v2871_v14 = vpop.eup %2870  ;;  %v488_v15 = vadd.f32 1e-05, %v480_v12  ;;  %v489_v16 = vadd.f32 1e-05, %v481_v13 }
 0x16b   : > { %v474_v17 = vpop.xlane.xlu1 %473  ;;  %v499_v18 = vmul.f32 %v2871_v14, %v3209_v20  ;;  %v2277_v20 = vld [vmem:[%s3659_s2] ss:$0 sm:$0xff] }
 0x16c   : > { %2880 = vrsqrt.f32 %v488_v15  ;;  %v482_v19 = vmul.f32 0.0625, %v474_v17 }
 0x16d   : > { %2882 = vrsqrt.f32 %v489_v16  ;;  %v514_v27 = vmul.f32 %v2276_v22, %v499_v18 }
 0x16e   : > { %v2873_v23 = vpop.eup %2872  ;;  %v490_v24 = vadd.f32 1e-05, %v482_v19 }
 0x16f   : > { %v2875_v25 = vpop.eup %2874  ;;  %v500_v26 = vmul.f32 %v2873_v23, %v3217_v28  ;;  %v529_v35 = vadd.f32 %v2277_v20, %v514_v27 }
 0x170   : > { %v501_v30 = vmul.f32 %v2875_v25, %v3211_v21  ;;  %2884 = vrsqrt.f32 %v490_v24 }
 0x171   : > { %v515_v31 = vmul.f32 %v2276_v22, %v500_v26 }
 0x172   : > { %v2877_v32 = vpop.eup %2876  ;;  %v516_v37 = vmul.f32 %v2276_v22, %v501_v30 }
 0x173   : > { %v2879_v33 = vpop.eup %2878  ;;  %v502_v34 = vmul.f32 %v2877_v32, %v3219_v29  ;;  %v530_v36 = vadd.f32 %v2277_v20, %v515_v31 }
 0x174   : > { %v503_v40 = vmul.f32 %v2879_v33, %v3227_v38  ;;  %v531_v44 = vadd.f32 %v2277_v20, %v516_v37 }
 0x175   : > { %v562_v41 = vcombine.low %v529_v35, %v530_v36  ;;  %v517_v28 = vmul.f32 %v2276_v22, %v502_v34  ;;  %v2279_v59 = vcombine.high %v529_v35, %v530_v36 }
 0x176   : > { %v2881_v42 = vpop.eup %2880  ;;  %v518_v46 = vmul.f32 %v2276_v22, %v503_v40 }
 0x177   : > { %v2883_v43 = vpop.eup %2882  ;;  %v504_v21 = vmul.f32 %v2881_v42, %v3229_v39  ;;  %2462 = vmatprep.mubr.msk.f32.mxu0 %vm401_vm0, %v562_v41  ;;  %v532_v45 = vadd.f32 %v2277_v20, %v517_v28 }
 0x178   : > { %v505_v47 = vmul.f32 %v2883_v43, %v3237_v48  ;;  %v533_v38 = vadd.f32 %v2277_v20, %v518_v46 }
 0x179   : > { %v563_v50 = vcombine.low %v531_v44, %v532_v45  ;;  %v519_v29 = vmul.f32 %v2276_v22, %v504_v21  ;;  %v2280_v48 = vcombine.high %v531_v44, %v532_v45 }
 0x17a   : > { %v2885_v51 = vpop.eup %2884  ;;  %v520_v54 = vmul.f32 %v2276_v22, %v505_v47 }
 0x17b   : > { %v506_v52 = vmul.f32 %v2885_v51, %v3239_v49  ;;  %2463 = vmatmul.mubr.msk.f32.vlgmr.msra.gmra.mrb[0].mxu0 %vm401_vm0, %v563_v50  ;;  %v534_v53 = vadd.f32 %v2277_v20, %v519_v29 }
 0x17c   : > { %v535_v39 = vadd.f32 %v2277_v20, %v520_v54 }
 0x17d   : > { %v564_v55 = vcombine.low %v533_v38, %v534_v53  ;;  %v521_v56 = vmul.f32 %v2276_v22, %v506_v52  ;;  %v2281_v60 = vcombine.high %v533_v38, %v534_v53 }
 0x17f   : > { %2465 = vmatprep.mubr.msk.f32.mxu0 %vm401_vm0, %v564_v55  ;;  %v536_v57 = vadd.f32 %v2277_v20, %v521_v56 }
 0x181   : > { %v565_v58 = vcombine.low %v535_v39, %v536_v57  ;;  %v2282_v49 = vcombine.high %v535_v39, %v536_v57 }
 0x183   : > { %2466 = vmatmul.mubr.msk.f32.gmra.mrb[2].mxu0 %vm401_vm0, %v565_v58 }
 0x184   : > { %2468 = vmatprep.mubr.msk.f32.mxu0 %vm401_vm0, %v2279_v59 }
 0x187   : > { %2469 = vmatmul.mubr.msk.f32.gmra.mrb[4].mxu0 %vm401_vm0, %v2280_v48 }
 0x188   : > { %2471 = vmatprep.mubr.msk.f32.mxu0 %vm401_vm0, %v2281_v60 }
 0x18b   : > { %2472 = vmatmul.mubr.msk.f32.gmra.mrb[6].mxu0 %vm401_vm0, %v2282_v49  ;;  %v692_v49 = vld [vmem:[%s3664_s7 + $0x8] sm:$0xff] }
 0x24e   : > { %v2464_v62 = vpop.f32.mrb[0].mxu0 }
 0x24f   : > { %v3280_v63 = vadd.f32 %v2464_v62, %v2278_v61  ;;  %v652_v0 = vpop.f32.mrb[1].mxu0 }
 0x250   : > { %v3282_v1 = vadd.f32 %v2278_v61, %v652_v0 }
 0x252   : > { %2482 = vmatprep.mubr.msk.f32.mxu0 %vm713_vm1, %v3282_v1  ;;  %v3288_v2 = vpack.i.bf16 %v3280_v63, %v3282_v1 }
 0x254   : > { %2791 = vrot.lane.b32.xlu0 %v3288_v2, %s3032_s21 }
 0x256   : > { %v2467_v3 = vpop.f32.mrb[2].mxu0 }
 0x257   : > { %v3291_v4 = vadd.f32 %v2467_v3, %v2278_v61  ;;  %v662_v5 = vpop.f32.mrb[3].mxu0 }
 0x258   : > { %v3293_v6 = vadd.f32 %v2278_v61, %v662_v5  ;;  %2811 = vrot.lane.b32.xlu0 %v3288_v2, %s3033_s23 }
 0x25a   : > { %v2470_v7 = vpop.f32.mrb[4].mxu0  ;;  %v3298_v8 = vpack.i.bf16 %v3291_v4, %v3293_v6 }
 0x25b   : > { %v3300_v9 = vadd.f32 %v2470_v7, %v2278_v61  ;;  %v672_v10 = vpop.f32.mrb[5].mxu0  ;;  %v694_v7 = vld [vmem:[%s3664_s7 + $0x18] sm:$0xff] }
 0x25c   : > { %v3302_v11 = vadd.f32 %v2278_v61, %v672_v10  ;;  %2796 = vrot.lane.b32.xlu1 %v3298_v8, %s3032_s21 }
 0x25e   : > { %v2473_v12 = vpop.f32.mrb[6].mxu0  ;;  %v3307_v13 = vpack.i.bf16 %v3300_v9, %v3302_v11 }
 0x25f   : > { %v3309_v14 = vadd.f32 %v2473_v12, %v2278_v61  ;;  %v682_v15 = vpop.f32.mrb[7].mxu0  ;;  %v693_v12 = vld [vmem:[%s3664_s7 + $0x10] sm:$0xff] }
 0x260   : > { %v3311_v16 = vadd.f32 %v2278_v61, %v682_v15  ;;  %2821 = vrot.lane.b32.xlu0 %v3307_v13, %s3033_s23  ;;  %2801 = vrot.lane.b32.xlu1 %v3307_v13, %s3032_s21  ;;  %v691_v61 = vld [vmem:[%s3664_s7] sm:$0xff] }
 0x262   : > { %v3317_v17 = vpack.i.bf16 %v3309_v14, %v3311_v16 }
 0x264   : > { %2836 = vrot.lane.b32.xlu0 %v3307_v13, %s3034_s10  ;;  %2806 = vrot.lane.b32.xlu1 %v3317_v17, %s3032_s21 }
 0x268   : > { %2816 = vrot.lane.b32.xlu1 %v3298_v8, %s3033_s23 }
 0x26c   : > { %2826 = vrot.lane.b32.xlu1 %v3288_v2, %s3034_s10 }
 0x270   : > { %2831 = vrot.lane.b32.xlu1 %v3298_v8, %s3034_s10 }
 0x274   : > { %2841 = vrot.lane.b32.xlu1 %v3317_v17, %s3033_s23 }
 0x278   : > { %2846 = vrot.lane.b32.xlu1 %v3317_v17, %s3034_s10 }
 0x2c6   : > { %v2792_v18 = vpop.permute.xlu0 %2791 }
 0x2c7   : > { %v2794_v19 = vunpack.i.h.bf16 %v2792_v18  ;;  %v2793_v22 = vunpack.i.l.bf16 %v2792_v18 }
 0x2c9   : > { %v2618_v24 = vpack.c.bf16 %v2794_v19, %v2793_v22 }
 0x2ca   : > { %v2812_v25 = vpop.permute.xlu0 %2811 }
 0x2cb   : > { %v2814_v26 = vunpack.i.h.bf16 %v2812_v25  ;;  %v2813_v27 = vunpack.i.l.bf16 %v2812_v25  ;;  %2620 = vmatprep.subr.msk.bf16.mxu0 %vm3328_vm2, %v2618_v24 }
 0x2cc   : > { %2623 = vmatpush3.bf16.xpose.msk.msra.mxu0 %vm3328_vm2, %v2618_v24 }
 0x2cd   : > { %v2642_v30 = vpack.c.bf16 %v2814_v26, %v2813_v27 }
 0x2ce   : > { %v2797_v20 = vpop.permute.xlu1 %2796 }
 0x2cf   : > { %v2799_v31 = vunpack.i.h.bf16 %v2797_v20  ;;  %v2798_v32 = vunpack.i.l.bf16 %v2797_v20  ;;  %2643 = vmatprep.subr.bf16.mxu1 %v2642_v30 }
 0x2d0   : > { %2645 = vmatpush3.bf16.msra.mxu1 %v2642_v30 }
 0x2d1   : > { %v2624_v33 = vpack.c.bf16 %v2799_v31, %v2798_v32 }
 0x2d2   : > { %v2802_v34 = vpop.permute.xlu1 %2801  ;;  %v2822_v45 = vpop.permute.xlu0 %2821 }
 0x2d3   : > { %v2804_v35 = vunpack.i.h.bf16 %v2802_v34  ;;  %v2803_v36 = vunpack.i.l.bf16 %v2802_v34  ;;  %2626 = vmatprep.subr.msk.bf16.mxu0 %vm3328_vm2, %v2624_v33  ;;  %v2824_v50 = vunpack.i.h.bf16 %v2822_v45  ;;  %v2823_v29 = vunpack.i.l.bf16 %v2822_v45 }
 0x2d4   : > { %2629 = vmatpush3.bf16.xpose.msk.msra.mxu0 %vm3328_vm2, %v2624_v33 }
 0x2d5   : > { %v2630_v37 = vpack.c.bf16 %v2804_v35, %v2803_v36  ;;  %v2650_v54 = vpack.c.bf16 %v2824_v50, %v2823_v29 }
 0x2d6   : > { %v2807_v40 = vpop.permute.xlu1 %2806  ;;  %v2837_v57 = vpop.permute.xlu0 %2836 }
 0x2d7   : > { %v2809_v41 = vunpack.i.h.bf16 %v2807_v40  ;;  %v2808_v28 = vunpack.i.l.bf16 %v2807_v40  ;;  %2632 = vmatprep.subr.msk.bf16.mxu0 %vm3328_vm2, %v2630_v37  ;;  %v2839_v58 = vunpack.i.h.bf16 %v2837_v57  ;;  %v2838_v59 = vunpack.i.l.bf16 %v2837_v57 }
 0x2d9   : > { %v2636_v43 = vpack.c.bf16 %v2809_v41, %v2808_v28  ;;  %v3367_v60 = vpack.c.bf16 %v2839_v58, %v2838_v59 }
 0x2da   : > { %v2817_v42 = vpop.permute.xlu1 %2816 }
 0x2db   : > { %v2819_v21 = vunpack.i.h.bf16 %v2817_v42  ;;  %v2818_v44 = vunpack.i.l.bf16 %v2817_v42  ;;  %2483 = vmatmul.mubr.msk.f32.vlgmr.msra.gmra.mrb[8].mxu0 %vm713_vm1, %v3280_v63 }
 0x2dc   : > { %2485 = vmatprep.mubr.msk.f32.mxu0 %vm713_vm1, %v3293_v6  ;;  %2635 = vmatpush3.bf16.xpose.msk.msra.mxu0 %vm3328_vm2, %v2630_v37 }
 0x2dd   : > { %v2646_v46 = vpack.c.bf16 %v2819_v21, %v2818_v44  ;;  %2638 = vmatprep.subr.msk.bf16.mxu0 %vm3328_vm2, %v2636_v43 }
 0x2de   : > { %v2827_v47 = vpop.permute.xlu1 %2826 }
 0x2df   : > { %v2829_v51 = vunpack.i.h.bf16 %v2827_v47  ;;  %v2828_v52 = vunpack.i.l.bf16 %v2827_v47  ;;  %2486 = vmatmul.mubr.msk.f32.gmra.mrb[10].mxu0 %vm713_vm1, %v3291_v4  ;;  %2647 = vmatprep.subr.bf16.mxu1 %v2646_v46 }
 0x2e0   : > { %2496 = vmatprep.mubr.msk.f32.mxu0 %vm713_vm1, %v3302_v11  ;;  %2649 = vmatpush3.bf16.msra.mxu1 %v2646_v46 }
 0x2e1   : > { %v3354_v38 = vpack.c.bf16 %v2829_v51, %v2828_v52 }
 0x2e2   : > { %v3356_v53 = vpop.permute.xlu1 %2831 }
 0x2e3   : > { %2660 = vmatprep.subr.msk.bf16.mxu1 %vm3328_vm2, %v3354_v38 }
 0x2e4   : > { %2641 = vmatpush3.bf16.xpose.msk.msra.mxu0 %vm3328_vm2, %v2636_v43 }
 0x2e5   : > { %2651 = vmatprep.subr.bf16.mxu0 %v2650_v54 }
 0x2e6   : > { %v2842_v55 = vpop.permute.xlu1 %2841 }
 0x2e7   : > { %v2844_v56 = vunpack.i.h.bf16 %v2842_v55  ;;  %v2843_v39 = vunpack.i.l.bf16 %v2842_v55 }
 0x2e9   : > { %v2654_v48 = vpack.c.bf16 %v2844_v56, %v2843_v39 }
 0x2ea   : > { %v3401_v28 = vpop.permute.xlu1 %2846 }
 0x2eb   : > { %2497 = vmatmul.mubr.msk.f32.vlgmr.msra.gmra.mrb[12].mxu0 %vm713_vm1, %v3300_v9 }
 0x2ec   : > { %2499 = vmatprep.mubr.msk.f32.mxu0 %vm713_vm1, %v3311_v16  ;;  %2653 = vmatpush3.bf16.msra.mxu0 %v2650_v54 }
 0x2ed   : > { %2655 = vmatprep.subr.bf16.mxu0 %v2654_v48 }
 0x2ef   : > { %2500 = vmatmul.mubr.msk.f32.gmra.mrb[14].mxu0 %vm713_vm1, %v3309_v14 }
 0x2f0   : > { %2657 = vmatpush3.bf16.msra.mxu0 %v2654_v48 }
 0x2f1   : > { %2672 = vmatprep.subr.msk.bf16.mxu0 %vm3328_vm2, %v3367_v60 }
 0x3ae   : > { %v2484_v62 = vpop.f32.mrb[8].mxu0 }
 0x3af   : > { %v802_v0 = vadd.f32 %v2484_v62, %v692_v49  ;;  %v796_v3 = vpop.f32.mrb[9].mxu0 }
 0x3b0   : > { %v797_v5 = vadd.f32 %v796_v3, %v691_v61 }
 0x3b1   : > { %v932_v10 = vsel %vm928_vm3, %v802_v0, -inf }
 0x3b2   : > { %933 = vmax.xlane.f32.xlu1 %v932_v10  ;;  %v2487_v15 = vpop.f32.mrb[10].mxu0  ;;  %v929_v18 = vsel %vm928_vm3, %v797_v5, -inf }
 0x3b3   : > { %v812_v19 = vadd.f32 %v2487_v15, %v694_v7  ;;  %v806_v22 = vpop.f32.mrb[11].mxu0  ;;  %930 = vmax.xlane.f32.xlu0 %v929_v18 }
 0x3b4   : > { %v807_v24 = vadd.f32 %v806_v22, %v693_v12 }
 0x3b5   : > { %v938_v25 = vsel %vm928_vm3, %v812_v19, -inf }
 0x3b6   : > { %939 = vmax.xlane.f32.xlu1 %v938_v25  ;;  %v935_v26 = vsel %vm928_vm3, %v807_v24, -inf }
 0x3b7   : > { %936 = vmax.xlane.f32.xlu0 %v935_v26 }
 0x3be   : > { %v2498_v27 = vpop.f32.mrb[12].mxu0 }
 0x3bf   : > { %v915_v30 = vadd.f32 %v2498_v27, %v692_v49  ;;  %v909_v20 = vpop.f32.mrb[13].mxu0 }
 0x3c0   : > { %v910_v31 = vadd.f32 %v909_v20, %v691_v61 }
 0x3c1   : > { %v944_v32 = vsel %vm928_vm3, %v915_v30, -inf }
 0x3c2   : > { %v2501_v33 = vpop.f32.mrb[14].mxu0  ;;  %945 = vmax.xlane.f32.xlu0 %v944_v32  ;;  %v941_v40 = vsel %vm928_vm3, %v910_v31, -inf }
 0x3c3   : > { %v3391_v34 = vadd.f32 %v2501_v33, %v694_v7  ;;  %v919_v35 = vpop.f32.mrb[15].mxu0 }
 0x3c4   : > { %v920_v36 = vadd.f32 %v919_v35, %v693_v12 }
 0x3c5   : > { %v950_v37 = vsel %vm928_vm3, %v3391_v34, -inf }
 0x3c6   : > { %951 = vmax.xlane.f32.xlu1 %v950_v37  ;;  %942 = vmax.xlane.f32.xlu0 %v941_v40  ;;  %v947_v41 = vsel %vm928_vm3, %v920_v36, -inf }
 0x3ca   : > { %948 = vmax.xlane.f32.xlu0 %v947_v41 }
 0x3d7   : > { %1237 = vrot.lane.b32.xlu1 %v3280_v63, %s3035_s15 }
 0x3e0   : > { %1235 = vrot.lane.b32.xlu0 %v3282_v1, %s3035_s15 }
 0x43f   : > { %v934_v42 = vpop.xlane.xlu1 %933 }
 0x440   : > { %v954_v43 = vsub.f32 %v802_v0, %v934_v42  ;;  %v931_v21 = vpop.xlane.xlu0 %930 }
 0x441   : > { %v953_v44 = vsub.f32 %v797_v5, %v931_v21 }
 0x442   : > { %v963_v45 = vmul.f32 1.442695, %v954_v43 }
 0x443   : > { %v961_v46 = vmul.f32 1.442695, %v953_v44  ;;  %v940_v47 = vpop.xlane.xlu1 %939 }
 0x444   : > { %2886 = vpow2.f32 %v963_v45  ;;  %v956_v50 = vsub.f32 %v812_v19, %v940_v47  ;;  %v937_v29 = vpop.xlane.xlu0 %936  ;;  %v2849_v45 = vunpack.i.h.bf16 %v3401_v28 }
 0x445   : > { %2888 = vpow2.f32 %v961_v46  ;;  %v955_v51 = vsub.f32 %v807_v24, %v937_v29  ;;  %v2848_v46 = vunpack.i.l.bf16 %v3401_v28 }
 0x446   : > { %v967_v52 = vmul.f32 1.442695, %v956_v50 }
 0x447   : > { %v965_v54 = vmul.f32 1.442695, %v955_v51 }
 0x448   : > { %2890 = vpow2.f32 %v967_v52  ;;  %v2676_v52 = vpack.c.bf16 %v2849_v45, %v2848_v46 }
 0x449   : > { %2892 = vpow2.f32 %v965_v54 }
 0x44e   : > { %v2887_v63 = vpop.eup %2886 }
 0x44f   : > { %v2889_v1 = vpop.eup %2888  ;;  %v946_v55 = vpop.xlane.xlu0 %945  ;;  %v980_v56 = vsel %vm928_vm3, %v2887_v63, 0.0 }
 0x450   : > { %v958_v39 = vsub.f32 %v915_v30, %v946_v55  ;;  %981 = vadd.xlane.f32.xlu1 %v980_v56  ;;  %v977_v57 = vsel %vm928_vm3, %v2889_v1, 0.0 }
 0x451   : > { %978 = vadd.xlane.f32.xlu0 %v977_v57 }
 0x452   : > { %v3405_v58 = vpop.eup %2890  ;;  %v971_v59 = vmul.f32 1.442695, %v958_v39 }
 0x453   : > { %v2893_v48 = vpop.eup %2892  ;;  %v943_v49 = vpop.xlane.xlu0 %942  ;;  %v986_v61 = vsel %vm928_vm3, %v3405_v58, 0.0 }
 0x454   : > { %2894 = vpow2.f32 %v971_v59  ;;  %v957_v62 = vsub.f32 %v910_v31, %v943_v49  ;;  %987 = vadd.xlane.f32.xlu1 %v986_v61  ;;  %v983_v0 = vsel %vm928_vm3, %v2893_v48, 0.0  ;;  %v952_v18 = vpop.xlane.xlu1 %951  ;;  %v696_v61 = vld [vmem:[%s3664_s7 + $0x28] sm:$0xff] }
 0x455   : > { %984 = vadd.xlane.f32.xlu0 %v983_v0  ;;  %v960_v22 = vsub.f32 %v3391_v34, %v952_v18 }
 0x456   : > { %v969_v3 = vmul.f32 1.442695, %v957_v62  ;;  %v695_v62 = vld [vmem:[%s3664_s7 + $0x20] sm:$0xff] }
 0x457   : > { %v949_v15 = vpop.xlane.xlu0 %948  ;;  %v975_v25 = vmul.f32 1.442695, %v960_v22 }
 0x458   : > { %2896 = vpow2.f32 %v969_v3  ;;  %v959_v19 = vsub.f32 %v920_v36, %v949_v15  ;;  %v2833_v36 = vunpack.i.l.bf16 %v3356_v53 }
 0x45a   : > { %v973_v24 = vmul.f32 1.442695, %v959_v19 }
 0x45b   : > { %v1236_v30 = vpop.permute.xlu0 %1235 }
 0x45c   : > { %2898 = vpow2.f32 %v973_v24 }
 0x45d   : > { %2900 = vpow2.f32 %v975_v25 }
 0x45e   : > { %v3410_v5 = vpop.eup %2894 }
 0x45f   : > { %v992_v7 = vsel %vm928_vm3, %v3410_v5, 0.0 }
 0x460   : > { %993 = vadd.xlane.f32.xlu1 %v992_v7 }
 0x462   : > { %v3414_v10 = vpop.eup %2896 }
 0x463   : > { %v989_v12 = vsel %vm928_vm3, %v3414_v10, 0.0 }
 0x464   : > { %990 = vadd.xlane.f32.xlu0 %v989_v12 }
 0x466   : > { %v3425_v26 = vpop.eup %2898 }
 0x467   : > { %v3427_v27 = vpop.eup %2900 }
 0x471   : > { %1241 = vrot.lane.b32.xlu1 %v3291_v4, %s3035_s15  ;;  %v995_v4 = vsel %vm928_vm3, %v3425_v26, 0.0 }
 0x475   : > { %1354 = vrot.lane.b32.xlu1 %v3300_v9, %s3035_s15  ;;  %v998_v9 = vsel %vm928_vm3, %v3427_v27, 0.0 }
 0x47a   : > { %1239 = vrot.lane.b32.xlu0 %v3293_v6, %s3035_s15  ;;  %v1238_v6 = vpop.permute.xlu1 %1237 }
 0x499   : > { %996 = vadd.xlane.f32.xlu1 %v995_v4  ;;  %999 = vadd.xlane.f32.xlu0 %v998_v9 }
 0x4aa   : > { %1358 = vrot.lane.b32.xlu1 %v3309_v14, %s3035_s15  ;;  %v2834_v14 = vunpack.i.h.bf16 %v3356_v53 }
 0x4ac   : > { %v2664_v41 = vpack.c.bf16 %v2834_v14, %v2833_v36 }
 0x4af   : > { %1352 = vrot.lane.b32.xlu0 %v3302_v11, %s3035_s15 }
 0x4b3   : > { %1356 = vrot.lane.b32.xlu0 %v3311_v16, %s3035_s15 }
 0x4dd   : > { %v982_v20 = vpop.xlane.xlu1 %981 }
 0x4de   : > { %2902 = vrcp.f32 %v982_v20  ;;  %v979_v31 = vpop.xlane.xlu0 %978 }
 0x4df   : > { %2904 = vrcp.f32 %v979_v31 }
 0x4e1   : > { %v988_v32 = vpop.xlane.xlu1 %987 }
 0x4e2   : > { %2906 = vrcp.f32 %v988_v32  ;;  %v985_v33 = vpop.xlane.xlu0 %984 }
 0x4e3   : > { %2908 = vrcp.f32 %v985_v33 }
 0x4e8   : > { %v2903_v34 = vpop.eup %2902 }
 0x4e9   : > { %v2905_v35 = vpop.eup %2904  ;;  %v1004_v37 = vmul.f32 %v2903_v34, %v2887_v63 }
 0x4ea   : > { %v1002_v11 = vmul.f32 %v2905_v35, %v2889_v1 }
 0x4ec   : > { %v2907_v40 = vpop.eup %2906  ;;  %2510 = vmatprep.mubr.msk.f32.mxu1 %vm928_vm3, %v1002_v11 }
 0x4ed   : > { %v2909_v16 = vpop.eup %2908  ;;  %2511 = vmatmul.mubr.msk.f32.vlgmr.msra.gmra.mrb[0].mxu1 %vm928_vm3, %v1004_v37  ;;  %v994_v43 = vpop.xlane.xlu1 %993  ;;  %v1008_v53 = vmul.f32 %v2907_v40, %v3405_v58 }
 0x4ee   : > { %2663 = vmatpush3.bf16.xpose.msk.msra.mxu1 %vm3328_vm2, %v3354_v38  ;;  %v1006_v42 = vmul.f32 %v2909_v16, %v2893_v48  ;;  %2910 = vrcp.f32 %v994_v43 }
 0x4ef   : > { %2666 = vmatprep.subr.msk.bf16.mxu1 %vm3328_vm2, %v2664_v41 }
 0x4f0   : > { %2513 = vmatprep.mubr.msk.f32.mxu1 %vm928_vm3, %v1006_v42 }
 0x4f1   : > { %2514 = vmatmul.mubr.msk.f32.gmra.mrb[2].mxu1 %vm928_vm3, %v1008_v53  ;;  %v991_v21 = vpop.xlane.xlu0 %990  ;;  %v1242_v51 = vpop.permute.xlu1 %1241 }
 0x4f2   : > { %2538 = vmatprep.mubr.msk.f32.mxu1 %vm713_vm1, %v1236_v30  ;;  %2912 = vrcp.f32 %v991_v21 }
 0x4f5   : > { %v1240_v47 = vpop.permute.xlu0 %1239  ;;  %v1355_v28 = vpop.permute.xlu1 %1354 }
 0x4f6   : > { %2669 = vmatpush3.bf16.xpose.msk.msra.mxu1 %vm3328_vm2, %v2664_v41 }
 0x4f8   : > { %v2911_v38 = vpop.eup %2910 }
 0x4f9   : > { %v1012_v29 = vmul.f32 %v2911_v38, %v3410_v5 }
 0x4fc   : > { %v2913_v44 = vpop.eup %2912 }
 0x4fd   : > { %2539 = vmatmul.mubr.msk.f32.vlgmr.msra.gmra.mrb[4].mxu1 %vm713_vm1, %v1238_v6  ;;  %v1010_v50 = vmul.f32 %v2913_v44, %v3414_v10  ;;  %v698_v10 = vld [vmem:[%s3664_s7 + $0x38] sm:$0xff] }
 0x4fe   : > { %2541 = vmatprep.mubr.msk.f32.mxu1 %vm713_vm1, %v1240_v47 }
 0x4ff   : > { %2524 = vmatprep.mubr.msk.f32.mxu0 %vm928_vm3, %v1010_v50 }
 0x500   : > { %2525 = vmatmul.mubr.msk.f32.vlgmr.msra.gmra.mrb[16].mxu0 %vm928_vm3, %v1012_v29 }
 0x501   : > { %2542 = vmatmul.mubr.msk.f32.gmra.mrb[6].mxu1 %vm713_vm1, %v1242_v51  ;;  %2675 = vmatpush3.bf16.xpose.msk.msra.mxu0 %vm3328_vm2, %v3367_v60 }
 0x502   : > { %2678 = vmatprep.subr.msk.bf16.mxu0 %vm3328_vm2, %v2676_v52 }
 0x509   : > { %2681 = vmatpush3.bf16.xpose.msk.msra.mxu0 %vm3328_vm2, %v2676_v52 }
 0x526   : > { %v997_v54 = vpop.xlane.xlu1 %996  ;;  %v1000_v63 = vpop.xlane.xlu0 %999 }
 0x527   : > { %2914 = vrcp.f32 %v997_v54 }
 0x528   : > { %2916 = vrcp.f32 %v1000_v63 }
 0x52a   : > { %v1353_v39 = vpop.permute.xlu0 %1352  ;;  %v1359_v60 = vpop.permute.xlu1 %1358 }
 0x52e   : > { %v1357_v23 = vpop.permute.xlu0 %1356 }
 0x531   : > { %v2915_v1 = vpop.eup %2914 }
 0x532   : > { %v2917_v55 = vpop.eup %2916  ;;  %v1014_v56 = vmul.f32 %v2915_v1, %v3425_v26  ;;  %v697_v26 = vld [vmem:[%s3664_s7 + $0x30] sm:$0xff] }
 0x533   : > { %v1016_v57 = vmul.f32 %v2917_v55, %v3427_v27 }
 0x534   : > { %2527 = vmatprep.mubr.msk.f32.mxu0 %vm928_vm3, %v1014_v56 }
 0x535   : > { %2528 = vmatmul.mubr.msk.f32.gmra.mrb[18].mxu0 %vm928_vm3, %v1016_v57 }
 0x536   : > { %2552 = vmatprep.mubr.msk.f32.mxu0 %vm713_vm1, %v1353_v39 }
 0x539   : > { %2553 = vmatmul.mubr.msk.f32.vlgmr.msra.gmra.mrb[20].mxu0 %vm713_vm1, %v1355_v28 }
 0x53a   : > { %2555 = vmatprep.mubr.msk.f32.mxu0 %vm713_vm1, %v1357_v23 }
 0x53d   : > { %2556 = vmatmul.mubr.msk.f32.gmra.mrb[22].mxu0 %vm713_vm1, %v1359_v60 }
 0x5c0   : > { %v3478_v58 = vpop.f32.mrb[0].mxu1 }
 0x5c1   : > { %v3480_v59 = vpop.f32.mrb[1].mxu1 }
 0x5c4   : > { %v3482_v48 = vpop.f32.mrb[2].mxu1 }
 0x5c5   : > { %v3484_v49 = vpop.f32.mrb[3].mxu1 }
 0x5d0   : > { %v2540_v0 = vpop.f32.mrb[4].mxu1 }
 0x5d1   : > { %v1339_v3 = vadd.f32 %v2540_v0, %v696_v61  ;;  %v1333_v5 = vpop.f32.mrb[5].mxu1 }
 0x5d2   : > { %v1334_v7 = vadd.f32 %v1333_v5, %v695_v62 }
 0x5d3   : > { %v1472_v12 = vsel %vm928_vm3, %v1339_v3, -inf  ;;  %v3496_v15 = vpop.f32.mrb[16].mxu0 }
 0x5d4   : > { %1473 = vmax.xlane.f32.xlu1 %v1472_v12  ;;  %v2543_v18 = vpop.f32.mrb[6].mxu1  ;;  %v1469_v19 = vsel %vm928_vm3, %v1334_v7, -inf  ;;  %v3499_v24 = vpop.f32.mrb[17].mxu0 }
 0x5d5   : > { %v1349_v22 = vadd.f32 %v2543_v18, %v698_v10  ;;  %1470 = vmax.xlane.f32.xlu0 %v1469_v19  ;;  %v1343_v25 = vpop.f32.mrb[7].mxu1 }
 0x5d6   : > { %v1344_v4 = vadd.f32 %v1343_v25, %v697_v26 }
 0x5d7   : > { %v1478_v27 = vsel %vm928_vm3, %v1349_v22, -inf }
 0x5d8   : > { %v1475_v9 = vsel %vm928_vm3, %v1344_v4, -inf }
 0x5d9   : > { %1479 = vmax.xlane.f32.xlu0 %v1478_v27 }
 0x5dd   : > { %1476 = vmax.xlane.f32.xlu0 %v1475_v9 }
 0x608   : > { %v3506_v6 = vpop.f32.mrb[18].mxu0 }
 0x609   : > { %v3508_v30 = vpop.f32.mrb[19].mxu0 }
 0x60c   : > { %v2554_v20 = vpop.f32.mrb[20].mxu0 }
 0x60d   : > { %v1456_v31 = vadd.f32 %v2554_v20, %v696_v61  ;;  %v1450_v32 = vpop.f32.mrb[21].mxu0 }
 0x60e   : > { %v1451_v33 = vadd.f32 %v1450_v32, %v695_v62 }
 0x60f   : > { %v1484_v34 = vsel %vm928_vm3, %v1456_v31, -inf }
 0x610   : > { %1485 = vmax.xlane.f32.xlu1 %v1484_v34  ;;  %v2557_v35 = vpop.f32.mrb[22].mxu0  ;;  %v1481_v14 = vsel %vm928_vm3, %v1451_v33, -inf }
 0x611   : > { %v1466_v36 = vadd.f32 %v2557_v35, %v698_v10  ;;  %1482 = vmax.xlane.f32.xlu0 %v1481_v14  ;;  %v1460_v11 = vpop.f32.mrb[23].mxu0 }
 0x612   : > { %v1461_v37 = vadd.f32 %v1460_v11, %v697_v26 }
 0x613   : > { %v1490_v40 = vsel %vm928_vm3, %v1466_v36, -inf }
 0x614   : > { %1491 = vmax.xlane.f32.xlu1 %v1490_v40  ;;  %v1487_v16 = vsel %vm928_vm3, %v1461_v37, -inf }
 0x615   : > { %1488 = vmax.xlane.f32.xlu0 %v1487_v16 }
 0x661   : > { %v1474_v41 = vpop.xlane.xlu1 %1473 }
 0x662   : > { %v1494_v42 = vsub.f32 %v1339_v3, %v1474_v41  ;;  %v1471_v43 = vpop.xlane.xlu0 %1470 }
 0x663   : > { %v1493_v53 = vsub.f32 %v1334_v7, %v1471_v43 }
 0x664   : > { %v1503_v21 = vmul.f32 1.442695, %v1494_v42 }
 0x665   : > { %v1501_v38 = vmul.f32 1.442695, %v1493_v53 }
 0x666   : > { %2918 = vpow2.f32 %v1503_v21  ;;  %v1480_v44 = vpop.xlane.xlu0 %1479 }
 0x667   : > { %2920 = vpow2.f32 %v1501_v38  ;;  %v1496_v45 = vsub.f32 %v1349_v22, %v1480_v44 }
 0x669   : > { %v1507_v46 = vmul.f32 1.442695, %v1496_v45 }
 0x66a   : > { %v1477_v47 = vpop.xlane.xlu0 %1476 }
 0x66b   : > { %2922 = vpow2.f32 %v1507_v46  ;;  %v1495_v50 = vsub.f32 %v1344_v4, %v1477_v47 }
 0x66d   : > { %v1505_v29 = vmul.f32 1.442695, %v1495_v50 }
 0x66f   : > { %2924 = vpow2.f32 %v1505_v29 }
 0x670   : > { %v3514_v51 = vpop.eup %2918 }
 0x671   : > { %v2921_v52 = vpop.eup %2920  ;;  %v1520_v28 = vsel %vm928_vm3, %v3514_v51, 0.0 }
 0x672   : > { %1521 = vadd.xlane.f32.xlu1 %v1520_v28  ;;  %v1517_v54 = vsel %vm928_vm3, %v2921_v52, 0.0  ;;  %v700_v28 = vld [vmem:[%s3662_s5 + $0x8] sm:$0xff] }
 0x673   : > { %1518 = vadd.xlane.f32.xlu0 %v1517_v54 }
 0x675   : > { %v3519_v63 = vpop.eup %2922 }
 0x676   : > { %v1526_v1 = vsel %vm928_vm3, %v3519_v63, 0.0 }
 0x677   : > { %1527 = vadd.xlane.f32.xlu1 %v1526_v1 }
 0x679   : > { %v3523_v55 = vpop.eup %2924 }
 0x67a   : > { %v1523_v56 = vsel %vm928_vm3, %v3523_v55, 0.0 }
 0x67b   : > { %1524 = vadd.xlane.f32.xlu0 %v1523_v56 }
 0x69d   : > { %v1486_v39 = vpop.xlane.xlu1 %1485 }
 0x69e   : > { %v1498_v57 = vsub.f32 %v1456_v31, %v1486_v39  ;;  %v1483_v23 = vpop.xlane.xlu0 %1482 }
 0x69f   : > { %v1497_v60 = vsub.f32 %v1451_v33, %v1483_v23 }
 0x6a0   : > { %v1511_v61 = vmul.f32 1.442695, %v1498_v57 }
 0x6a1   : > { %v1509_v62 = vmul.f32 1.442695, %v1497_v60  ;;  %v1492_v0 = vpop.xlane.xlu1 %1491 }
 0x6a2   : > { %2926 = vpow2.f32 %v1511_v61  ;;  %v1500_v3 = vsub.f32 %v1466_v36, %v1492_v0  ;;  %v1489_v5 = vpop.xlane.xlu0 %1488 }
 0x6a3   : > { %2928 = vpow2.f32 %v1509_v62  ;;  %v1499_v7 = vsub.f32 %v1461_v37, %v1489_v5 }
 0x6a4   : > { %v1515_v10 = vmul.f32 1.442695, %v1500_v3 }
 0x6a5   : > { %v1513_v12 = vmul.f32 1.442695, %v1499_v7 }
 0x6a6   : > { %2930 = vpow2.f32 %v1515_v10 }
 0x6a7   : > { %2932 = vpow2.f32 %v1513_v12 }
 0x6ac   : > { %v3527_v18 = vpop.eup %2926 }
 0x6ad   : > { %v2929_v19 = vpop.eup %2928  ;;  %v1532_v22 = vsel %vm928_vm3, %v3527_v18, 0.0 }
 0x6ae   : > { %1533 = vadd.xlane.f32.xlu1 %v1532_v22  ;;  %v1529_v25 = vsel %vm928_vm3, %v2929_v19, 0.0 }
 0x6af   : > { %1530 = vadd.xlane.f32.xlu0 %v1529_v25 }
 0x6b0   : > { %v3532_v26 = vpop.eup %2930 }
 0x6b1   : > { %v3534_v27 = vpop.eup %2932  ;;  %v1538_v4 = vsel %vm928_vm3, %v3532_v26, 0.0 }
 0x6b2   : > { %1539 = vadd.xlane.f32.xlu1 %v1538_v4  ;;  %v1535_v9 = vsel %vm928_vm3, %v3534_v27, 0.0 }
 0x6b3   : > { %1536 = vadd.xlane.f32.xlu0 %v1535_v9 }
 0x6c3   : > { %2856 = vrot.lane.b32.xlu1 %v3298_v8, %s3036_s18 }
 0x6c7   : > { %2861 = vrot.lane.b32.xlu1 %v3307_v13, %s3036_s18 }
 0x6c9   : > { %2851 = vrot.lane.b32.xlu0 %v3288_v2, %s3036_s18 }
 0x6cb   : > { %2866 = vrot.lane.b32.xlu1 %v3317_v17, %s3036_s18 }
 0x6ff   : > { %v1522_v33 = vpop.xlane.xlu1 %1521 }
 0x700   : > { %v1519_v20 = vpop.xlane.xlu0 %1518 }
 0x701   : > { %2934 = vrcp.f32 %v1519_v20 }
 0x704   : > { %v1528_v34 = vpop.xlane.xlu1 %1527 }
 0x708   : > { %v1525_v35 = vpop.xlane.xlu0 %1524 }
 0x70b   : > { %v2935_v31 = vpop.eup %2934 }
 0x70c   : > { %v1542_v32 = vmul.f32 %v2935_v31, %v2921_v52 }
 0x70e   : > { %2566 = vmatprep.mubr.msk.f32.mxu1 %vm928_vm3, %v1542_v32 }
 0x73b   : > { %v1534_v14 = vpop.xlane.xlu1 %1533 }
 0x73c   : > { %v1531_v36 = vpop.xlane.xlu0 %1530 }
 0x73d   : > { %2936 = vrcp.f32 %v1531_v36 }
 0x73e   : > { %2938 = vrcp.f32 %v1522_v33  ;;  %v2950_v33 = vld [vmem:[%s3187_s13 + $0x10] sm:$0xff] }
 0x73f   : > { %v1540_v11 = vpop.xlane.xlu1 %1539  ;;  %2940 = vrcp.f32 %v1528_v34 }
 0x740   : > { %v1537_v8 = vpop.xlane.xlu0 %1536  ;;  %2942 = vrcp.f32 %v1525_v35  ;;  %v2951_v35 = vld [vmem:[%s3187_s13 + $0x18] sm:$0xff] }
 0x741   : > { %2944 = vrcp.f32 %v1534_v14 }
 0x742   : > { %2946 = vrcp.f32 %v1537_v8 }
 0x743   : > { %v2857_v2 = vpop.permute.xlu1 %2856  ;;  %2948 = vrcp.f32 %v1540_v11 }
 0x744   : > { %v2852_v13 = vpop.permute.xlu0 %2851  ;;  %v2859_v17 = vunpack.i.h.bf16 %v2857_v2  ;;  %v2858_v37 = vunpack.i.l.bf16 %v2857_v2  ;;  %v2952_v2 = vld [vmem:[%s3187_s13] sm:$0xff] }
 0x745   : > { %v2854_v40 = vunpack.i.h.bf16 %v2852_v13  ;;  %v2853_v16 = vunpack.i.l.bf16 %v2852_v13 }
 0x746   : > { %v2686_v44 = vpack.c.bf16 %v2859_v17, %v2858_v37  ;;  %v2953_v17 = vld [vmem:[%s3187_s13 + $0x8] sm:$0xff] }
 0x747   : > { %v2937_v41 = vpop.eup %2936  ;;  %v2682_v42 = vpack.c.bf16 %v2854_v40, %v2853_v16  ;;  %v2862_v43 = vpop.permute.xlu1 %2861 }
 0x748   : > { %v2864_v53 = vunpack.i.h.bf16 %v2862_v43  ;;  %v2863_v21 = vunpack.i.l.bf16 %v2862_v43  ;;  %v1550_v38 = vmul.f32 %v2937_v41, %v2929_v19  ;;  %v2939_v46 = vpop.eup %2938 }
 0x749   : > { %2683 = vmatprep.subr.bf16.mxu1 %v2682_v42  ;;  %v2941_v50 = vpop.eup %2940  ;;  %v1544_v39 = vmul.f32 %v2939_v46, %v3514_v51 }
 0x74a   : > { %v2690_v45 = vpack.c.bf16 %v2864_v53, %v2863_v21  ;;  %2685 = vmatpush3.bf16.msra.mxu1 %v2682_v42  ;;  %2580 = vmatprep.mubr.msk.f32.mxu0 %vm928_vm3, %v1550_v38  ;;  %v2943_v54 = vpop.eup %2942  ;;  %v1548_v62 = vmul.f32 %v2941_v50, %v3519_v63  ;;  %v2954_v53 = vld [vmem:[%s3187_s13 + $0x30] sm:$0xff]  ;;  %v2955_v38 = vld [vmem:[%s3187_s13 + $0x38] sm:$0xff] }
 0x74b   : > { %v2867_v47 = vpop.permute.xlu1 %2866  ;;  %2687 = vmatprep.subr.bf16.mxu1 %v2686_v44  ;;  %v2945_v1 = vpop.eup %2944  ;;  %v1546_v23 = vmul.f32 %v2943_v54, %v3523_v55  ;;  %v699_v55 = vld [vmem:[%s3662_s5] sm:$0xff] }
 0x74c   : > { %v2869_v29 = vunpack.i.h.bf16 %v2867_v47  ;;  %v2868_v52 = vunpack.i.l.bf16 %v2867_v47  ;;  %2691 = vmatprep.subr.bf16.mxu0 %v2690_v45  ;;  %v2947_v57 = vpop.eup %2946  ;;  %v1552_v60 = vmul.f32 %v2945_v1, %v3527_v18  ;;  %v2957_v47 = vld [vmem:[%s3187_s13 + $0x28] sm:$0xff] }
 0x74d   : > { %2693 = vmatpush3.bf16.msra.mxu0 %v2690_v45  ;;  %v2949_v61 = vpop.eup %2948  ;;  %v1554_v0 = vmul.f32 %v2947_v57, %v3534_v27  ;;  %v2956_v45 = vld [vmem:[%s3187_s13 + $0x20] sm:$0xff]  ;;  %s2362_s13 = sshll.u32 (%p3151_p9), %s3012_s9, 4 }
 0x74e   : > { %v2694_v56 = vpack.c.bf16 %v2869_v29, %v2868_v52  ;;  %2689 = vmatpush3.bf16.msra.mxu1 %v2686_v44  ;;  %v1556_v51 = vmul.f32 %v2949_v61, %v3532_v26  ;;  %s2109_s21 = sadd.s32 (%p3151_p9), %s2362_s13, %s2361_s20 }
 0x74f   : > { %2586 = vmatprep.subr.mxu1 %v700_v28  ;;  %s2363_s22 = sshll.u32 (%p3151_p9), %s2109_s21, 3 }
 0x750   : > { %2695 = vmatprep.subr.bf16.mxu0 %v2694_v56  ;;  %s2111_s25 = scalar_lea.vmem (%p3151_p9), %s3665_s8, %s2363_s22 }
 0x751   : > { %2567 = vmatmul.mubr.msk.f32.vlgmr.msra.gmra.mrb[8].mxu1 %vm928_vm3, %v1544_v39  ;;  %2697 = vmatpush3.bf16.msra.mxu0 %v2694_v56 }
 0x752   : > { %2569 = vmatprep.mubr.msk.f32.mxu1 %vm928_vm3, %v1546_v23  ;;  %2587 = vmatpush3.msra.mxu1 %v700_v28 }
 0x753   : > { %2600 = vmatprep.subr.mxu1 %v699_v55 }
 0x754   : > { %2581 = vmatmul.mubr.msk.f32.vlgmr.msra.gmra.mrb[24].mxu0 %vm928_vm3, %v1552_v60 }
 0x755   : > { %2570 = vmatmul.mubr.msk.f32.gmra.mrb[10].mxu1 %vm928_vm3, %v1548_v62  ;;  %2583 = vmatprep.mubr.msk.f32.mxu0 %vm928_vm3, %v1554_v0 }
 0x758   : > { %2584 = vmatmul.mubr.msk.f32.gmra.mrb[26].mxu0 %vm928_vm3, %v1556_v51 }
 0x824   : > { %v2568_v3 = vpop.f32.mrb[8].mxu1 }
 0x825   : > { %v1647_v5 = vpop.f32.mrb[9].mxu1 }
 0x826   : > { %2588 = vmatprep.mubr.msk.f32.mxu1 %vm713_vm1, %v1647_v5 }
 0x827   : > { %v2582_v63 = vpop.f32.mrb[24].mxu0  ;;  %2589 = vmatmul.mubr.msk.f32.vlgmr.msra.gmra.mrb[12].mxu1 %vm713_vm1, %v2568_v3 }
 0x828   : > { %v2571_v7 = vpop.f32.mrb[10].mxu1  ;;  %v1756_v10 = vpop.f32.mrb[25].mxu0  ;;  %2601 = vmatpush3.msra.mxu1 %v699_v55 }
 0x829   : > { %v1657_v12 = vpop.f32.mrb[11].mxu1 }
 0x82a   : > { %2591 = vmatprep.mubr.msk.f32.mxu1 %vm713_vm1, %v1657_v12 }
 0x82b   : > { %v2585_v18 = vpop.f32.mrb[26].mxu0  ;;  %2592 = vmatmul.mubr.msk.f32.gmra.mrb[14].mxu1 %vm713_vm1, %v2571_v7 }
 0x82c   : > { %v1766_v19 = vpop.f32.mrb[27].mxu0  ;;  %2594 = vmatprep.mubr.msk.f32.mxu1 %vm713_vm1, %v1756_v10 }
 0x82f   : > { %2595 = vmatmul.mubr.msk.f32.gmra.mrb[16].mxu1 %vm713_vm1, %v2582_v63 }
 0x830   : > { %2597 = vmatprep.mubr.msk.f32.mxu1 %vm713_vm1, %v1766_v19 }
 0x833   : > { %2598 = vmatmul.mubr.msk.f32.gmra.mrb[18].mxu1 %vm713_vm1, %v2585_v18 }
 0x834   : > { %2602 = vmatprep.mubr.msk.f32.mxu1 %vm713_vm1, %v3480_v59 }
 0x837   : > { %2603 = vmatmul.mubr.msk.f32.vlgmr.msra.gmra.mrb[12].mxu1 %vm713_vm1, %v3478_v58 }
 0x838   : > { %2605 = vmatprep.mubr.msk.f32.mxu1 %vm713_vm1, %v3484_v49 }
 0x83b   : > { %2606 = vmatmul.mubr.msk.f32.gmra.mrb[14].mxu1 %vm713_vm1, %v3482_v48  ;;  %v2355_v48 = vld [vmem:[%s3663_s6] ss:$0 sm:$0xff] }
 0x83c   : > { %2608 = vmatprep.mubr.msk.f32.mxu1 %vm713_vm1, %v3499_v24 }
 0x83f   : > { %2609 = vmatmul.mubr.msk.f32.gmra.mrb[16].mxu1 %vm713_vm1, %v3496_v15 }
 0x840   : > { %2611 = vmatprep.mubr.msk.f32.mxu1 %vm713_vm1, %v3508_v30 }
 0x843   : > { %2612 = vmatmul.mubr.msk.f32.gmra.mrb[18].mxu1 %vm713_vm1, %v3506_v6 }
 0x90a   : > { %v2604_v59 = vpop.f32.mrb[12].mxu1 }
 0x90b   : > { %v1994_v58 = vpop.f32.mrb[13].mxu1  ;;  %v2041_v25 = vadd.f32 %v2604_v59, %v2355_v48 }
 0x90c   : > { %v2040_v27 = vadd.f32 %v2355_v48, %v1994_v58 }
 0x90e   : > { %v2607_v22 = vpop.f32.mrb[14].mxu1 }
 0x90f   : > { %v2004_v49 = vpop.f32.mrb[15].mxu1  ;;  %v2043_v32 = vadd.f32 %v2607_v22, %v2355_v48 }
 0x910   : > { %v2042_v8 = vadd.f32 %v2355_v48, %v2004_v49 }
 0x912   : > { %v2610_v24 = vpop.f32.mrb[16].mxu1 }
 0x913   : > { %v2045_v26 = vadd.f32 %v2610_v24, %v2355_v48  ;;  %v2014_v15 = vpop.f32.mrb[17].mxu1 }
 0x914   : > { %v2044_v30 = vadd.f32 %v2355_v48, %v2014_v15 }
 0x915   : > { %v2066_v4 = vcombine.low %v2041_v25, %v2045_v26  ;;  %v2357_v6 = vcombine.high %v2041_v25, %v2045_v26 }
 0x916   : > { %v2064_v9 = vcombine.low %v2040_v27, %v2044_v30  ;;  %v2356_v20 = vcombine.high %v2040_v27, %v2044_v30  ;;  %v2613_v31 = vpop.f32.mrb[18].mxu1 }
 0x917   : > { %v2082_v34 = vadd.f32 %v2950_v33, %v2066_v4  ;;  %v2083_v14 = vadd.f32 %v2951_v35, %v2357_v6  ;;  %v2047_v36 = vadd.f32 %v2613_v31, %v2355_v48  ;;  %v2024_v11 = vpop.f32.mrb[19].mxu1 }
 0x918   : > { %v2080_v13 = vadd.f32 %v2952_v2, %v2064_v9  ;;  %v2081_v37 = vadd.f32 %v2953_v17, %v2356_v20  ;;  %v2046_v40 = vadd.f32 %v2355_v48, %v2024_v11  ;;  %2102 = sbr.rel (!%p3151_p9) target bundleno = 2343 (0x927), region = 60 }
 0x919   : > { %2090 = vst.msk [vmem:[%s3596_s14 + $0x10] sm:$0xff] %vm401_vm0, %v2082_v34  ;;  %2091 = vst.msk [vmem:[%s3596_s14 + $0x18] sm:$0xff] %vm401_vm0, %v2083_v14  ;;  %v2070_v16 = vcombine.low %v2043_v32, %v2047_v36  ;;  %v2359_v41 = vcombine.high %v2043_v32, %v2047_v36 }
 0x91a   : > { %2088 = vst.msk [vmem:[%s3596_s14] sm:$0xff] %vm401_vm0, %v2080_v13  ;;  %2089 = vst.msk [vmem:[%s3596_s14 + $0x8] sm:$0xff] %vm401_vm0, %v2081_v37  ;;  %v2068_v42 = vcombine.low %v2042_v8, %v2046_v40  ;;  %v2358_v43 = vcombine.high %v2042_v8, %v2046_v40 }
 0x91b   : > { %v2086_v21 = vadd.f32 %v2954_v53, %v2070_v16  ;;  %v2087_v44 = vadd.f32 %v2955_v38, %v2359_v41 }
 0x91c   : > { %v2084_v46 = vadd.f32 %v2956_v45, %v2068_v42  ;;  %v2085_v50 = vadd.f32 %v2957_v47, %v2358_v43 }
 0x91d   : > { %2094 = vst.msk [vmem:[%s3596_s14 + $0x30] sm:$0xff] %vm401_vm0, %v2086_v21  ;;  %2095 = vst.msk [vmem:[%s3596_s14 + $0x38] sm:$0xff] %vm401_vm0, %v2087_v44 }
 0x91e   : > { %2092 = vst.msk [vmem:[%s3596_s14 + $0x20] sm:$0xff] %vm401_vm0, %v2084_v46  ;;  %2093 = vst.msk [vmem:[%s3596_s14 + $0x28] sm:$0xff] %vm401_vm0, %v2085_v50 }
 0x920   : > { %v2157_v28 = vld [vmem:[%s3596_s14 + $0x10] sm:$0xff]  ;;  %v2159_v54 = vld [vmem:[%s3596_s14 + $0x18] sm:$0xff] }
 0x921   : > { %v2153_v29 = vld [vmem:[%s3596_s14] sm:$0xff]  ;;  %v2155_v52 = vld [vmem:[%s3596_s14 + $0x8] sm:$0xff]  ;;  %2158 = vst [vmem:[%s2111_s25 + $0x10] sm:$0xff] %v2157_v28  ;;  %2160 = vst [vmem:[%s2111_s25 + $0x18] sm:$0xff] %v2159_v54 }
 0x922   : > { %2154 = vst [vmem:[%s2111_s25] sm:$0xff] %v2153_v29  ;;  %2156 = vst [vmem:[%s2111_s25 + $0x8] sm:$0xff] %v2155_v52 }
 0x924   : > { %v2165_v39 = vld [vmem:[%s3596_s14 + $0x30] sm:$0xff]  ;;  %v2167_v57 = vld [vmem:[%s3596_s14 + $0x38] sm:$0xff] }
 0x925   : > { %v2161_v1 = vld [vmem:[%s3596_s14 + $0x20] sm:$0xff]  ;;  %v2163_v56 = vld [vmem:[%s3596_s14 + $0x28] sm:$0xff]  ;;  %2166 = vst [vmem:[%s2111_s25 + $0x50] sm:$0xff] %v2165_v39  ;;  %2168 = vst [vmem:[%s2111_s25 + $0x58] sm:$0xff] %v2167_v57 }
 0x926   : > { %2162 = vst [vmem:[%s2111_s25 + $0x40] sm:$0xff] %v2161_v1  ;;  %2164 = vst [vmem:[%s2111_s25 + $0x48] sm:$0xff] %v2163_v56 }
 0x927 PF: > { %s21_s12 = sadd.s32 1, %s3024_s12   ;;  %s3680_s30 = sld [smem:[#allocation13_spill]] }
 0x928   : > { %p18_p1 = scmp.ge.s32.totalorder %s21_s12, 6   ;;  %s3681_s9 = sld [smem:[#allocation9_spill]] }
 0x929   : > { %s3682_s11 = sld [smem:[#allocation10_spill]]  ;;  %s3683_s10 = sld [smem:[#allocation11_spill]] }
 0x92a   : > { %s3684_s17 = sld [smem:[#allocation12_spill]]  ;;  %s3685_s27 = smov %s3000_s28 }
 0x92b   : > { %s3686_s28 = smov %s3004_s29  ;;  %20 = sbr.rel (!%p18_p1) target bundleno = 5 (0x5), region = 135 }
 0x92d   : > { %s3687_s29 = smov %s3680_s30 }
 0x92e   : > { %s3688_s30 = smov %s3681_s9 }
 0x92f   : > { %s3689_s9 = smov %s3682_s11 }
 0x930   : > { %s3690_s11 = smov %s3684_s17 }
 0x932   :  { %2184 = vsyncpa [#allocation3], 1 }
 0x933   :  { %2186 = vsyncpa [#allocation3 + $0x1], 1 }

// kernel: rstb_forward.9
= control target key start
LH: loop header
LB: loop body
LE: loop exit
PB: predicated region body
PF: predicated region fallthrough
CT: control target
= control target key end

     0   :  { %9 = vsyncpa [#allocation3], 0  ;;  %s1005_s0 = inlined_call_operand.vmem [shape: f32[256,16], index: 0, kind: input, shape index: {}]   ;;  %s1006_s1 = inlined_call_operand.vmem [shape: f32[256,16], index: 1, kind: input, shape index: {}]   ;;  %s1007_s2 = inlined_call_operand.vmem [shape: f32[16,16], index: 2, kind: input, shape index: {}]   ;;  %s1008_s3 = inlined_call_operand.vmem [shape: f32[1,16], index: 3, kind: input, shape index: {}]   ;;  %s1009_s4 = inlined_call_operand.hbm [shape: f32[256,16], index: 4, kind: output, shape index: {}]  }
   0x1   :  { %11 = vsyncpa [#allocation3 + $0x1], 0  ;;  %s793_s15 = smov 0   ;;  %s795_s16 = smov 0  }
   0x2   :  { %s797_s17 = smov 0   ;;  %s799_s18 = smov 0  }
   0x3 LB: > { %s814_s19 = sadd.s32 4294967295, %s763_s18   ;;  %s576_s20 = sadd.s32 4294967294, %s763_s18   ;;  %s763_s18 = sphi %s799_s18, %s1015_s18   ;;  %s759_s17 = sphi %s797_s17, %s1014_s17   ;;  %s755_s16 = sphi %s795_s16, %s1013_s16   ;;  %s751_s15 = sphi %s793_s15, %s1012_s15  }
   0x4   : > { %s818_s21 = sadd.s32 1, %s763_s18   ;;  %s118_s22 = sadd.s32 1, %s759_s17 }
   0x5   : > { %s115_s23 = ssub.s32 %s763_s18, %s818_s21  ;;  %p128_p0 = scmp.ne.s32.totalorder %s759_s17, %s755_s16 }
   0x6   : > { %p116_p1 = scmp.eq.s32.totalorder %s115_s23, 0  ;;  %p129_p2 = scmp.eq.s32.totalorder %s814_s19, 1 }
   0x7   : > { %p134_p3 = scmp.ne.s32.totalorder %s755_s16, %s751_s15  ;;  %p135_p4 = scmp.eq.s32.totalorder %s576_s20, 1 }
   0x8   : > { %s829_s24 = scalar_select %p116_p1, %s759_s17, %s118_s22  }
   0x9   : > { %p831_p5 = por %p129_p2, %p128_p0  ;;  %p835_p6 = por %p135_p4, %p134_p3 }
   0xa   : > { %p579_p7 = scmp.ge.s32.totalorder %s763_s18, 1  ;;  %p177_p8 = scmp.lt.s32.totalorder %s763_s18, 3 }
   0xc   : > { %p178_p9 = pnand %p579_p7, %p177_p8 }
   0xd   : > { %v237_v0 = vld [vmem:[%s1007_s2] sm:$0xff] (!%p178_p9)  ;;  %v238_v1 = vld [vmem:[%s1007_s2 + $0x8] sm:$0xff] (!%p178_p9)  ;;  %s581_s5 = sshll.u32 (!%p178_p9), %s814_s19, 4  ;;  %vm246_vm0 = vcmask (!%p178_p9), 130048   ;;  %s205_s10 = sand.u32 (!%p178_p9), 1, %s755_s16  }
   0xe   : > { %181 = sbr.rel (%p178_p9) target bundleno = 271 (0x10f), region = 36  ;;  %v654_v2 = vpack.c.bf16 (!%p178_p9), %v238_v1, %v237_v0  ;;  %p209_p10 = scmp.lt.s32.totalorder (!%p178_p9), %s581_s5, 31  ;;  %v883_v19 = vld [vmem:[%s1008_s3] ss:$0 sm:$0xff] (!%p178_p9) }
   0xf   : > { %s580_s22 = sshll.u32 (!%p178_p9), %s205_s10, 7  ;;  %s607_s27 = sshll.u32 (!%p178_p9), %s814_s19, 11 }
  0x10   : > { %655 = vmatprep.subr.bf16.mxu0 (!%p178_p9), %v654_v2  ;;  %658 = vmatprep.subr.bf16.mxu1 (!%p178_p9), %v654_v2  ;;  %s897_s23 = scalar_lea.vmem (!%p178_p9), [#allocation2], %s580_s22  ;;  %s950_s30 = scalar_lea.hbm (!%p178_p9), %s1009_s4, %s607_s27 }
  0x11   : > { %657 = vmatpush3.bf16.msra.mxu0 (!%p178_p9), %v654_v2  ;;  %659 = vmatpush3.bf16.msra.mxu1 (!%p178_p9), %v654_v2  ;;  %s502_s28 = sshll.u32 (!%p178_p9), %s897_s23, 4  ;;  %s765_s7 = smov (!%p178_p9), [#allocation2]   ;;  %s952_s28 = int_to_ptr.vmem [resolvable:$true] %s502_s28 }
  0x12   : > { %s705_s8 = sshll.u32 (!%p178_p9), %s765_s7, 4  ;;  %s706_s8 = int_to_ptr.vmem [resolvable:$false] %s705_s8 }
  0x13   : > { %p708_p0 = scmp.lt.s32.totalorder (!%p178_p9), %s952_s28, %s706_s8 }
  0x15   : > { %s1017_s5 = smov (!%p209_p10, %s581_s5), 31 }
  0x16   : > { %s582_s6 = sshll.u32 %s1017_s5, 3  ;;  %s964_s5 = scalar_lea.sflag [#allocation3], %s205_s10 }
  0x17   : > { %s212_s9 = scalar_lea.vmem %s1005_s0, %s582_s6  ;;  %s878_s13 = scalar_lea.vmem %s1006_s1, %s582_s6 }
  0x18   : > { %v221_v3 = vld [vmem:[%s212_s9] sm:$0xff]  ;;  %v222_v5 = vld [vmem:[%s212_s9 + $0x8] sm:$0xff]  ;;  %v223_v7 = vld [vmem:[%s212_s9 + $0x10] sm:$0xff]  ;;  %s701_s6 = scalar_lea.vmem %s952_s28, 2048 }
  0x19   : > { %v229_v4 = vld [vmem:[%s212_s9 + $0x40] sm:$0xff]  ;;  %630 = vmatprep.mubr.msk.f32.mxu0 %vm246_vm0, %v221_v3  ;;  %v230_v6 = vld [vmem:[%s212_s9 + $0x48] sm:$0xff]  ;;  %v231_v8 = vld [vmem:[%s212_s9 + $0x50] sm:$0xff]  ;;  %p702_p11 = scmp.ne.s32.totalorder %s952_s28, %s701_s6 }
  0x1a   : > { %642 = vmatprep.mubr.msk.f32.mxu1 %vm246_vm0, %v229_v4  ;;  %631 = vmatmul.mubr.msk.f32.vlgmr.msra.gmra.mrb[0].mxu0 %vm246_vm0, %v222_v5  ;;  %v224_v9 = vld [vmem:[%s212_s9 + $0x18] sm:$0xff]  ;;  %v225_v11 = vld [vmem:[%s212_s9 + $0x20] sm:$0xff]  ;;  %v226_v13 = vld [vmem:[%s212_s9 + $0x28] sm:$0xff] }
  0x1b   : > { %643 = vmatmul.mubr.msk.f32.vlgmr.msra.gmra.mrb[0].mxu1 %vm246_vm0, %v230_v6  ;;  %633 = vmatprep.mubr.msk.f32.mxu0 %vm246_vm0, %v223_v7  ;;  %v232_v10 = vld [vmem:[%s212_s9 + $0x58] sm:$0xff]  ;;  %v233_v12 = vld [vmem:[%s212_s9 + $0x60] sm:$0xff]  ;;  %v234_v14 = vld [vmem:[%s212_s9 + $0x68] sm:$0xff]  ;;  %p703_p12 = pnand %p702_p11, %p831_p5 }
  0x1c   : > { %645 = vmatprep.mubr.msk.f32.mxu1 %vm246_vm0, %v231_v8  ;;  %v227_v15 = vld [vmem:[%s212_s9 + $0x30] sm:$0xff]  ;;  %v228_v17 = vld [vmem:[%s212_s9 + $0x38] sm:$0xff]  ;;  %v441_v21 = vld [vmem:[%s878_s13 + $0x8] sm:$0xff] }
  0x1d   : > { %v235_v16 = vld [vmem:[%s212_s9 + $0x70] sm:$0xff]  ;;  %v236_v18 = vld [vmem:[%s212_s9 + $0x78] sm:$0xff]  ;;  %v449_v23 = vld [vmem:[%s878_s13 + $0x48] sm:$0xff]  ;;  %p704_p13 = pneg %p703_p12  ;;  %s707_s9 = scalar_lea.vmem %s706_s8, 4096 }
  0x1e   : > { %634 = vmatmul.mubr.msk.f32.gmra.mrb[2].mxu0 %vm246_vm0, %v224_v9  ;;  %v440_v27 = vld [vmem:[%s878_s13] sm:$0xff]  ;;  %v443_v37 = vld [vmem:[%s878_s13 + $0x18] sm:$0xff]  ;;  %v442_v43 = vld [vmem:[%s878_s13 + $0x10] sm:$0xff]  ;;  %p709_p1 = scmp.lt.s32.totalorder %s707_s9, %s701_s6 }
  0x1f   : > { %646 = vmatmul.mubr.msk.f32.gmra.mrb[2].mxu1 %vm246_vm0, %v232_v10  ;;  %636 = vmatprep.mubr.msk.f32.mxu0 %vm246_vm0, %v225_v11  ;;  %v448_v29 = vld [vmem:[%s878_s13 + $0x40] sm:$0xff]  ;;  %v451_v39 = vld [vmem:[%s878_s13 + $0x58] sm:$0xff]  ;;  %v450_v45 = vld [vmem:[%s878_s13 + $0x50] sm:$0xff] }
  0x20   : > { %648 = vmatprep.mubr.msk.f32.mxu1 %vm246_vm0, %v233_v12  ;;  %v445_v53 = vld [vmem:[%s878_s13 + $0x28] sm:$0xff]  ;;  %v444_v59 = vld [vmem:[%s878_s13 + $0x20] sm:$0xff]  ;;  %v447_v5 = vld [vmem:[%s878_s13 + $0x38] sm:$0xff]  ;;  %p710_p2 = por %p709_p1, %p708_p0 }
  0x21   : > { %v453_v55 = vld [vmem:[%s878_s13 + $0x68] sm:$0xff]  ;;  %v452_v61 = vld [vmem:[%s878_s13 + $0x60] sm:$0xff]  ;;  %v455_v7 = vld [vmem:[%s878_s13 + $0x78] sm:$0xff] }
  0x22   : > { %637 = vmatmul.mubr.msk.f32.gmra.mrb[4].mxu0 %vm246_vm0, %v226_v13  ;;  %v446_v11 = vld [vmem:[%s878_s13 + $0x30] sm:$0xff]  ;;  %p711_p3 = pnand %p710_p2, %p704_p13 }
  0x23   : > { %649 = vmatmul.mubr.msk.f32.gmra.mrb[4].mxu1 %vm246_vm0, %v234_v14  ;;  %639 = vmatprep.mubr.msk.f32.mxu0 %vm246_vm0, %v227_v15  ;;  %v454_v13 = vld [vmem:[%s878_s13 + $0x70] sm:$0xff] }
  0x24   : > { %651 = vmatprep.mubr.msk.f32.mxu1 %vm246_vm0, %v235_v16 }
  0x26   : > { %640 = vmatmul.mubr.msk.f32.gmra.mrb[6].mxu0 %vm246_vm0, %v228_v17 }
  0x27   : > { %652 = vmatmul.mubr.msk.f32.gmra.mrb[6].mxu1 %vm246_vm0, %v236_v18 }
  0xed   : > { %v632_v20 = vpop.f32.mrb[0].mxu0 }
  0xee   : > { %v644_v22 = vpop.f32.mrb[0].mxu1  ;;  %v367_v24 = vadd.f32 %v632_v20, %v883_v19  ;;  %v361_v26 = vpop.f32.mrb[1].mxu0 }
  0xef   : > { %v407_v25 = vadd.f32 %v644_v22, %v883_v19  ;;  %v401_v28 = vpop.f32.mrb[1].mxu1  ;;  %v362_v30 = vadd.f32 %v883_v19, %v361_v26 }
  0xf0   : > { %v402_v31 = vadd.f32 %v883_v19, %v401_v28  ;;  %v457_v32 = vadd.f32 %v441_v21, %v367_v24 }
  0xf1   : > { %v465_v33 = vadd.f32 %v449_v23, %v407_v25  ;;  %v456_v34 = vadd.f32 %v440_v27, %v362_v30  ;;  %v635_v36 = vpop.f32.mrb[2].mxu0 }
  0xf2   : > { %v464_v35 = vadd.f32 %v448_v29, %v402_v31  ;;  %v647_v38 = vpop.f32.mrb[2].mxu1  ;;  %473 = vst.msk [vmem:[%s897_s23 + $0x8] sm:$0xff] %vm246_vm0, %v457_v32  ;;  %v377_v40 = vadd.f32 %v635_v36, %v883_v19  ;;  %v371_v42 = vpop.f32.mrb[3].mxu0 }
  0xf3   : > { %481 = vst.msk [vmem:[%s897_s23 + $0x48] sm:$0xff] %vm246_vm0, %v465_v33  ;;  %v417_v41 = vadd.f32 %v647_v38, %v883_v19  ;;  %v411_v44 = vpop.f32.mrb[3].mxu1  ;;  %472 = vst.msk [vmem:[%s897_s23] sm:$0xff] %vm246_vm0, %v456_v34  ;;  %v372_v46 = vadd.f32 %v883_v19, %v371_v42 }
  0xf4   : > { %480 = vst.msk [vmem:[%s897_s23 + $0x40] sm:$0xff] %vm246_vm0, %v464_v35  ;;  %v412_v47 = vadd.f32 %v883_v19, %v411_v44  ;;  %v459_v48 = vadd.f32 %v443_v37, %v377_v40 }
  0xf5   : > { %v467_v49 = vadd.f32 %v451_v39, %v417_v41  ;;  %v458_v50 = vadd.f32 %v442_v43, %v372_v46  ;;  %v638_v52 = vpop.f32.mrb[4].mxu0 }
  0xf6   : > { %v466_v51 = vadd.f32 %v450_v45, %v412_v47  ;;  %v650_v54 = vpop.f32.mrb[4].mxu1  ;;  %475 = vst.msk [vmem:[%s897_s23 + $0x18] sm:$0xff] %vm246_vm0, %v459_v48  ;;  %v387_v56 = vadd.f32 %v638_v52, %v883_v19  ;;  %v381_v58 = vpop.f32.mrb[5].mxu0 }
  0xf7   : > { %483 = vst.msk [vmem:[%s897_s23 + $0x58] sm:$0xff] %vm246_vm0, %v467_v49  ;;  %v427_v57 = vadd.f32 %v650_v54, %v883_v19  ;;  %v421_v60 = vpop.f32.mrb[5].mxu1  ;;  %474 = vst.msk [vmem:[%s897_s23 + $0x10] sm:$0xff] %vm246_vm0, %v458_v50  ;;  %v382_v62 = vadd.f32 %v883_v19, %v381_v58 }
  0xf8   : > { %482 = vst.msk [vmem:[%s897_s23 + $0x50] sm:$0xff] %vm246_vm0, %v466_v51  ;;  %v422_v63 = vadd.f32 %v883_v19, %v421_v60  ;;  %v461_v0 = vadd.f32 %v445_v53, %v387_v56 }
  0xf9   : > { %v469_v1 = vadd.f32 %v453_v55, %v427_v57  ;;  %v460_v2 = vadd.f32 %v444_v59, %v382_v62  ;;  %v641_v4 = vpop.f32.mrb[6].mxu0 }
  0xfa   : > { %v468_v3 = vadd.f32 %v452_v61, %v422_v63  ;;  %v653_v6 = vpop.f32.mrb[6].mxu1  ;;  %477 = vst.msk [vmem:[%s897_s23 + $0x28] sm:$0xff] %vm246_vm0, %v461_v0  ;;  %v397_v8 = vadd.f32 %v641_v4, %v883_v19  ;;  %v391_v10 = vpop.f32.mrb[7].mxu0 }
  0xfb   : > { %485 = vst.msk [vmem:[%s897_s23 + $0x68] sm:$0xff] %vm246_vm0, %v469_v1  ;;  %v437_v9 = vadd.f32 %v653_v6, %v883_v19  ;;  %v431_v12 = vpop.f32.mrb[7].mxu1  ;;  %476 = vst.msk [vmem:[%s897_s23 + $0x20] sm:$0xff] %vm246_vm0, %v460_v2  ;;  %v392_v14 = vadd.f32 %v883_v19, %v391_v10 }
  0xfc   : > { %484 = vst.msk [vmem:[%s897_s23 + $0x60] sm:$0xff] %vm246_vm0, %v468_v3  ;;  %v432_v15 = vadd.f32 %v883_v19, %v431_v12  ;;  %v463_v16 = vadd.f32 %v447_v5, %v397_v8 }
  0xfd   : > { %v471_v17 = vadd.f32 %v455_v7, %v437_v9  ;;  %v462_v18 = vadd.f32 %v446_v11, %v392_v14 }
  0xfe   : > { %v470_v20 = vadd.f32 %v454_v13, %v432_v15  ;;  %479 = vst.msk [vmem:[%s897_s23 + $0x38] sm:$0xff] %vm246_vm0, %v463_v16 }
  0xff   : > { %487 = vst.msk [vmem:[%s897_s23 + $0x78] sm:$0xff] %vm246_vm0, %v471_v17  ;;  %478 = vst.msk [vmem:[%s897_s23 + $0x30] sm:$0xff] %vm246_vm0, %v462_v18 }
 0x100   : > { %486 = vst.msk [vmem:[%s897_s23 + $0x70] sm:$0xff] %vm246_vm0, %v470_v20 }
 0x101   : > { %714 = shalt.err (!%p711_p3)
}
 0x102   : > { %s715_s10 = scalar_lea.hbm %s950_s30, 2048  ;;  %s719_s13 = scalar_lea.hbm %s1009_s4, 4096 }
 0x103   : > { %p716_p4 = scmp.ne.s32.totalorder %s950_s30, %s715_s10  ;;  %p720_p9 = scmp.lt.u32.totalorder %s950_s30, %s1009_s4 }
 0x104   : > { %p721_p10 = scmp.lt.u32.totalorder %s719_s13, %s715_s10  ;;  %p723_p12 = scmp.lt.u32.totalorder %s715_s10, %s950_s30 }
 0x105   : > { %p717_p7 = pnand %p716_p4, %p831_p5 }
 0x106   : > { %p722_p11 = por %p721_p10, %p720_p9 }
 0x107   : > { %p718_p8 = pneg %p717_p7 }
 0x108   : > { %p724_p13 = por %p723_p12, %p722_p11 }
 0x10a   : > { %p725_p0 = pnand %p724_p13, %p718_p8 }
 0x10c   : > { %728 = shalt.err (!%p725_p0)
}
 0x10d   : > { %s766_s22 = smov 128   ;;  %s767_s23 = smov 8  }
 0x10e   : > { %660 = dma.vmem_to_hbm [thread:$0]  (%p831_p5), %s952_s28, 2048, %s950_s30, %s964_s5, %s766_s22, %s766_s22, %s767_s23  }
 0x10f PF: > { %p666_p1 = scmp.ge.s32.totalorder %s763_s18, 2  ;;  %s517_s27 = sand.u32 1, %s751_s15  }
 0x110   : > { %s518_s19 = scalar_lea.sflag [#allocation3], %s517_s27 }
 0x111   : > { %p663_p2 = pnand %p666_p1, %p835_p6 }
 0x113   : > { %746 = dma.done.wait (!%p663_p2), %s518_s19, 2048  }
 0x114   : > { %748 = vsyncadd (!%p663_p2), %s518_s19, 4294965248  ;;  %p14_p3 = scmp.ge.s32.totalorder %s818_s21, 4   ;;  %s1012_s15 = smov %s755_s16 }
 0x115   : > { %s1013_s16 = smov %s759_s17  ;;  %s1014_s17 = smov %s829_s24 }
 0x116   : > { %s1015_s18 = smov %s818_s21  ;;  %16 = sbr.rel (!%p14_p3) target bundleno = 3 (0x3), region = 74 }
 0x11d   :  { %523 = vsyncpa [#allocation3], 1 }
 0x11e   :  { %525 = vsyncpa [#allocation3 + $0x1], 1 }

// kernel: rstb_forward.7
= control target key start
LH: loop header
LB: loop body
LE: loop exit
PB: predicated region body
PF: predicated region fallthrough
CT: control target
= control target key end

     0   :  { %s3170_s30 = smov 0   ;;  %s3172_s10 = smov 0   ;;  %s3746_s0 = inlined_call_operand.vmem [shape: f32[2,2,8,8,16], index: 0, kind: input, shape index: {}]   ;;  %s3747_s1 = inlined_call_operand.vmem [shape: f32[1,16], index: 1, kind: input, shape index: {}]   ;;  %s3748_s2 = inlined_call_operand.vmem [shape: f32[1,16], index: 2, kind: input, shape index: {}]   ;;  %s3749_s3 = inlined_call_operand.vmem [shape: f32[4,32,32], index: 3, kind: input, shape index: {}]   ;;  %s3750_s4 = inlined_call_operand.vmem [shape: f32[16,48], index: 4, kind: input, shape index: {}]   ;;  %s3751_s5 = inlined_call_operand.vmem [shape: f32[1,48], index: 5, kind: input, shape index: {}]   ;;  %s3752_s6 = inlined_call_operand.vmem [shape: f32[16,16], index: 6, kind: input, shape index: {}]   ;;  %s3753_s7 = inlined_call_operand.vmem [shape: f32[1,16], index: 7, kind: input, shape index: {}]   ;;  %s3754_s8 = inlined_call_operand.vmem [shape: f32[2,32,32], index: 8, kind: input, shape index: {}]   ;;  %s3755_s9 = inlined_call_operand.vmem [shape: f32[2,2,8,8,16], index: 9, kind: output, shape index: {}]  }
   0x1   :  { %s3174_s11 = smov 0   ;;  %s3176_s12 = smov 0  }
   0x2   :  { %s3178_s13 = smov 0   ;;  %s3180_s14 = smov 0  }
   0x3   :  { %s3182_s15 = smov 0  }
   0x4 LB: > { %s37_s16 = sadd.s32 1, %s3105_s13  ;;  %s45_s17 = sadd.s32 1, %s3109_s14  ;;  %s3113_s15 = sphi %s3182_s15, %s19_s15   ;;  %s3109_s14 = sphi %s3180_s14, %s3770_s14   ;;  %s3105_s13 = sphi %s3178_s13, %s3769_s13   ;;  %s3101_s12 = sphi %s3176_s12, %s3768_s12   ;;  %s3097_s11 = sphi %s3174_s11, %s3767_s11   ;;  %s3093_s10 = sphi %s3172_s10, %s3766_s10   ;;  %s3089_s30 = sphi %s3170_s30, %s3765_s30  }
   0x5   : > { %p39_p0 = scmp.ge.s32.totalorder %s37_s16, 2  ;;  %s2385_s18 = sadd.s32 4294967295, %s3113_s15  }
   0x6   : > { %p65_p1 = scmp.ne.s32.totalorder %s3093_s10, %s3089_s30  ;;  %p66_p2 = scmp.eq.s32.totalorder %s3113_s15, 0 }
   0x7   : > { %s3772_s16 = smov (%p39_p0, %s37_s16), 0  ;;  %s3774_s17 = smov (!%p39_p0, %s45_s17), %s3109_s14 }
   0x8   : > { %3758 = sst [smem:[#allocation4_spill]] %s3772_s16  ;;  %p47_p3 = scmp.ge.s32.totalorder %s3774_s17, 2 }
   0x9   : > { %p280_p4 = scmp.eq.s32.totalorder %s2385_s18, 3  ;;  %s52_s19 = ssub.s32 %s3105_s13, %s3772_s16 }
   0xa   : > { %p67_p5 = por %p66_p2, %p65_p1  ;;  %s3776_s17 = smov (%p47_p3, %s3774_s17), 0 }
   0xb   : > { %3759 = sst [smem:[#allocation5_spill]] %s3776_s17  ;;  %p3218_p6 = por %p280_p4, %p65_p1 }
   0xc   : > { %s49_s21 = ssub.s32 %s3109_s14, %s3776_s17  ;;  %s58_s23 = sadd.s32 1, %s3093_s10 }
   0xd   : > { %s53_s22 = sor.u32 %s52_s19, %s49_s21  ;;  %p2388_p8 = scmp.ge.s32.totalorder %s3113_s15, 4 }
   0xe   : > { %p56_p7 = scmp.eq.s32.totalorder %s53_s22, 0 }
   0xf   : > { %323 = sbr.rel (%p2388_p8) target bundleno = 33 (0x21), region = 44 }
  0x10   : > { %s3226_s24 = scalar_select %p56_p7, %s3093_s10, %s58_s23  }
  0x16   : > { %326 = sbr.rel (!%p67_p5) target bundleno = 33 (0x21), region = 48  ;;  %s328_s25 = sand.u32 (%p67_p5), 1, %s3093_s10  }
  0x17   : > { %s2390_s26 = sshll.u32 (%p67_p5), %s3105_s13, 2  ;;  %s2389_s27 = sshll.u32 (%p67_p5), %s328_s25, 6 }
  0x18   : > { %s2391_s28 = sshll.u32 (%p67_p5), %s3109_s14, 4  ;;  %s330_s21 = scalar_lea.vmem (%p67_p5), [#allocation2], %s2389_s27 }
  0x19   : > { %s337_s29 = sadd.s32 (%p67_p5), %s2391_s28, %s2390_s26 }
  0x1a   : > { %s2392_s18 = sshll.u32 (%p67_p5), %s337_s29, 3 }
  0x1b   : > { %s339_s19 = scalar_lea.vmem (%p67_p5), %s3746_s0, %s2392_s18 }
  0x1c   : > { %v381_v0 = vld [vmem:[%s339_s19] sm:$0xff] (%p67_p5)  ;;  %v383_v1 = vld [vmem:[%s339_s19 + $0x8] sm:$0xff] (%p67_p5)  ;;  %v385_v2 = vld [vmem:[%s339_s19 + $0x10] sm:$0xff] (%p67_p5) }
  0x1d   : > { %382 = vst [vmem:[%s330_s21] sm:$0xff] %v381_v0  ;;  %384 = vst [vmem:[%s330_s21 + $0x8] sm:$0xff] %v383_v1  ;;  %v387_v3 = vld [vmem:[%s339_s19 + $0x18] sm:$0xff]  ;;  %v389_v4 = vld [vmem:[%s339_s19 + $0x40] sm:$0xff] }
  0x1e   : > { %386 = vst [vmem:[%s330_s21 + $0x10] sm:$0xff] %v385_v2  ;;  %v391_v5 = vld [vmem:[%s339_s19 + $0x48] sm:$0xff]  ;;  %388 = vst [vmem:[%s330_s21 + $0x18] sm:$0xff] %v387_v3  ;;  %v393_v6 = vld [vmem:[%s339_s19 + $0x50] sm:$0xff] }
  0x1f   : > { %390 = vst [vmem:[%s330_s21 + $0x20] sm:$0xff] %v389_v4  ;;  %392 = vst [vmem:[%s330_s21 + $0x28] sm:$0xff] %v391_v5  ;;  %v395_v7 = vld [vmem:[%s339_s19 + $0x58] sm:$0xff] }
  0x20   : > { %394 = vst [vmem:[%s330_s21 + $0x30] sm:$0xff] %v393_v6  ;;  %396 = vst [vmem:[%s330_s21 + $0x38] sm:$0xff] %v395_v7 }
  0x21 PF: > { %p2393_p9 = scmp.ge.s32.totalorder %s3113_s15, 1  ;;  %p417_p10 = scmp.lt.s32.totalorder %s3113_s15, 5 }
  0x23   : > { %p418_p11 = pnand %p2393_p9, %p417_p10 }
  0x24   : > { %s424_s16 = sand.u32 (!%p418_p11), 1, %s3089_s30   ;;  %vm492_vm0 = vcmask (!%p418_p11), 130048   ;;  %v644_v0 = vld [vmem:[%s3750_s4] sm:$0xff] (!%p418_p11)  ;;  %v645_v1 = vld [vmem:[%s3750_s4 + $0x8] sm:$0xff] (!%p418_p11)  ;;  %vm812_vm1 = vcmask (!%p418_p11), 64512   ;;  %s3116_s30 = smov (!%p418_p11), 96  }
  0x25   : > { %421 = sbr.rel (%p418_p11) target bundleno = 2331 (0x91b), region = 90  ;;  %s3238_s17 = sshll.u32 (!%p418_p11), %s424_s16, 6  ;;  %v2738_v2 = vpack.c.bf16 (!%p418_p11), %v645_v1, %v644_v0  ;;  %vm3378_vm2 = vmpackc.low (!%p418_p11), %vm812_vm1, %vm812_vm1  ;;  %vm1035_vm3 = vcmask (!%p418_p11), 261120  }
  0x26   : > { %s3241_s22 = scalar_lea.vmem (!%p418_p11), [#allocation2], %s3238_s17  ;;  %s3115_s16 = smov (!%p418_p11), 112  }
  0x27   : > { %v484_v8 = vld [vmem:[%s3241_s22] sm:$0xff] (!%p418_p11)  ;;  %v486_v9 = vld [vmem:[%s3241_s22 + $0x10] sm:$0xff] (!%p418_p11)  ;;  %v485_v10 = vld [vmem:[%s3241_s22 + $0x8] sm:$0xff] (!%p418_p11)  ;;  %2739 = vmatprep.subr.bf16.mxu0 (!%p418_p11), %v2738_v2  ;;  %s3117_s23 = smov (!%p418_p11), 104   ;;  %s2396_s25 = sshll.u32 (!%p418_p11), %s3097_s11, 1 }
  0x28   : > { %v493_v11 = vsel (!%p418_p11), %vm492_vm0, %v484_v8, 0.0  ;;  %v499_v12 = vsel (!%p418_p11), %vm492_vm0, %v486_v9, 0.0  ;;  %v487_v13 = vld [vmem:[%s3241_s22 + $0x18] sm:$0xff] (!%p418_p11)  ;;  %v496_v14 = vsel (!%p418_p11), %vm492_vm0, %v485_v10, 0.0  ;;  %v488_v16 = vld [vmem:[%s3241_s22 + $0x20] sm:$0xff] (!%p418_p11)  ;;  %v489_v17 = vld [vmem:[%s3241_s22 + $0x28] sm:$0xff] (!%p418_p11)  ;;  %2741 = vmatpush3.bf16.msra.mxu0 (!%p418_p11), %v2738_v2 }
  0x29   : > { %494 = vadd.xlane.f32.xlu0 (!%p418_p11), %v493_v11  ;;  %500 = vadd.xlane.f32.xlu1 (!%p418_p11), %v499_v12  ;;  %v502_v15 = vsel (!%p418_p11), %vm492_vm0, %v487_v13, 0.0  ;;  %v505_v18 = vsel (!%p418_p11), %vm492_vm0, %v488_v16, 0.0  ;;  %v508_v19 = vsel (!%p418_p11), %vm492_vm0, %v489_v17, 0.0  ;;  %v490_v20 = vld [vmem:[%s3241_s22 + $0x30] sm:$0xff] (!%p418_p11)  ;;  %v491_v21 = vld [vmem:[%s3241_s22 + $0x38] sm:$0xff] (!%p418_p11)  ;;  %p473_p12 = scmp.lt.s32.totalorder (!%p418_p11), %s2396_s25, 3 }
  0x2a   : > { %v511_v22 = vsel (!%p418_p11), %vm492_vm0, %v490_v20, 0.0  ;;  %v514_v23 = vsel (!%p418_p11), %vm492_vm0, %v491_v21, 0.0  ;;  %s3118_s27 = smov (!%p418_p11), 120   ;;  %s3688_s21 = scalar_lea.vmem (!%p418_p11), [#allocation3], %s3238_s17 }
  0x2c   : > { %s3778_s25 = smov (!%p473_p12, %s2396_s25), 3  ;;  %s2484_s17 = sshll.u32 (%p3218_p6), %s3097_s11, 2 }
  0x2d   : > { %497 = vadd.xlane.f32.xlu0 %v496_v14  ;;  %503 = vadd.xlane.f32.xlu1 %v502_v15  ;;  %s2489_s26 = sshll.u32 %s3778_s25, 5  ;;  %s3119_s25 = smov 88  }
  0x2e   : > { %s3428_s29 = scalar_lea.vmem %s3749_s3, %s2489_s26 }
  0x31   : > { %506 = vadd.xlane.f32.xlu0 %v505_v18  ;;  %509 = vadd.xlane.f32.xlu1 %v508_v19 }
  0x35   : > { %512 = vadd.xlane.f32.xlu0 %v511_v22  ;;  %515 = vadd.xlane.f32.xlu1 %v514_v23 }
  0xb6   : > { %v495_v24 = vpop.xlane.xlu0 %494  ;;  %v501_v25 = vpop.xlane.xlu1 %500 }
  0xb7   : > { %v518_v26 = vmul.f32 0.0625, %v495_v24  ;;  %v520_v27 = vmul.f32 0.0625, %v501_v25 }
  0xb9   : > { %v3259_v28 = vsub.f32 %v484_v8, %v518_v26  ;;  %v3261_v29 = vsub.f32 %v486_v9, %v520_v27 }
  0xba   : > { %v498_v30 = vpop.xlane.xlu0 %497  ;;  %v504_v31 = vpop.xlane.xlu1 %503 }
  0xbb   : > { %v519_v32 = vmul.f32 0.0625, %v498_v30  ;;  %v521_v33 = vmul.f32 0.0625, %v504_v31  ;;  %v534_v34 = vmul.f32 %v3259_v28, %v3259_v28  ;;  %v536_v35 = vmul.f32 %v3261_v29, %v3261_v29  ;;  %v2399_v30 = vld [vmem:[%s3747_s1] ss:$0 sm:$0xff] }
  0xbd   : > { %v3267_v36 = vsub.f32 %v485_v10, %v519_v32  ;;  %v3269_v37 = vsub.f32 %v487_v13, %v521_v33  ;;  %v542_v38 = vsel %vm492_vm0, %v534_v34, 0.0  ;;  %v548_v41 = vsel %vm492_vm0, %v536_v35, 0.0 }
  0xbe   : > { %543 = vadd.xlane.f32.xlu0 %v542_v38  ;;  %v507_v39 = vpop.xlane.xlu0 %506  ;;  %v510_v40 = vpop.xlane.xlu1 %509 }
  0xbf   : > { %v522_v42 = vmul.f32 0.0625, %v507_v39  ;;  %v523_v43 = vmul.f32 0.0625, %v510_v40  ;;  %v535_v44 = vmul.f32 %v3267_v36, %v3267_v36  ;;  %v537_v45 = vmul.f32 %v3269_v37, %v3269_v37 }
  0xc1   : > { %v3277_v46 = vsub.f32 %v488_v16, %v522_v42  ;;  %v3279_v47 = vsub.f32 %v489_v17, %v523_v43  ;;  %v545_v48 = vsel %vm492_vm0, %v535_v44, 0.0  ;;  %v551_v51 = vsel %vm492_vm0, %v537_v45, 0.0 }
  0xc2   : > { %549 = vadd.xlane.f32.xlu0 %v548_v41  ;;  %546 = vadd.xlane.f32.xlu1 %v545_v48  ;;  %v513_v49 = vpop.xlane.xlu0 %512  ;;  %v516_v50 = vpop.xlane.xlu1 %515 }
  0xc3   : > { %v524_v52 = vmul.f32 0.0625, %v513_v49  ;;  %v525_v53 = vmul.f32 0.0625, %v516_v50  ;;  %v538_v54 = vmul.f32 %v3277_v46, %v3277_v46  ;;  %v539_v55 = vmul.f32 %v3279_v47, %v3279_v47 }
  0xc5   : > { %v3287_v56 = vsub.f32 %v490_v20, %v524_v52  ;;  %v3289_v57 = vsub.f32 %v491_v21, %v525_v53  ;;  %v554_v58 = vsel %vm492_vm0, %v538_v54, 0.0  ;;  %v557_v59 = vsel %vm492_vm0, %v539_v55, 0.0 }
  0xc6   : > { %552 = vadd.xlane.f32.xlu1 %v551_v51  ;;  %555 = vadd.xlane.f32.xlu0 %v554_v58 }
  0xc7   : > { %v540_v60 = vmul.f32 %v3287_v56, %v3287_v56  ;;  %v541_v61 = vmul.f32 %v3289_v57, %v3289_v57 }
  0xc9   : > { %v560_v62 = vsel %vm492_vm0, %v540_v60, 0.0  ;;  %v563_v63 = vsel %vm492_vm0, %v541_v61, 0.0 }
  0xca   : > { %558 = vadd.xlane.f32.xlu1 %v557_v59  ;;  %561 = vadd.xlane.f32.xlu0 %v560_v62 }
  0xce   : > { %564 = vadd.xlane.f32.xlu1 %v563_v63 }
 0x14b   : > { %v544_v3 = vpop.xlane.xlu0 %543 }
 0x14c   : > { %v566_v4 = vmul.f32 0.0625, %v544_v3 }
 0x14e   : > { %v574_v5 = vadd.f32 1e-05, %v566_v4 }
 0x14f   : > { %v547_v6 = vpop.xlane.xlu1 %546  ;;  %v550_v7 = vpop.xlane.xlu0 %549 }
 0x150   : > { %2971 = vrsqrt.f32 %v574_v5  ;;  %v567_v8 = vmul.f32 0.0625, %v547_v6  ;;  %v568_v9 = vmul.f32 0.0625, %v550_v7  ;;  %v2401_v5 = vld [vmem:[%s3751_s5] ss:$0 sm:$0xff] }
 0x152   : > { %v575_v10 = vadd.f32 1e-05, %v567_v8  ;;  %v576_v11 = vadd.f32 1e-05, %v568_v9 }
 0x153   : > { %v553_v12 = vpop.xlane.xlu1 %552  ;;  %v556_v13 = vpop.xlane.xlu0 %555 }
 0x154   : > { %2973 = vrsqrt.f32 %v575_v10  ;;  %v569_v14 = vmul.f32 0.0625, %v553_v12  ;;  %v570_v15 = vmul.f32 0.0625, %v556_v13 }
 0x155   : > { %2975 = vrsqrt.f32 %v576_v11 }
 0x156   : > { %v577_v16 = vadd.f32 1e-05, %v569_v14  ;;  %v578_v17 = vadd.f32 1e-05, %v570_v15 }
 0x157   : > { %v559_v18 = vpop.xlane.xlu1 %558  ;;  %v562_v19 = vpop.xlane.xlu0 %561 }
 0x158   : > { %2977 = vrsqrt.f32 %v577_v16  ;;  %v571_v20 = vmul.f32 0.0625, %v559_v18  ;;  %v572_v21 = vmul.f32 0.0625, %v562_v19 }
 0x159   : > { %2979 = vrsqrt.f32 %v578_v17 }
 0x15a   : > { %v2972_v22 = vpop.eup %2971  ;;  %v579_v23 = vadd.f32 1e-05, %v571_v20  ;;  %v580_v24 = vadd.f32 1e-05, %v572_v21 }
 0x15b   : > { %v565_v25 = vpop.xlane.xlu1 %564  ;;  %v590_v26 = vmul.f32 %v2972_v22, %v3259_v28  ;;  %v2400_v28 = vld [vmem:[%s3748_s2] ss:$0 sm:$0xff] }
 0x15c   : > { %2981 = vrsqrt.f32 %v579_v23  ;;  %v573_v27 = vmul.f32 0.0625, %v565_v25 }
 0x15d   : > { %2983 = vrsqrt.f32 %v580_v24  ;;  %v605_v35 = vmul.f32 %v2399_v30, %v590_v26 }
 0x15e   : > { %v2974_v31 = vpop.eup %2973  ;;  %v581_v32 = vadd.f32 1e-05, %v573_v27 }
 0x15f   : > { %v2976_v33 = vpop.eup %2975  ;;  %v591_v34 = vmul.f32 %v2974_v31, %v3267_v36  ;;  %v620_v43 = vadd.f32 %v2400_v28, %v605_v35 }
 0x160   : > { %v592_v38 = vmul.f32 %v2976_v33, %v3261_v29  ;;  %2985 = vrsqrt.f32 %v581_v32 }
 0x161   : > { %v606_v39 = vmul.f32 %v2399_v30, %v591_v34 }
 0x162   : > { %v2978_v40 = vpop.eup %2977  ;;  %v607_v45 = vmul.f32 %v2399_v30, %v592_v38 }
 0x163   : > { %v2980_v41 = vpop.eup %2979  ;;  %v593_v42 = vmul.f32 %v2978_v40, %v3269_v37  ;;  %v621_v44 = vadd.f32 %v2400_v28, %v606_v39 }
 0x164   : > { %v594_v48 = vmul.f32 %v2980_v41, %v3277_v46  ;;  %v622_v52 = vadd.f32 %v2400_v28, %v607_v45 }
 0x165   : > { %v653_v49 = vcombine.low %v620_v43, %v621_v44  ;;  %v608_v36 = vmul.f32 %v2399_v30, %v593_v42  ;;  %v2402_v3 = vcombine.high %v620_v43, %v621_v44 }
 0x166   : > { %v2982_v50 = vpop.eup %2981  ;;  %v609_v54 = vmul.f32 %v2399_v30, %v594_v48 }
 0x167   : > { %v2984_v51 = vpop.eup %2983  ;;  %v595_v29 = vmul.f32 %v2982_v50, %v3279_v47  ;;  %2586 = vmatprep.mubr.msk.f32.mxu0 %vm492_vm0, %v653_v49  ;;  %v623_v53 = vadd.f32 %v2400_v28, %v608_v36 }
 0x168   : > { %v596_v55 = vmul.f32 %v2984_v51, %v3287_v56  ;;  %v624_v46 = vadd.f32 %v2400_v28, %v609_v54 }
 0x169   : > { %v654_v58 = vcombine.low %v622_v52, %v623_v53  ;;  %v610_v37 = vmul.f32 %v2399_v30, %v595_v29  ;;  %v2403_v56 = vcombine.high %v622_v52, %v623_v53 }
 0x16a   : > { %v2986_v59 = vpop.eup %2985  ;;  %v611_v62 = vmul.f32 %v2399_v30, %v596_v55 }
 0x16b   : > { %v597_v60 = vmul.f32 %v2986_v59, %v3289_v57  ;;  %2587 = vmatmul.mubr.msk.f32.vlgmr.msra.gmra.mrb[0].mxu0 %vm492_vm0, %v654_v58  ;;  %v625_v61 = vadd.f32 %v2400_v28, %v610_v37 }
 0x16c   : > { %v626_v47 = vadd.f32 %v2400_v28, %v611_v62 }
 0x16d   : > { %v655_v63 = vcombine.low %v624_v46, %v625_v61  ;;  %v612_v0 = vmul.f32 %v2399_v30, %v597_v60  ;;  %v2404_v4 = vcombine.high %v624_v46, %v625_v61 }
 0x16f   : > { %2589 = vmatprep.mubr.msk.f32.mxu0 %vm492_vm0, %v655_v63  ;;  %v627_v1 = vadd.f32 %v2400_v28, %v612_v0 }
 0x171   : > { %v656_v2 = vcombine.low %v626_v47, %v627_v1  ;;  %v2405_v57 = vcombine.high %v626_v47, %v627_v1 }
 0x173   : > { %2590 = vmatmul.mubr.msk.f32.gmra.mrb[2].mxu0 %vm492_vm0, %v656_v2 }
 0x174   : > { %2592 = vmatprep.mubr.msk.f32.mxu0 %vm492_vm0, %v2402_v3 }
 0x177   : > { %2593 = vmatmul.mubr.msk.f32.gmra.mrb[4].mxu0 %vm492_vm0, %v2403_v56 }
 0x178   : > { %2595 = vmatprep.mubr.msk.f32.mxu0 %vm492_vm0, %v2404_v4 }
 0x17b   : > { %2596 = vmatmul.mubr.msk.f32.gmra.mrb[6].mxu0 %vm492_vm0, %v2405_v57  ;;  %v783_v57 = vld [vmem:[%s3754_s8 + $0x8] sm:$0xff] }
 0x23e   : > { %v2588_v6 = vpop.f32.mrb[0].mxu0 }
 0x23f   : > { %v3330_v7 = vadd.f32 %v2588_v6, %v2401_v5  ;;  %v743_v8 = vpop.f32.mrb[1].mxu0 }
 0x240   : > { %v3332_v9 = vadd.f32 %v2401_v5, %v743_v8  ;;  %v3437_v8 = vld [vmem:[%s3428_s29 + $0x8] sm:$0xff] }
 0x242   : > { %2606 = vmatprep.mubr.msk.f32.mxu0 %vm812_vm1, %v3332_v9  ;;  %v3338_v10 = vpack.i.bf16 %v3330_v7, %v3332_v9 }
 0x244   : > { %2892 = vrot.lane.b32.xlu0 %v3338_v10, %s3115_s16 }
 0x246   : > { %v2591_v11 = vpop.f32.mrb[2].mxu0 }
 0x247   : > { %v3341_v12 = vadd.f32 %v2591_v11, %v2401_v5  ;;  %v753_v13 = vpop.f32.mrb[3].mxu0 }
 0x248   : > { %v3343_v14 = vadd.f32 %v2401_v5, %v753_v13  ;;  %2912 = vrot.lane.b32.xlu0 %v3338_v10, %s3116_s30 }
 0x24a   : > { %v2594_v15 = vpop.f32.mrb[4].mxu0  ;;  %v3348_v16 = vpack.i.bf16 %v3341_v12, %v3343_v14 }
 0x24b   : > { %v3350_v17 = vadd.f32 %v2594_v15, %v2401_v5  ;;  %v763_v18 = vpop.f32.mrb[5].mxu0  ;;  %v3440_v15 = vld [vmem:[%s3428_s29] sm:$0xff] }
 0x24c   : > { %v3352_v19 = vadd.f32 %v2401_v5, %v763_v18  ;;  %2897 = vrot.lane.b32.xlu1 %v3348_v16, %s3115_s16 }
 0x24e   : > { %v2597_v20 = vpop.f32.mrb[6].mxu0  ;;  %v3357_v21 = vpack.i.bf16 %v3350_v17, %v3352_v19 }
 0x24f   : > { %v3359_v22 = vadd.f32 %v2597_v20, %v2401_v5  ;;  %v773_v23 = vpop.f32.mrb[7].mxu0  ;;  %v785_v20 = vld [vmem:[%s3754_s8 + $0x18] sm:$0xff] }
 0x250   : > { %v3361_v24 = vadd.f32 %v2401_v5, %v773_v23  ;;  %2922 = vrot.lane.b32.xlu0 %v3357_v21, %s3116_s30  ;;  %2902 = vrot.lane.b32.xlu1 %v3357_v21, %s3115_s16  ;;  %v782_v5 = vld [vmem:[%s3754_s8] sm:$0xff]  ;;  %v784_v23 = vld [vmem:[%s3754_s8 + $0x10] sm:$0xff] }
 0x252   : > { %v3367_v25 = vpack.i.bf16 %v3359_v22, %v3361_v24 }
 0x254   : > { %2937 = vrot.lane.b32.xlu0 %v3357_v21, %s3117_s23  ;;  %2907 = vrot.lane.b32.xlu1 %v3367_v25, %s3115_s16 }
 0x258   : > { %2917 = vrot.lane.b32.xlu1 %v3348_v16, %s3116_s30 }
 0x25c   : > { %2927 = vrot.lane.b32.xlu1 %v3338_v10, %s3117_s23 }
 0x260   : > { %2932 = vrot.lane.b32.xlu1 %v3348_v16, %s3117_s23 }
 0x264   : > { %2942 = vrot.lane.b32.xlu1 %v3367_v25, %s3116_s30 }
 0x268   : > { %2947 = vrot.lane.b32.xlu1 %v3367_v25, %s3117_s23 }
 0x2b6   : > { %v2893_v26 = vpop.permute.xlu0 %2892 }
 0x2b7   : > { %v2895_v27 = vunpack.i.h.bf16 %v2893_v26  ;;  %v2894_v30 = vunpack.i.l.bf16 %v2893_v26 }
 0x2b9   : > { %v2742_v32 = vpack.c.bf16 %v2895_v27, %v2894_v30 }
 0x2ba   : > { %v2913_v33 = vpop.permute.xlu0 %2912 }
 0x2bb   : > { %v2915_v34 = vunpack.i.h.bf16 %v2913_v33  ;;  %v2914_v35 = vunpack.i.l.bf16 %v2913_v33  ;;  %2744 = vmatprep.subr.msk.bf16.mxu0 %vm3378_vm2, %v2742_v32 }
 0x2bc   : > { %2747 = vmatpush3.bf16.xpose.msk.msra.mxu0 %vm3378_vm2, %v2742_v32  ;;  %v3451_v32 = vld [vmem:[%s3428_s29 + $0x18] sm:$0xff] }
 0x2bd   : > { %v2766_v38 = vpack.c.bf16 %v2915_v34, %v2914_v35 }
 0x2be   : > { %v2898_v28 = vpop.permute.xlu1 %2897 }
 0x2bf   : > { %v2900_v39 = vunpack.i.h.bf16 %v2898_v28  ;;  %v2899_v40 = vunpack.i.l.bf16 %v2898_v28  ;;  %2767 = vmatprep.subr.bf16.mxu1 %v2766_v38 }
 0x2c0   : > { %2769 = vmatpush3.bf16.msra.mxu1 %v2766_v38  ;;  %v3455_v38 = vld [vmem:[%s3428_s29 + $0x10] sm:$0xff] }
 0x2c1   : > { %v2748_v41 = vpack.c.bf16 %v2900_v39, %v2899_v40 }
 0x2c2   : > { %v2903_v42 = vpop.permute.xlu1 %2902  ;;  %v2923_v53 = vpop.permute.xlu0 %2922 }
 0x2c3   : > { %v2905_v43 = vunpack.i.h.bf16 %v2903_v42  ;;  %v2904_v44 = vunpack.i.l.bf16 %v2903_v42  ;;  %2750 = vmatprep.subr.msk.bf16.mxu0 %vm3378_vm2, %v2748_v41  ;;  %v2925_v58 = vunpack.i.h.bf16 %v2923_v53  ;;  %v2924_v37 = vunpack.i.l.bf16 %v2923_v53 }
 0x2c4   : > { %2753 = vmatpush3.bf16.xpose.msk.msra.mxu0 %vm3378_vm2, %v2748_v41 }
 0x2c5   : > { %v2754_v45 = vpack.c.bf16 %v2905_v43, %v2904_v44  ;;  %v2774_v62 = vpack.c.bf16 %v2925_v58, %v2924_v37 }
 0x2c6   : > { %v2908_v48 = vpop.permute.xlu1 %2907  ;;  %v2938_v1 = vpop.permute.xlu0 %2937 }
 0x2c7   : > { %v2910_v49 = vunpack.i.h.bf16 %v2908_v48  ;;  %v2909_v36 = vunpack.i.l.bf16 %v2908_v48  ;;  %2756 = vmatprep.subr.msk.bf16.mxu0 %vm3378_vm2, %v2754_v45  ;;  %v2940_v2 = vunpack.i.h.bf16 %v2938_v1  ;;  %v2939_v3 = vunpack.i.l.bf16 %v2938_v1 }
 0x2c9   : > { %v2760_v51 = vpack.c.bf16 %v2910_v49, %v2909_v36  ;;  %v3417_v4 = vpack.c.bf16 %v2940_v2, %v2939_v3 }
 0x2ca   : > { %v2918_v50 = vpop.permute.xlu1 %2917 }
 0x2cb   : > { %v2920_v29 = vunpack.i.h.bf16 %v2918_v50  ;;  %v2919_v52 = vunpack.i.l.bf16 %v2918_v50  ;;  %2607 = vmatmul.mubr.msk.f32.vlgmr.msra.gmra.mrb[8].mxu0 %vm812_vm1, %v3330_v7  ;;  %v3466_v50 = vld [vmem:[%s3428_s29 + $0x20] sm:$0xff] }
 0x2cc   : > { %2609 = vmatprep.mubr.msk.f32.mxu0 %vm812_vm1, %v3343_v14  ;;  %2759 = vmatpush3.bf16.xpose.msk.msra.mxu0 %vm3378_vm2, %v2754_v45  ;;  %v3463_v45 = vld [vmem:[%s3428_s29 + $0x28] sm:$0xff] }
 0x2cd   : > { %v2770_v54 = vpack.c.bf16 %v2920_v29, %v2919_v52  ;;  %2762 = vmatprep.subr.msk.bf16.mxu0 %vm3378_vm2, %v2760_v51  ;;  %v3470_v52 = vld [vmem:[%s3428_s29 + $0x38] sm:$0xff] }
 0x2ce   : > { %v2928_v55 = vpop.permute.xlu1 %2927 }
 0x2cf   : > { %v2930_v59 = vunpack.i.h.bf16 %v2928_v55  ;;  %v2929_v60 = vunpack.i.l.bf16 %v2928_v55  ;;  %2610 = vmatmul.mubr.msk.f32.gmra.mrb[10].mxu0 %vm812_vm1, %v3341_v12  ;;  %2771 = vmatprep.subr.bf16.mxu1 %v2770_v54 }
 0x2d0   : > { %2620 = vmatprep.mubr.msk.f32.mxu0 %vm812_vm1, %v3352_v19  ;;  %2773 = vmatpush3.bf16.msra.mxu1 %v2770_v54 }
 0x2d1   : > { %v3404_v46 = vpack.c.bf16 %v2930_v59, %v2929_v60  ;;  %v3475_v59 = vld [vmem:[%s3428_s29 + $0x30] sm:$0xff] }
 0x2d2   : > { %v3406_v61 = vpop.permute.xlu1 %2932 }
 0x2d3   : > { %2784 = vmatprep.subr.msk.bf16.mxu1 %vm3378_vm2, %v3404_v46 }
 0x2d4   : > { %2765 = vmatpush3.bf16.xpose.msk.msra.mxu0 %vm3378_vm2, %v2760_v51 }
 0x2d5   : > { %2775 = vmatprep.subr.bf16.mxu0 %v2774_v62 }
 0x2d6   : > { %v2943_v63 = vpop.permute.xlu1 %2942 }
 0x2d7   : > { %v2945_v0 = vunpack.i.h.bf16 %v2943_v63  ;;  %v2944_v47 = vunpack.i.l.bf16 %v2943_v63 }
 0x2d9   : > { %v2778_v56 = vpack.c.bf16 %v2945_v0, %v2944_v47 }
 0x2da   : > { %v3486_v1 = vpop.permute.xlu1 %2947 }
 0x2db   : > { %2621 = vmatmul.mubr.msk.f32.vlgmr.msra.gmra.mrb[12].mxu0 %vm812_vm1, %v3350_v17 }
 0x2dc   : > { %2623 = vmatprep.mubr.msk.f32.mxu0 %vm812_vm1, %v3361_v24  ;;  %2777 = vmatpush3.bf16.msra.mxu0 %v2774_v62 }
 0x2dd   : > { %2779 = vmatprep.subr.bf16.mxu0 %v2778_v56 }
 0x2df   : > { %2624 = vmatmul.mubr.msk.f32.gmra.mrb[14].mxu0 %vm812_vm1, %v3359_v22 }
 0x2e0   : > { %2781 = vmatpush3.bf16.msra.mxu0 %v2778_v56 }
 0x2e1   : > { %2796 = vmatprep.subr.msk.bf16.mxu0 %vm3378_vm2, %v3417_v4 }
 0x39e   : > { %v2608_v6 = vpop.f32.mrb[8].mxu0 }
 0x39f   : > { %v901_v11 = vadd.f32 %v2608_v6, %v783_v57  ;;  %v895_v13 = vpop.f32.mrb[9].mxu0 }
 0x3a0   : > { %v896_v18 = vadd.f32 %v895_v13, %v782_v5 }
 0x3a1   : > { %v1028_v26 = vadd.f32 %v901_v11, %v3437_v8 }
 0x3a2   : > { %v2611_v27 = vpop.f32.mrb[10].mxu0  ;;  %v1027_v30 = vadd.f32 %v896_v18, %v3440_v15 }
 0x3a3   : > { %v911_v33 = vadd.f32 %v2611_v27, %v785_v20  ;;  %v905_v34 = vpop.f32.mrb[11].mxu0  ;;  %v1039_v35 = vsel %vm1035_vm3, %v1028_v26, -inf }
 0x3a4   : > { %v906_v28 = vadd.f32 %v905_v34, %v784_v23  ;;  %1040 = vmax.xlane.f32.xlu1 %v1039_v35  ;;  %v1036_v39 = vsel %vm1035_vm3, %v1027_v30, -inf }
 0x3a5   : > { %1037 = vmax.xlane.f32.xlu0 %v1036_v39  ;;  %v1030_v40 = vadd.f32 %v911_v33, %v3451_v32 }
 0x3a6   : > { %v1029_v41 = vadd.f32 %v906_v28, %v3455_v38 }
 0x3a7   : > { %v1045_v42 = vsel %vm1035_vm3, %v1030_v40, -inf }
 0x3a8   : > { %1046 = vmax.xlane.f32.xlu1 %v1045_v42  ;;  %v1042_v43 = vsel %vm1035_vm3, %v1029_v41, -inf }
 0x3a9   : > { %1043 = vmax.xlane.f32.xlu0 %v1042_v43 }
 0x3ae   : > { %v2622_v44 = vpop.f32.mrb[12].mxu0 }
 0x3af   : > { %v1014_v48 = vadd.f32 %v2622_v44, %v783_v57  ;;  %v1008_v49 = vpop.f32.mrb[13].mxu0 }
 0x3b0   : > { %v1009_v36 = vadd.f32 %v1008_v49, %v782_v5 }
 0x3b1   : > { %v1032_v51 = vadd.f32 %v1014_v48, %v3463_v45 }
 0x3b2   : > { %v2625_v29 = vpop.f32.mrb[14].mxu0  ;;  %v1031_v58 = vadd.f32 %v1009_v36, %v3466_v50 }
 0x3b3   : > { %v1024_v53 = vadd.f32 %v2625_v29, %v785_v20  ;;  %v1018_v54 = vpop.f32.mrb[15].mxu0  ;;  %v1051_v55 = vsel %vm1035_vm3, %v1032_v51, -inf }
 0x3b4   : > { %v1019_v37 = vadd.f32 %v1018_v54, %v784_v23  ;;  %1052 = vmax.xlane.f32.xlu0 %v1051_v55  ;;  %v1048_v63 = vsel %vm1035_vm3, %v1031_v58, -inf }
 0x3b5   : > { %v1034_v60 = vadd.f32 %v1024_v53, %v3470_v52 }
 0x3b6   : > { %v1033_v0 = vadd.f32 %v1019_v37, %v3475_v59 }
 0x3b7   : > { %v1057_v62 = vsel %vm1035_vm3, %v1034_v60, -inf }
 0x3b8   : > { %1058 = vmax.xlane.f32.xlu1 %v1057_v62  ;;  %1049 = vmax.xlane.f32.xlu0 %v1048_v63  ;;  %v1054_v47 = vsel %vm1035_vm3, %v1033_v0, -inf }
 0x3bc   : > { %1055 = vmax.xlane.f32.xlu0 %v1054_v47 }
 0x3c9   : > { %1344 = vrot.lane.b32.xlu1 %v3330_v7, %s3118_s27 }
 0x3d2   : > { %1342 = vrot.lane.b32.xlu0 %v3332_v9, %s3118_s27 }
 0x431   : > { %v1041_v2 = vpop.xlane.xlu1 %1040 }
 0x432   : > { %v1061_v3 = vsub.f32 %v1028_v26, %v1041_v2  ;;  %v1038_v56 = vpop.xlane.xlu0 %1037 }
 0x433   : > { %v1060_v57 = vsub.f32 %v1027_v30, %v1038_v56 }
 0x434   : > { %v1070_v5 = vmul.f32 1.442695, %v1061_v3 }
 0x435   : > { %v1068_v6 = vmul.f32 1.442695, %v1060_v57  ;;  %v1047_v11 = vpop.xlane.xlu1 %1046 }
 0x436   : > { %2987 = vpow2.f32 %v1070_v5  ;;  %v1063_v13 = vsub.f32 %v1030_v40, %v1047_v11  ;;  %v1044_v18 = vpop.xlane.xlu0 %1043  ;;  %v2934_v5 = vunpack.i.l.bf16 %v3406_v61 }
 0x437   : > { %2989 = vpow2.f32 %v1068_v6  ;;  %v1062_v20 = vsub.f32 %v1029_v41, %v1044_v18 }
 0x438   : > { %v1074_v23 = vmul.f32 1.442695, %v1063_v13 }
 0x439   : > { %v1072_v27 = vmul.f32 1.442695, %v1062_v20 }
 0x43a   : > { %2991 = vpow2.f32 %v1074_v23 }
 0x43b   : > { %2993 = vpow2.f32 %v1072_v27 }
 0x440   : > { %v2988_v7 = vpop.eup %2987 }
 0x441   : > { %v2990_v9 = vpop.eup %2989  ;;  %v1053_v33 = vpop.xlane.xlu0 %1052  ;;  %v1087_v34 = vsel %vm1035_vm3, %v2988_v7, 0.0 }
 0x442   : > { %v1065_v26 = vsub.f32 %v1032_v51, %v1053_v33  ;;  %1088 = vadd.xlane.f32.xlu1 %v1087_v34  ;;  %v1084_v30 = vsel %vm1035_vm3, %v2990_v9, 0.0 }
 0x443   : > { %1085 = vadd.xlane.f32.xlu0 %v1084_v30 }
 0x444   : > { %v3490_v35 = vpop.eup %2991  ;;  %v1078_v28 = vmul.f32 1.442695, %v1065_v26 }
 0x445   : > { %v2994_v39 = vpop.eup %2993  ;;  %v1050_v40 = vpop.xlane.xlu0 %1049  ;;  %v1093_v41 = vsel %vm1035_vm3, %v3490_v35, 0.0 }
 0x446   : > { %2995 = vpow2.f32 %v1078_v28  ;;  %v1064_v42 = vsub.f32 %v1031_v58, %v1050_v40  ;;  %1094 = vadd.xlane.f32.xlu1 %v1093_v41  ;;  %v1090_v43 = vsel %vm1035_vm3, %v2994_v39, 0.0  ;;  %v1059_v53 = vpop.xlane.xlu1 %1058 }
 0x447   : > { %1091 = vadd.xlane.f32.xlu0 %v1090_v43  ;;  %v1067_v55 = vsub.f32 %v1034_v60, %v1059_v53  ;;  %v786_v53 = vld [vmem:[%s3754_s8 + $0x20] sm:$0xff] }
 0x448   : > { %v1076_v44 = vmul.f32 1.442695, %v1064_v42 }
 0x449   : > { %v1056_v29 = vpop.xlane.xlu0 %1055  ;;  %v1082_v37 = vmul.f32 1.442695, %v1067_v55 }
 0x44a   : > { %2997 = vpow2.f32 %v1076_v44  ;;  %v1066_v54 = vsub.f32 %v1033_v0, %v1056_v29  ;;  %v787_v29 = vld [vmem:[%s3754_s8 + $0x28] sm:$0xff] }
 0x44c   : > { %v1080_v58 = vmul.f32 1.442695, %v1066_v54 }
 0x44d   : > { %v1343_v60 = vpop.permute.xlu0 %1342 }
 0x44e   : > { %2999 = vpow2.f32 %v1080_v58 }
 0x44f   : > { %3001 = vpow2.f32 %v1082_v37 }
 0x450   : > { %v3495_v48 = vpop.eup %2995 }
 0x451   : > { %v1099_v49 = vsel %vm1035_vm3, %v3495_v48, 0.0 }
 0x452   : > { %1100 = vadd.xlane.f32.xlu1 %v1099_v49 }
 0x454   : > { %v3499_v36 = vpop.eup %2997 }
 0x455   : > { %v1096_v51 = vsel %vm1035_vm3, %v3499_v36, 0.0 }
 0x456   : > { %1097 = vadd.xlane.f32.xlu0 %v1096_v51 }
 0x458   : > { %v3509_v62 = vpop.eup %2999 }
 0x459   : > { %v3511_v63 = vpop.eup %3001 }
 0x463   : > { %1348 = vrot.lane.b32.xlu1 %v3341_v12, %s3118_s27  ;;  %v1102_v12 = vsel %vm1035_vm3, %v3509_v62, 0.0 }
 0x467   : > { %1461 = vrot.lane.b32.xlu1 %v3350_v17, %s3118_s27  ;;  %v1105_v17 = vsel %vm1035_vm3, %v3511_v63, 0.0 }
 0x46c   : > { %1346 = vrot.lane.b32.xlu0 %v3343_v14, %s3118_s27  ;;  %v1345_v14 = vpop.permute.xlu1 %1344 }
 0x48b   : > { %1103 = vadd.xlane.f32.xlu1 %v1102_v12  ;;  %1106 = vadd.xlane.f32.xlu0 %v1105_v17 }
 0x49c   : > { %1465 = vrot.lane.b32.xlu1 %v3359_v22, %s3118_s27  ;;  %v2935_v22 = vunpack.i.h.bf16 %v3406_v61 }
 0x49e   : > { %v2788_v13 = vpack.c.bf16 %v2935_v22, %v2934_v5 }
 0x4a1   : > { %1459 = vrot.lane.b32.xlu0 %v3352_v19, %s3118_s27 }
 0x4a5   : > { %1463 = vrot.lane.b32.xlu0 %v3361_v24, %s3118_s27 }
 0x4cf   : > { %v1089_v0 = vpop.xlane.xlu1 %1088 }
 0x4d0   : > { %3003 = vrcp.f32 %v1089_v0  ;;  %v1086_v47 = vpop.xlane.xlu0 %1085 }
 0x4d1   : > { %3005 = vrcp.f32 %v1086_v47 }
 0x4d3   : > { %v1095_v2 = vpop.xlane.xlu1 %1094 }
 0x4d4   : > { %3007 = vrcp.f32 %v1095_v2  ;;  %v1092_v3 = vpop.xlane.xlu0 %1091 }
 0x4d5   : > { %3009 = vrcp.f32 %v1092_v3 }
 0x4da   : > { %v3004_v56 = vpop.eup %3003 }
 0x4db   : > { %v3006_v57 = vpop.eup %3005  ;;  %v1111_v6 = vmul.f32 %v3004_v56, %v2988_v7  ;;  %v2950_v7 = vunpack.i.h.bf16 %v3486_v1 }
 0x4dc   : > { %v1109_v19 = vmul.f32 %v3006_v57, %v2990_v9  ;;  %v2949_v9 = vunpack.i.l.bf16 %v3486_v1 }
 0x4de   : > { %v3008_v11 = vpop.eup %3007  ;;  %2634 = vmatprep.mubr.msk.f32.mxu1 %vm1035_vm3, %v1109_v19 }
 0x4df   : > { %v3010_v24 = vpop.eup %3009  ;;  %2635 = vmatmul.mubr.msk.f32.vlgmr.msra.gmra.mrb[0].mxu1 %vm1035_vm3, %v1111_v6  ;;  %v1101_v20 = vpop.xlane.xlu1 %1100  ;;  %v1115_v61 = vmul.f32 %v3008_v11, %v3490_v35  ;;  %v2800_v35 = vpack.c.bf16 %v2950_v7, %v2949_v9 }
 0x4e0   : > { %2787 = vmatpush3.bf16.xpose.msk.msra.mxu1 %vm3378_vm2, %v3404_v46  ;;  %v1113_v18 = vmul.f32 %v3010_v24, %v2994_v39  ;;  %3011 = vrcp.f32 %v1101_v20 }
 0x4e1   : > { %2790 = vmatprep.subr.msk.bf16.mxu1 %vm3378_vm2, %v2788_v13 }
 0x4e2   : > { %2637 = vmatprep.mubr.msk.f32.mxu1 %vm1035_vm3, %v1113_v18 }
 0x4e3   : > { %2638 = vmatmul.mubr.msk.f32.gmra.mrb[2].mxu1 %vm1035_vm3, %v1115_v61  ;;  %v1098_v23 = vpop.xlane.xlu0 %1097  ;;  %v1349_v30 = vpop.permute.xlu1 %1348 }
 0x4e4   : > { %2662 = vmatprep.mubr.msk.f32.mxu1 %vm812_vm1, %v1343_v60  ;;  %3013 = vrcp.f32 %v1098_v23 }
 0x4e7   : > { %v1347_v33 = vpop.permute.xlu0 %1346  ;;  %v1462_v1 = vpop.permute.xlu1 %1461 }
 0x4e8   : > { %2793 = vmatpush3.bf16.xpose.msk.msra.mxu1 %vm3378_vm2, %v2788_v13 }
 0x4ea   : > { %v3012_v46 = vpop.eup %3011 }
 0x4eb   : > { %v1119_v26 = vmul.f32 %v3012_v46, %v3495_v48 }
 0x4ee   : > { %v3014_v27 = vpop.eup %3013 }
 0x4ef   : > { %2663 = vmatmul.mubr.msk.f32.vlgmr.msra.gmra.mrb[4].mxu1 %vm812_vm1, %v1345_v14  ;;  %v1117_v34 = vmul.f32 %v3014_v27, %v3499_v36 }
 0x4f0   : > { %2665 = vmatprep.mubr.msk.f32.mxu1 %vm812_vm1, %v1347_v33 }
 0x4f1   : > { %2648 = vmatprep.mubr.msk.f32.mxu0 %vm1035_vm3, %v1117_v34 }
 0x4f2   : > { %2649 = vmatmul.mubr.msk.f32.vlgmr.msra.gmra.mrb[16].mxu0 %vm1035_vm3, %v1119_v26 }
 0x4f3   : > { %2666 = vmatmul.mubr.msk.f32.gmra.mrb[6].mxu1 %vm812_vm1, %v1349_v30  ;;  %2799 = vmatpush3.bf16.xpose.msk.msra.mxu0 %vm3378_vm2, %v3417_v4 }
 0x4f4   : > { %2802 = vmatprep.subr.msk.bf16.mxu0 %vm3378_vm2, %v2800_v35 }
 0x4fb   : > { %2805 = vmatpush3.bf16.xpose.msk.msra.mxu0 %vm3378_vm2, %v2800_v35 }
 0x518   : > { %v1104_v28 = vpop.xlane.xlu1 %1103  ;;  %v1107_v39 = vpop.xlane.xlu0 %1106 }
 0x519   : > { %3015 = vrcp.f32 %v1104_v28 }
 0x51a   : > { %3017 = vrcp.f32 %v1107_v39 }
 0x51c   : > { %v1460_v43 = vpop.permute.xlu0 %1459  ;;  %v1466_v4 = vpop.permute.xlu1 %1465 }
 0x520   : > { %v1464_v31 = vpop.permute.xlu0 %1463 }
 0x523   : > { %v3016_v40 = vpop.eup %3015 }
 0x524   : > { %v3018_v41 = vpop.eup %3017  ;;  %v1121_v42 = vmul.f32 %v3016_v40, %v3509_v62  ;;  %v789_v62 = vld [vmem:[%s3754_s8 + $0x38] sm:$0xff] }
 0x525   : > { %v1123_v44 = vmul.f32 %v3018_v41, %v3511_v63  ;;  %v788_v63 = vld [vmem:[%s3754_s8 + $0x30] sm:$0xff] }
 0x526   : > { %2651 = vmatprep.mubr.msk.f32.mxu0 %vm1035_vm3, %v1121_v42 }
 0x527   : > { %2652 = vmatmul.mubr.msk.f32.gmra.mrb[18].mxu0 %vm1035_vm3, %v1123_v44 }
 0x528   : > { %2676 = vmatprep.mubr.msk.f32.mxu0 %vm812_vm1, %v1460_v43 }
 0x52b   : > { %2677 = vmatmul.mubr.msk.f32.vlgmr.msra.gmra.mrb[20].mxu0 %vm812_vm1, %v1462_v1 }
 0x52c   : > { %2679 = vmatprep.mubr.msk.f32.mxu0 %vm812_vm1, %v1464_v31 }
 0x52f   : > { %2680 = vmatmul.mubr.msk.f32.gmra.mrb[22].mxu0 %vm812_vm1, %v1466_v4 }
 0x5b2   : > { %v3562_v48 = vpop.f32.mrb[0].mxu1 }
 0x5b3   : > { %v3564_v49 = vpop.f32.mrb[1].mxu1 }
 0x5b6   : > { %v3566_v36 = vpop.f32.mrb[2].mxu1 }
 0x5b7   : > { %v3568_v51 = vpop.f32.mrb[3].mxu1 }
 0x5c2   : > { %v2664_v54 = vpop.f32.mrb[4].mxu1 }
 0x5c3   : > { %v1446_v55 = vadd.f32 %v2664_v54, %v787_v29  ;;  %v1440_v58 = vpop.f32.mrb[5].mxu1 }
 0x5c4   : > { %v1441_v37 = vadd.f32 %v1440_v58, %v786_v53 }
 0x5c5   : > { %v1577_v12 = vadd.f32 %v1446_v55, %v3437_v8  ;;  %v3583_v17 = vpop.f32.mrb[16].mxu0 }
 0x5c6   : > { %v2667_v14 = vpop.f32.mrb[6].mxu1  ;;  %v1576_v60 = vadd.f32 %v1441_v37, %v3440_v15  ;;  %v3586_v47 = vpop.f32.mrb[17].mxu0 }
 0x5c7   : > { %v1456_v0 = vadd.f32 %v2667_v14, %v789_v62  ;;  %v1450_v2 = vpop.f32.mrb[7].mxu1  ;;  %v1587_v3 = vsel %vm1035_vm3, %v1577_v12, -inf }
 0x5c8   : > { %v1451_v56 = vadd.f32 %v1450_v2, %v788_v63  ;;  %1588 = vmax.xlane.f32.xlu1 %v1587_v3  ;;  %v1584_v57 = vsel %vm1035_vm3, %v1576_v60, -inf }
 0x5c9   : > { %1585 = vmax.xlane.f32.xlu0 %v1584_v57  ;;  %v1579_v22 = vadd.f32 %v1456_v0, %v3451_v32 }
 0x5ca   : > { %v1578_v5 = vadd.f32 %v1451_v56, %v3455_v38 }
 0x5cb   : > { %v1593_v8 = vsel %vm1035_vm3, %v1579_v22, -inf }
 0x5cc   : > { %v1590_v15 = vsel %vm1035_vm3, %v1578_v5, -inf }
 0x5cd   : > { %1594 = vmax.xlane.f32.xlu0 %v1593_v8 }
 0x5d1   : > { %1591 = vmax.xlane.f32.xlu0 %v1590_v15 }
 0x5fa   : > { %v3594_v19 = vpop.f32.mrb[18].mxu0 }
 0x5fb   : > { %v3596_v6 = vpop.f32.mrb[19].mxu0 }
 0x5fe   : > { %v2678_v11 = vpop.f32.mrb[20].mxu0 }
 0x5ff   : > { %v1563_v24 = vadd.f32 %v2678_v11, %v787_v29  ;;  %v1557_v13 = vpop.f32.mrb[21].mxu0 }
 0x600   : > { %v1558_v18 = vadd.f32 %v1557_v13, %v786_v53 }
 0x601   : > { %v1581_v20 = vadd.f32 %v1563_v24, %v3463_v45 }
 0x602   : > { %v2681_v61 = vpop.f32.mrb[22].mxu0  ;;  %v1580_v32 = vadd.f32 %v1558_v18, %v3466_v50 }
 0x603   : > { %v1573_v23 = vadd.f32 %v2681_v61, %v789_v62  ;;  %v1567_v46 = vpop.f32.mrb[23].mxu0  ;;  %v1599_v38 = vsel %vm1035_vm3, %v1581_v20, -inf }
 0x604   : > { %v1568_v27 = vadd.f32 %v1567_v46, %v788_v63  ;;  %1600 = vmax.xlane.f32.xlu1 %v1599_v38  ;;  %v1596_v7 = vsel %vm1035_vm3, %v1580_v32, -inf }
 0x605   : > { %1597 = vmax.xlane.f32.xlu0 %v1596_v7  ;;  %v1583_v9 = vadd.f32 %v1573_v23, %v3470_v52 }
 0x606   : > { %v1582_v33 = vadd.f32 %v1568_v27, %v3475_v59 }
 0x607   : > { %v1605_v34 = vsel %vm1035_vm3, %v1583_v9, -inf }
 0x608   : > { %1606 = vmax.xlane.f32.xlu1 %v1605_v34  ;;  %v1602_v45 = vsel %vm1035_vm3, %v1582_v33, -inf }
 0x609   : > { %1603 = vmax.xlane.f32.xlu0 %v1602_v45 }
 0x655   : > { %v1589_v50 = vpop.xlane.xlu1 %1588 }
 0x656   : > { %v1609_v26 = vsub.f32 %v1577_v12, %v1589_v50  ;;  %v1586_v30 = vpop.xlane.xlu0 %1585 }
 0x657   : > { %v1608_v35 = vsub.f32 %v1576_v60, %v1586_v30 }
 0x658   : > { %v1618_v1 = vmul.f32 1.442695, %v1609_v26 }
 0x659   : > { %v1616_v28 = vmul.f32 1.442695, %v1608_v35 }
 0x65a   : > { %3019 = vpow2.f32 %v1618_v1  ;;  %v1595_v39 = vpop.xlane.xlu0 %1594 }
 0x65b   : > { %3021 = vpow2.f32 %v1616_v28  ;;  %v1611_v40 = vsub.f32 %v1579_v22, %v1595_v39 }
 0x65d   : > { %v1622_v41 = vmul.f32 1.442695, %v1611_v40 }
 0x65e   : > { %v1592_v52 = vpop.xlane.xlu0 %1591 }
 0x65f   : > { %3023 = vpow2.f32 %v1622_v41  ;;  %v1610_v59 = vsub.f32 %v1578_v5, %v1592_v52 }
 0x661   : > { %v1620_v42 = vmul.f32 1.442695, %v1610_v59 }
 0x663   : > { %3025 = vpow2.f32 %v1620_v42 }
 0x664   : > { %v3606_v43 = vpop.eup %3019 }
 0x665   : > { %v3022_v44 = vpop.eup %3021  ;;  %v1635_v31 = vsel %vm1035_vm3, %v3606_v43, 0.0 }
 0x666   : > { %1636 = vadd.xlane.f32.xlu1 %v1635_v31  ;;  %v1632_v4 = vsel %vm1035_vm3, %v3022_v44, 0.0  ;;  %v799_v31 = vld [vmem:[%s3752_s6 + $0x8] sm:$0xff] }
 0x667   : > { %1633 = vadd.xlane.f32.xlu0 %v1632_v4 }
 0x669   : > { %v3611_v29 = vpop.eup %3023 }
 0x66a   : > { %v1641_v53 = vsel %vm1035_vm3, %v3611_v29, 0.0 }
 0x66b   : > { %1642 = vadd.xlane.f32.xlu1 %v1641_v53 }
 0x66d   : > { %v3615_v54 = vpop.eup %3025 }
 0x66e   : > { %v1638_v55 = vsel %vm1035_vm3, %v3615_v54, 0.0 }
 0x66f   : > { %1639 = vadd.xlane.f32.xlu0 %v1638_v55 }
 0x691   : > { %v1601_v58 = vpop.xlane.xlu1 %1600 }
 0x692   : > { %v1613_v37 = vsub.f32 %v1581_v20, %v1601_v58  ;;  %v1598_v62 = vpop.xlane.xlu0 %1597 }
 0x693   : > { %v1612_v63 = vsub.f32 %v1580_v32, %v1598_v62 }
 0x694   : > { %v1626_v12 = vmul.f32 1.442695, %v1613_v37 }
 0x695   : > { %v1624_v14 = vmul.f32 1.442695, %v1612_v63  ;;  %v1607_v60 = vpop.xlane.xlu1 %1606 }
 0x696   : > { %3027 = vpow2.f32 %v1626_v12  ;;  %v1615_v0 = vsub.f32 %v1583_v9, %v1607_v60  ;;  %v1604_v2 = vpop.xlane.xlu0 %1603 }
 0x697   : > { %3029 = vpow2.f32 %v1624_v14  ;;  %v1614_v3 = vsub.f32 %v1582_v33, %v1604_v2 }
 0x698   : > { %v1630_v56 = vmul.f32 1.442695, %v1615_v0 }
 0x699   : > { %v1628_v57 = vmul.f32 1.442695, %v1614_v3 }
 0x69a   : > { %3031 = vpow2.f32 %v1630_v56 }
 0x69b   : > { %3033 = vpow2.f32 %v1628_v57 }
 0x6a0   : > { %v3619_v22 = vpop.eup %3027 }
 0x6a1   : > { %v3030_v8 = vpop.eup %3029  ;;  %v1647_v5 = vsel %vm1035_vm3, %v3619_v22, 0.0 }
 0x6a2   : > { %1648 = vadd.xlane.f32.xlu1 %v1647_v5  ;;  %v1644_v15 = vsel %vm1035_vm3, %v3030_v8, 0.0 }
 0x6a3   : > { %1645 = vadd.xlane.f32.xlu0 %v1644_v15 }
 0x6a4   : > { %v3624_v11 = vpop.eup %3031 }
 0x6a5   : > { %v3626_v24 = vpop.eup %3033  ;;  %v1653_v13 = vsel %vm1035_vm3, %v3624_v11, 0.0 }
 0x6a6   : > { %1654 = vadd.xlane.f32.xlu1 %v1653_v13  ;;  %v1650_v18 = vsel %vm1035_vm3, %v3626_v24, 0.0 }
 0x6a7   : > { %1651 = vadd.xlane.f32.xlu0 %v1650_v18 }
 0x6b7   : > { %2957 = vrot.lane.b32.xlu1 %v3348_v16, %s3119_s25 }
 0x6bb   : > { %2962 = vrot.lane.b32.xlu1 %v3357_v21, %s3119_s25 }
 0x6bd   : > { %2952 = vrot.lane.b32.xlu0 %v3338_v10, %s3119_s25 }
 0x6bf   : > { %2967 = vrot.lane.b32.xlu1 %v3367_v25, %s3119_s25 }
 0x6f3   : > { %v1637_v23 = vpop.xlane.xlu1 %1636 }
 0x6f4   : > { %v1634_v20 = vpop.xlane.xlu0 %1633 }
 0x6f5   : > { %3035 = vrcp.f32 %v1634_v20 }
 0x6f8   : > { %v1643_v46 = vpop.xlane.xlu1 %1642 }
 0x6fc   : > { %v1640_v38 = vpop.xlane.xlu0 %1639 }
 0x6ff   : > { %v3036_v61 = vpop.eup %3035 }
 0x700   : > { %v1657_v32 = vmul.f32 %v3036_v61, %v3022_v44 }
 0x702   : > { %2690 = vmatprep.mubr.msk.f32.mxu1 %vm1035_vm3, %v1657_v32 }
 0x72f   : > { %v1649_v27 = vpop.xlane.xlu1 %1648 }
 0x730   : > { %v1646_v7 = vpop.xlane.xlu0 %1645 }
 0x731   : > { %3037 = vrcp.f32 %v1646_v7 }
 0x732   : > { %3039 = vrcp.f32 %v1637_v23  ;;  %v3051_v23 = vld [vmem:[%s3241_s22 + $0x10] sm:$0xff] }
 0x733   : > { %v1655_v9 = vpop.xlane.xlu1 %1654  ;;  %3041 = vrcp.f32 %v1643_v46 }
 0x734   : > { %v1652_v16 = vpop.xlane.xlu0 %1651  ;;  %3043 = vrcp.f32 %v1640_v38  ;;  %v3052_v38 = vld [vmem:[%s3241_s22 + $0x18] sm:$0xff] }
 0x735   : > { %3045 = vrcp.f32 %v1649_v27 }
 0x736   : > { %3047 = vrcp.f32 %v1652_v16 }
 0x737   : > { %v2958_v10 = vpop.permute.xlu1 %2957  ;;  %3049 = vrcp.f32 %v1655_v9 }
 0x738   : > { %v2953_v21 = vpop.permute.xlu0 %2952  ;;  %v2960_v25 = vunpack.i.h.bf16 %v2958_v10  ;;  %v2959_v33 = vunpack.i.l.bf16 %v2958_v10  ;;  %v3053_v10 = vld [vmem:[%s3241_s22] sm:$0xff] }
 0x739   : > { %v2955_v34 = vunpack.i.h.bf16 %v2953_v21  ;;  %v2954_v45 = vunpack.i.l.bf16 %v2953_v21 }
 0x73a   : > { %v2810_v39 = vpack.c.bf16 %v2960_v25, %v2959_v33  ;;  %v3054_v25 = vld [vmem:[%s3241_s22 + $0x8] sm:$0xff] }
 0x73b   : > { %v3038_v50 = vpop.eup %3037  ;;  %v2806_v26 = vpack.c.bf16 %v2955_v34, %v2954_v45  ;;  %v2963_v30 = vpop.permute.xlu1 %2962 }
 0x73c   : > { %v2965_v35 = vunpack.i.h.bf16 %v2963_v30  ;;  %v2964_v1 = vunpack.i.l.bf16 %v2963_v30  ;;  %v1665_v28 = vmul.f32 %v3038_v50, %v3030_v8  ;;  %v3040_v41 = vpop.eup %3039 }
 0x73d   : > { %2807 = vmatprep.subr.bf16.mxu1 %v2806_v26  ;;  %v3042_v59 = vpop.eup %3041  ;;  %v1659_v58 = vmul.f32 %v3040_v41, %v3606_v43 }
 0x73e   : > { %v2814_v40 = vpack.c.bf16 %v2965_v35, %v2964_v1  ;;  %2809 = vmatpush3.bf16.msra.mxu1 %v2806_v26  ;;  %2704 = vmatprep.mubr.msk.f32.mxu0 %vm1035_vm3, %v1665_v28  ;;  %v3044_v4 = vpop.eup %3043  ;;  %v1663_v14 = vmul.f32 %v3042_v59, %v3611_v29  ;;  %v3055_v35 = vld [vmem:[%s3241_s22 + $0x30] sm:$0xff]  ;;  %v3056_v28 = vld [vmem:[%s3241_s22 + $0x38] sm:$0xff] }
 0x73f   : > { %v2968_v52 = vpop.permute.xlu1 %2967  ;;  %2811 = vmatprep.subr.bf16.mxu1 %v2810_v39  ;;  %v3046_v53 = vpop.eup %3045  ;;  %v1661_v62 = vmul.f32 %v3044_v4, %v3615_v54  ;;  %v798_v54 = vld [vmem:[%s3752_s6] sm:$0xff] }
 0x740   : > { %v2970_v42 = vunpack.i.h.bf16 %v2968_v52  ;;  %v2969_v44 = vunpack.i.l.bf16 %v2968_v52  ;;  %2815 = vmatprep.subr.bf16.mxu0 %v2814_v40  ;;  %v3048_v37 = vpop.eup %3047  ;;  %v1667_v63 = vmul.f32 %v3046_v53, %v3619_v22  ;;  %v3058_v52 = vld [vmem:[%s3241_s22 + $0x28] sm:$0xff] }
 0x741   : > { %2817 = vmatpush3.bf16.msra.mxu0 %v2814_v40  ;;  %v3050_v12 = vpop.eup %3049  ;;  %v1669_v60 = vmul.f32 %v3048_v37, %v3626_v24  ;;  %v3057_v40 = vld [vmem:[%s3241_s22 + $0x20] sm:$0xff]  ;;  %s2485_s22 = sshll.u32 (%p3218_p6), %s3101_s12, 4 }
 0x742   : > { %v2818_v55 = vpack.c.bf16 %v2970_v42, %v2969_v44  ;;  %2813 = vmatpush3.bf16.msra.mxu1 %v2810_v39  ;;  %v1671_v43 = vmul.f32 %v3050_v12, %v3624_v11  ;;  %s2224_s16 = sadd.s32 (%p3218_p6), %s2485_s22, %s2484_s17 }
 0x743   : > { %2710 = vmatprep.subr.mxu1 %v799_v31  ;;  %s2486_s20 = sshll.u32 (%p3218_p6), %s2224_s16, 3 }
 0x744   : > { %2819 = vmatprep.subr.bf16.mxu0 %v2818_v55  ;;  %s2226_s25 = scalar_lea.vmem (%p3218_p6), %s3755_s9, %s2486_s20 }
 0x745   : > { %2691 = vmatmul.mubr.msk.f32.vlgmr.msra.gmra.mrb[8].mxu1 %vm1035_vm3, %v1659_v58  ;;  %2821 = vmatpush3.bf16.msra.mxu0 %v2818_v55 }
 0x746   : > { %2693 = vmatprep.mubr.msk.f32.mxu1 %vm1035_vm3, %v1661_v62  ;;  %2711 = vmatpush3.msra.mxu1 %v799_v31 }
 0x747   : > { %2724 = vmatprep.subr.mxu1 %v798_v54 }
 0x748   : > { %2705 = vmatmul.mubr.msk.f32.vlgmr.msra.gmra.mrb[24].mxu0 %vm1035_vm3, %v1667_v63 }
 0x749   : > { %2694 = vmatmul.mubr.msk.f32.gmra.mrb[10].mxu1 %vm1035_vm3, %v1663_v14  ;;  %2707 = vmatprep.mubr.msk.f32.mxu0 %vm1035_vm3, %v1669_v60 }
 0x74c   : > { %2708 = vmatmul.mubr.msk.f32.gmra.mrb[26].mxu0 %vm1035_vm3, %v1671_v43 }
 0x818   : > { %v2692_v0 = vpop.f32.mrb[8].mxu1 }
 0x819   : > { %v1762_v2 = vpop.f32.mrb[9].mxu1 }
 0x81a   : > { %2712 = vmatprep.mubr.msk.f32.mxu1 %vm812_vm1, %v1762_v2 }
 0x81b   : > { %v2706_v29 = vpop.f32.mrb[24].mxu0  ;;  %2713 = vmatmul.mubr.msk.f32.vlgmr.msra.gmra.mrb[12].mxu1 %vm812_vm1, %v2692_v0 }
 0x81c   : > { %v2695_v3 = vpop.f32.mrb[10].mxu1  ;;  %v1871_v56 = vpop.f32.mrb[25].mxu0  ;;  %2725 = vmatpush3.msra.mxu1 %v798_v54 }
 0x81d   : > { %v1772_v57 = vpop.f32.mrb[11].mxu1 }
 0x81e   : > { %2715 = vmatprep.mubr.msk.f32.mxu1 %vm812_vm1, %v1772_v57 }
 0x81f   : > { %v2709_v22 = vpop.f32.mrb[26].mxu0  ;;  %2716 = vmatmul.mubr.msk.f32.gmra.mrb[14].mxu1 %vm812_vm1, %v2695_v3 }
 0x820   : > { %v1881_v8 = vpop.f32.mrb[27].mxu0  ;;  %2718 = vmatprep.mubr.msk.f32.mxu1 %vm812_vm1, %v1871_v56 }
 0x823   : > { %2719 = vmatmul.mubr.msk.f32.gmra.mrb[16].mxu1 %vm812_vm1, %v2706_v29 }
 0x824   : > { %2721 = vmatprep.mubr.msk.f32.mxu1 %vm812_vm1, %v1881_v8 }
 0x827   : > { %2722 = vmatmul.mubr.msk.f32.gmra.mrb[18].mxu1 %vm812_vm1, %v2709_v22 }
 0x828   : > { %2726 = vmatprep.mubr.msk.f32.mxu1 %vm812_vm1, %v3564_v49 }
 0x82b   : > { %2727 = vmatmul.mubr.msk.f32.vlgmr.msra.gmra.mrb[12].mxu1 %vm812_vm1, %v3562_v48 }
 0x82c   : > { %2729 = vmatprep.mubr.msk.f32.mxu1 %vm812_vm1, %v3568_v51 }
 0x82f   : > { %2730 = vmatmul.mubr.msk.f32.gmra.mrb[14].mxu1 %vm812_vm1, %v3566_v36  ;;  %v2478_v36 = vld [vmem:[%s3753_s7] ss:$0 sm:$0xff] }
 0x830   : > { %2732 = vmatprep.mubr.msk.f32.mxu1 %vm812_vm1, %v3586_v47 }
 0x833   : > { %2733 = vmatmul.mubr.msk.f32.gmra.mrb[16].mxu1 %vm812_vm1, %v3583_v17 }
 0x834   : > { %2735 = vmatprep.mubr.msk.f32.mxu1 %vm812_vm1, %v3596_v6 }
 0x837   : > { %2736 = vmatmul.mubr.msk.f32.gmra.mrb[18].mxu1 %vm812_vm1, %v3594_v19 }
 0x8fe   : > { %v2728_v49 = vpop.f32.mrb[12].mxu1 }
 0x8ff   : > { %v2109_v48 = vpop.f32.mrb[13].mxu1  ;;  %v2156_v15 = vadd.f32 %v2728_v49, %v2478_v36 }
 0x900   : > { %v2155_v24 = vadd.f32 %v2478_v36, %v2109_v48 }
 0x902   : > { %v2731_v5 = vpop.f32.mrb[14].mxu1 }
 0x903   : > { %v2119_v51 = vpop.f32.mrb[15].mxu1  ;;  %v2158_v32 = vadd.f32 %v2731_v5, %v2478_v36 }
 0x904   : > { %v2157_v16 = vadd.f32 %v2478_v36, %v2119_v51 }
 0x906   : > { %v2734_v47 = vpop.f32.mrb[16].mxu1 }
 0x907   : > { %v2160_v11 = vadd.f32 %v2734_v47, %v2478_v36  ;;  %v2129_v17 = vpop.f32.mrb[17].mxu1 }
 0x908   : > { %v2159_v6 = vadd.f32 %v2478_v36, %v2129_v17 }
 0x909   : > { %v2181_v13 = vcombine.low %v2156_v15, %v2160_v11  ;;  %v2480_v19 = vcombine.high %v2156_v15, %v2160_v11 }
 0x90a   : > { %v2179_v18 = vcombine.low %v2155_v24, %v2159_v6  ;;  %v2479_v20 = vcombine.high %v2155_v24, %v2159_v6  ;;  %v2737_v61 = vpop.f32.mrb[18].mxu1 }
 0x90b   : > { %v2197_v46 = vadd.f32 %v3051_v23, %v2181_v13  ;;  %v2198_v27 = vadd.f32 %v3052_v38, %v2480_v19  ;;  %v2162_v7 = vadd.f32 %v2737_v61, %v2478_v36  ;;  %v2139_v9 = vpop.f32.mrb[19].mxu1 }
 0x90c   : > { %v2195_v21 = vadd.f32 %v3053_v10, %v2179_v18  ;;  %v2196_v33 = vadd.f32 %v3054_v25, %v2479_v20  ;;  %v2161_v34 = vadd.f32 %v2478_v36, %v2139_v9  ;;  %2217 = sbr.rel (!%p3218_p6) target bundleno = 2331 (0x91b), region = 98 }
 0x90d   : > { %2205 = vst.msk [vmem:[%s3688_s21 + $0x10] sm:$0xff] %vm492_vm0, %v2197_v46  ;;  %2206 = vst.msk [vmem:[%s3688_s21 + $0x18] sm:$0xff] %vm492_vm0, %v2198_v27  ;;  %v2185_v45 = vcombine.low %v2158_v32, %v2162_v7  ;;  %v2482_v50 = vcombine.high %v2158_v32, %v2162_v7 }
 0x90e   : > { %2203 = vst.msk [vmem:[%s3688_s21] sm:$0xff] %vm492_vm0, %v2195_v21  ;;  %2204 = vst.msk [vmem:[%s3688_s21 + $0x8] sm:$0xff] %vm492_vm0, %v2196_v33  ;;  %v2183_v26 = vcombine.low %v2157_v16, %v2161_v34  ;;  %v2481_v30 = vcombine.high %v2157_v16, %v2161_v34 }
 0x90f   : > { %v2201_v1 = vadd.f32 %v3055_v35, %v2185_v45  ;;  %v2202_v39 = vadd.f32 %v3056_v28, %v2482_v50 }
 0x910   : > { %v2199_v41 = vadd.f32 %v3057_v40, %v2183_v26  ;;  %v2200_v59 = vadd.f32 %v3058_v52, %v2481_v30 }
 0x911   : > { %2209 = vst.msk [vmem:[%s3688_s21 + $0x30] sm:$0xff] %vm492_vm0, %v2201_v1  ;;  %2210 = vst.msk [vmem:[%s3688_s21 + $0x38] sm:$0xff] %vm492_vm0, %v2202_v39 }
 0x912   : > { %2207 = vst.msk [vmem:[%s3688_s21 + $0x20] sm:$0xff] %vm492_vm0, %v2199_v41  ;;  %2208 = vst.msk [vmem:[%s3688_s21 + $0x28] sm:$0xff] %vm492_vm0, %v2200_v59 }
 0x914   : > { %v2272_v31 = vld [vmem:[%s3688_s21 + $0x10] sm:$0xff]  ;;  %v2274_v4 = vld [vmem:[%s3688_s21 + $0x18] sm:$0xff] }
 0x915   : > { %v2268_v42 = vld [vmem:[%s3688_s21] sm:$0xff]  ;;  %v2270_v44 = vld [vmem:[%s3688_s21 + $0x8] sm:$0xff]  ;;  %2273 = vst [vmem:[%s2226_s25 + $0x10] sm:$0xff] %v2272_v31  ;;  %2275 = vst [vmem:[%s2226_s25 + $0x18] sm:$0xff] %v2274_v4 }
 0x916   : > { %2269 = vst [vmem:[%s2226_s25] sm:$0xff] %v2268_v42  ;;  %2271 = vst [vmem:[%s2226_s25 + $0x8] sm:$0xff] %v2270_v44 }
 0x918   : > { %v2280_v58 = vld [vmem:[%s3688_s21 + $0x30] sm:$0xff]  ;;  %v2282_v37 = vld [vmem:[%s3688_s21 + $0x38] sm:$0xff] }
 0x919   : > { %v2276_v53 = vld [vmem:[%s3688_s21 + $0x20] sm:$0xff]  ;;  %v2278_v55 = vld [vmem:[%s3688_s21 + $0x28] sm:$0xff]  ;;  %2281 = vst [vmem:[%s2226_s25 + $0x50] sm:$0xff] %v2280_v58  ;;  %2283 = vst [vmem:[%s2226_s25 + $0x58] sm:$0xff] %v2282_v37 }
 0x91a   : > { %2277 = vst [vmem:[%s2226_s25 + $0x40] sm:$0xff] %v2276_v53  ;;  %2279 = vst [vmem:[%s2226_s25 + $0x48] sm:$0xff] %v2278_v55 }
 0x91b PF: > { %s19_s15 = sadd.s32 1, %s3113_s15   ;;  %s3763_s26 = sld [smem:[#allocation4_spill]] }
 0x91c   : > { %p16_p13 = scmp.ge.s32.totalorder %s19_s15, 6   ;;  %s3764_s27 = sld [smem:[#allocation5_spill]] }
 0x91d   : > { %s3765_s30 = smov %s3093_s10  ;;  %s3766_s10 = smov %s3226_s24 }
 0x91e   : > { %s3767_s11 = smov %s3105_s13  ;;  %s3768_s12 = smov %s3109_s14 }
 0x91f   :  { %18 = sbr.rel (!%p16_p13) target bundleno = 4 (0x4), region = 170 }
 0x921   : > { %s3769_s13 = smov %s3763_s26 }
 0x922   : > { %s3770_s14 = smov %s3764_s27 }

</bundles_post_ra>
